<compile_context>
chip_gen: v7x
topology: tpu7x:2x2x1
jax: 0.10.0
libtpu: 0.0.40
codegen_flags: <defaults>
</compile_context>

<pallas_src>
import functools

import jax
import jax.numpy as jnp
from jax.experimental import pallas as pl
from jax.experimental.pallas import tpu as pltpu


# ----------------------------------------------------------------------------
# In-kernel helpers.
# ----------------------------------------------------------------------------
def _lstm_cell(gates, c_prev, H, first_step):
    """One LSTM cell update.  Gate column order is [i, f, o, g] (baked at init)."""
    sig = jax.nn.sigmoid(gates[:, :3 * H])        # i, f, o
    g = jnp.tanh(gates[:, 3 * H:])                # g
    i = sig[:, 0:H]
    f = sig[:, H:2 * H]
    o = sig[:, 2 * H:3 * H]
    c = i * g if first_step else f * c_prev + i * g
    h = o * jnp.tanh(c)
    return h, c


def _run_stack_wavefront(layers, *, T, B, H, layer0_gate, collect_top):
    """Stacked LSTM, wavefront (timestep-outer, layer-inner) order.

    layers      : [(w_ih_t bf16 (in,4H), w_hh_t bf16 (H,4H), bias f32 (1,4H)), ...]
                  (layer 0's w_ih is unused here — its input projection is hoisted).
    layer0_gate : t -> (B, 4H) f32 input pre-activation (incl. bias) for layer 0.
    Returns (final top-layer h (B, H), list of per-step top-layer h if collect_top).
    """
    L = len(layers)
    hs = [None] * L
    cs = [None] * L
    top_seq = []
    for t in range(T):                                # fully unrolled (static T)
        x_in = None
        for l, (w_ih, w_hh, bias) in enumerate(layers):
            if l == 0:
                gates = layer0_gate(t)
            else:
                gates = (jnp.dot(x_in.astype(jnp.bfloat16), w_ih,
                                 preferred_element_type=jnp.float32) + bias)
            if t > 0:                                  # h == 0 at t == 0: skip h@W_hh
                gates = gates + jnp.dot(hs[l].astype(jnp.bfloat16), w_hh,
                                        preferred_element_type=jnp.float32)
            hs[l], cs[l] = _lstm_cell(gates, cs[l], H, first_step=(t == 0))
            x_in = hs[l]
        if collect_top:
            top_seq.append(hs[-1])
    return hs[-1], top_seq


# ----------------------------------------------------------------------------
# Fused encoder + decoder kernel (single invocation, no grid, no scratch).
# ----------------------------------------------------------------------------
def _seq2seq_kernel(x_ref, *refs, num_enc_layers, num_dec_layers,
                    h_enc, h_dec, t_in, seqlen, b):
    n_enc = 3 * num_enc_layers + 2
    n_dec = 3 * num_dec_layers + 2
    enc_refs = refs[:n_enc]
    dec_refs = refs[n_enc:n_enc + n_dec]
    out_ref = refs[n_enc + n_dec]

    enc_layers = [(enc_refs[3 * l][...], enc_refs[3 * l + 1][...],
                   enc_refs[3 * l + 2][...]) for l in range(num_enc_layers)]
    dec_layers = [(dec_refs[3 * l][...], dec_refs[3 * l + 1][...],
                   dec_refs[3 * l + 2][...]) for l in range(num_dec_layers)]
    enc_fc_w = enc_refs[-2][...]                  # (H_enc, E_enc) bf16
    enc_fc_b = enc_refs[-1][...]                  # (1, E_enc)     f32
    dec_fc_w = dec_refs[-2][...]                  # (H_dec, E_dec) bf16
    dec_fc_b = dec_refs[-1][...]                  # (1, E_dec)     f32

    # ---- Encoder LSTM stack (only the last timestep of the top layer is used) ----
    w_ih0, _, b0 = enc_layers[0]
    x = x_ref[...]                                # (T_in*B, H_enc) f32
    # Hoisted layer-0 input projection for the whole sequence (off the serial chain).
    xw0 = (jnp.dot(x.astype(jnp.bfloat16), w_ih0,
                   preferred_element_type=jnp.float32) + b0)   # (T_in*B, 4H_enc)

    h_top, _ = _run_stack_wavefront(
        enc_layers, T=t_in, B=b, H=h_enc,
        layer0_gate=lambda t: xw0[t * b:(t + 1) * b, :],       # static slice
        collect_top=False)

    # Encoder FC + ReLU on the last timestep only:
    #   relu(fc(lstm_out))[:, -1, :] == relu(fc(lstm_out[:, -1, :]))
    enc_emb = jnp.maximum(
        jnp.dot(h_top.astype(jnp.bfloat16), enc_fc_w,
                preferred_element_type=jnp.float32) + enc_fc_b, 0.0)   # (B, E_enc)

    # ---- Decoder LSTM stack: layer-0 input is enc_emb repeated over time ----
    dw_ih0, _, db0 = dec_layers[0]
    const_gate = (jnp.dot(enc_emb.astype(jnp.bfloat16), dw_ih0,
                          preferred_element_type=jnp.float32) + db0)   # (B, 4H_dec)

    _, top_seq = _run_stack_wavefront(
        dec_layers, T=seqlen, B=b, H=h_dec,
        layer0_gate=lambda t: const_gate,
        collect_top=True)

    # Decoder FC + ReLU over all timesteps, flat (seqlen*B, H_dec) for one dense matmul.
    flat = jnp.concatenate(top_seq, axis=0)                            # (seqlen*B, H_dec)
    y = (jnp.dot(flat.astype(jnp.bfloat16), dec_fc_w,
                 preferred_element_type=jnp.float32) + dec_fc_b)
    out_ref[...] = jnp.maximum(y, 0.0)


def fused_seq2seq(x_tm, params, seqlen):
    """x_tm: (T_in, B, H_enc) time-major embedded tokens (f32).
    Returns (seqlen, B, E_dec) decoder output, time-major."""
    T_in, B, H_in = x_tm.shape
    # All dims derived from static array shapes (safe under jit).
    h_enc = params["enc_layers"][0][1].shape[0]   # W_hh^T is (H, 4H)
    h_dec = params["dec_layers"][0][1].shape[0]
    e_dec = params["dec_fc_w_t"].shape[1]

    # Pad batch up to the f32 sublane multiple (8): unmasked vector ops / stores.
    b_pad = max(8, ((B + 7) // 8) * 8)
    if b_pad != B:
        x_tm = jnp.pad(x_tm, ((0, 0), (0, b_pad - B), (0, 0)))
    x_flat = x_tm.reshape(T_in * b_pad, H_in)     # row index = t*b_pad + b

    inputs = [x_flat]
    for (w_ih_t, w_hh_t, bias) in params["enc_layers"]:
        inputs += [w_ih_t, w_hh_t, bias]
    inputs += [params["enc_fc_w_t"], params["enc_fc_b"]]
    for (w_ih_t, w_hh_t, bias) in params["dec_layers"]:
        inputs += [w_ih_t, w_hh_t, bias]
    inputs += [params["dec_fc_w_t"], params["dec_fc_b"]]

    kernel = functools.partial(
        _seq2seq_kernel,
        num_enc_layers=len(params["enc_layers"]),
        num_dec_layers=len(params["dec_layers"]),
        h_enc=h_enc, h_dec=h_dec,
        t_in=T_in, seqlen=seqlen, b=b_pad)

    out_flat = pl.pallas_call(
        kernel,
        out_shape=jax.ShapeDtypeStruct((seqlen * b_pad, e_dec), jnp.float32),
    )(*inputs)

    # Back to time-major 3-D and drop batch padding (layout plumbing outside the kernel).
    return out_flat.reshape(seqlen, b_pad, e_dec)[:, :B, :]


# ----------------------------------------------------------------------------
# Parameter construction (deterministic, PyTorch-default-style uniform init).
# Weights are stored pre-transposed and bf16 (MXU operand dtype); the combined
# bias (b_ih + b_hh) stays f32.  Gate blocks are reordered [i,f,g,o]->[i,f,o,g].
# ----------------------------------------------------------------------------
def _uniform(key, shape, bound):
    return jax.random.uniform(key, shape, minval=-bound, maxval=bound,
                              dtype=jnp.float32)


def _reorder_gates(w):
    """Reorder 4H gate blocks along axis 0 from PyTorch [i,f,g,o] to [i,f,o,g]."""
    H = w.shape[0] // 4
    return jnp.concatenate([w[0:2 * H], w[3 * H:4 * H], w[2 * H:3 * H]], axis=0)


def init_lstm_stack(key, in_dim, hidden, num_layers):
    bound = 1.0 / float(hidden) ** 0.5
    layers = []
    for l in range(num_layers):
        key, k1, k2, k3, k4 = jax.random.split(key, 5)
        layer_in = in_dim if l == 0 else hidden
        w_ih = _reorder_gates(_uniform(k1, (4 * hidden, layer_in), bound))
        w_hh = _reorder_gates(_uniform(k2, (4 * hidden, hidden), bound))
        b_ih = _uniform(k3, (4 * hidden,), bound)
        b_hh = _uniform(k4, (4 * hidden,), bound)
        b = _reorder_gates(b_ih + b_hh)
        layers.append((w_ih.T.astype(jnp.bfloat16),
                       w_hh.T.astype(jnp.bfloat16),
                       b[None, :]))
    return layers, key


def init_linear(key, in_dim, out_dim):
    bound = 1.0 / float(in_dim) ** 0.5
    k1, k2 = jax.random.split(key)
    w = _uniform(k1, (out_dim, in_dim), bound)    # PyTorch Linear weight (out, in)
    b = _uniform(k2, (out_dim,), bound)
    return w.T.astype(jnp.bfloat16), b[None, :]   # (in, out) bf16, (1, out) f32


def init_word_seq2seq(key, *, embedding_hidden_size, embedding_embed_dim,
                      embedding_num_layer, word_size, padding_idx,
                      decoder_in_dim, decoder_hidden_size, decoder_embed_dim,
                      decoder_num_layer):
    key, k_emb, k_efc, k_dfc = jax.random.split(key, 4)
    emb_table = jax.random.normal(k_emb, (word_size, embedding_hidden_size),
                                  dtype=jnp.float32)
    emb_table = emb_table.at[padding_idx].set(0.0)   # nn.Embedding padding_idx row

    enc_layers, key = init_lstm_stack(key, embedding_hidden_size,
                                      embedding_hidden_size, embedding_num_layer)
    enc_fc_w_t, enc_fc_b = init_linear(k_efc, embedding_hidden_size,
                                       embedding_embed_dim)

    dec_layers, key = init_lstm_stack(key, decoder_in_dim,
                                      decoder_hidden_size, decoder_num_layer)
    dec_fc_w_t, dec_fc_b = init_linear(k_dfc, decoder_hidden_size,
                                       decoder_embed_dim)

    # NOTE: only arrays in the pytree (no Python ints) — shapes are read statically.
    return dict(
        embedding=emb_table,
        enc_layers=enc_layers, enc_fc_w_t=enc_fc_w_t, enc_fc_b=enc_fc_b,
        dec_layers=dec_layers, dec_fc_w_t=dec_fc_w_t, dec_fc_b=dec_fc_b,
    )


# ----------------------------------------------------------------------------
# Forward pass == WordSeq2Seq.forward(ipt, seqlen)
# ----------------------------------------------------------------------------
@functools.partial(jax.jit, static_argnames=("seqlen",))
def word_seq2seq_forward(params, ipt_tokens, *, seqlen):
    # Embedding gather + layout transpose are plain-JAX glue around the fused kernel.
    emb = jnp.take(params["embedding"], ipt_tokens, axis=0)   # (B, T_in, H)
    x_tm = jnp.transpose(emb, (1, 0, 2))                      # (T_in, B, H)
    dec_tm = fused_seq2seq(x_tm, params, seqlen)              # (seqlen, B, E_dec)
    return jnp.transpose(dec_tm, (1, 0, 2))                   # (B, seqlen, E_dec)


if __name__ == "__main__":
    # Small shapes consistent with the module.
    B = 2              # batch
    T_IN = 8           # input token sequence length
    SEQLEN = 8         # decoder output sequence length
    WORD_SIZE = 50
    H = 32             # embedding_hidden_size == decoder hidden size
    E = 32             # embedding_embed_dim == decoder_in_dim == decoder_embed_dim
    NUM_LAYER = 2
    PADDING_IDX = 0

    key = jax.random.PRNGKey(0)
    key, k_params, k_tokens = jax.random.split(key, 3)

    params = init_word_seq2seq(
        k_params,
        embedding_hidden_size=H, embedding_embed_dim=E,
        embedding_num_layer=NUM_LAYER, word_size=WORD_SIZE,
        padding_idx=PADDING_IDX,
        decoder_in_dim=E, decoder_hidden_size=H, decoder_embed_dim=E,
        decoder_num_layer=NUM_LAYER,
    )

    ipt = jax.random.randint(k_tokens, (B, T_IN), 0, WORD_SIZE, dtype=jnp.int32)

    out = word_seq2seq_forward(params, ipt, seqlen=SEQLEN)
    out = jax.block_until_ready(out)

    assert out.shape == (B, SEQLEN, E), out.shape
    assert out.dtype == jnp.float32
    assert bool(jnp.all(out >= 0.0))          # ReLU output
    assert bool(jnp.all(jnp.isfinite(out)))
    print("KERNEL_OK")
</pallas_src>

<mosaic_0001>
module attributes {stable_mosaic.version = 11 : i64} {
  func.func @_seq2seq_kernel(%arg0: memref<64x32xf32, #tpu.memory_space<vmem>>, %arg1: memref<32x128xbf16, #tpu.memory_space<vmem>>, %arg2: memref<32x128xbf16, #tpu.memory_space<vmem>>, %arg3: memref<1x128xf32, #tpu.memory_space<vmem>>, %arg4: memref<32x128xbf16, #tpu.memory_space<vmem>>, %arg5: memref<32x128xbf16, #tpu.memory_space<vmem>>, %arg6: memref<1x128xf32, #tpu.memory_space<vmem>>, %arg7: memref<32x32xbf16, #tpu.memory_space<vmem>>, %arg8: memref<1x32xf32, #tpu.memory_space<vmem>>, %arg9: memref<32x128xbf16, #tpu.memory_space<vmem>>, %arg10: memref<32x128xbf16, #tpu.memory_space<vmem>>, %arg11: memref<1x128xf32, #tpu.memory_space<vmem>>, %arg12: memref<32x128xbf16, #tpu.memory_space<vmem>>, %arg13: memref<32x128xbf16, #tpu.memory_space<vmem>>, %arg14: memref<1x128xf32, #tpu.memory_space<vmem>>, %arg15: memref<32x32xbf16, #tpu.memory_space<vmem>>, %arg16: memref<1x32xf32, #tpu.memory_space<vmem>>, %arg17: memref<64x32xf32, #tpu.memory_space<vmem>>) attributes {dimension_semantics = [], scalar_prefetch = 0 : i64, scratch_operands = 0 : i64, tpu.core_type = #tpu.core_type<tc>} {
    %c0 = arith.constant 0 : index
    %c0_0 = arith.constant 0 : index
    %0 = vector.load %arg1[%c0, %c0_0] : memref<32x128xbf16, #tpu.memory_space<vmem>>, vector<32x128xbf16>
    %c0_1 = arith.constant 0 : index
    %c0_2 = arith.constant 0 : index
    %1 = vector.load %arg2[%c0_1, %c0_2] : memref<32x128xbf16, #tpu.memory_space<vmem>>, vector<32x128xbf16>
    %c0_3 = arith.constant 0 : index
    %c0_4 = arith.constant 0 : index
    %2 = vector.load %arg3[%c0_3, %c0_4] : memref<1x128xf32, #tpu.memory_space<vmem>>, vector<1x128xf32>
    %c0_5 = arith.constant 0 : index
    %c0_6 = arith.constant 0 : index
    %3 = vector.load %arg4[%c0_5, %c0_6] : memref<32x128xbf16, #tpu.memory_space<vmem>>, vector<32x128xbf16>
    %c0_7 = arith.constant 0 : index
    %c0_8 = arith.constant 0 : index
    %4 = vector.load %arg5[%c0_7, %c0_8] : memref<32x128xbf16, #tpu.memory_space<vmem>>, vector<32x128xbf16>
    %c0_9 = arith.constant 0 : index
    %c0_10 = arith.constant 0 : index
    %5 = vector.load %arg6[%c0_9, %c0_10] : memref<1x128xf32, #tpu.memory_space<vmem>>, vector<1x128xf32>
    %c0_11 = arith.constant 0 : index
    %c0_12 = arith.constant 0 : index
    %6 = vector.load %arg9[%c0_11, %c0_12] : memref<32x128xbf16, #tpu.memory_space<vmem>>, vector<32x128xbf16>
    %c0_13 = arith.constant 0 : index
    %c0_14 = arith.constant 0 : index
    %7 = vector.load %arg10[%c0_13, %c0_14] : memref<32x128xbf16, #tpu.memory_space<vmem>>, vector<32x128xbf16>
    %c0_15 = arith.constant 0 : index
    %c0_16 = arith.constant 0 : index
    %8 = vector.load %arg11[%c0_15, %c0_16] : memref<1x128xf32, #tpu.memory_space<vmem>>, vector<1x128xf32>
    %c0_17 = arith.constant 0 : index
    %c0_18 = arith.constant 0 : index
    %9 = vector.load %arg12[%c0_17, %c0_18] : memref<32x128xbf16, #tpu.memory_space<vmem>>, vector<32x128xbf16>
    %c0_19 = arith.constant 0 : index
    %c0_20 = arith.constant 0 : index
    %10 = vector.load %arg13[%c0_19, %c0_20] : memref<32x128xbf16, #tpu.memory_space<vmem>>, vector<32x128xbf16>
    %c0_21 = arith.constant 0 : index
    %c0_22 = arith.constant 0 : index
    %11 = vector.load %arg14[%c0_21, %c0_22] : memref<1x128xf32, #tpu.memory_space<vmem>>, vector<1x128xf32>
    %c0_23 = arith.constant 0 : index
    %c0_24 = arith.constant 0 : index
    %12 = vector.load %arg7[%c0_23, %c0_24] : memref<32x32xbf16, #tpu.memory_space<vmem>>, vector<32x32xbf16>
    %c0_25 = arith.constant 0 : index
    %c0_26 = arith.constant 0 : index
    %13 = vector.load %arg8[%c0_25, %c0_26] : memref<1x32xf32, #tpu.memory_space<vmem>>, vector<1x32xf32>
    %c0_27 = arith.constant 0 : index
    %c0_28 = arith.constant 0 : index
    %14 = vector.load %arg15[%c0_27, %c0_28] : memref<32x32xbf16, #tpu.memory_space<vmem>>, vector<32x32xbf16>
    %c0_29 = arith.constant 0 : index
    %c0_30 = arith.constant 0 : index
    %15 = vector.load %arg16[%c0_29, %c0_30] : memref<1x32xf32, #tpu.memory_space<vmem>>, vector<1x32xf32>
    %c0_31 = arith.constant 0 : index
    %c0_32 = arith.constant 0 : index
    %16 = vector.load %arg0[%c0_31, %c0_32] : memref<64x32xf32, #tpu.memory_space<vmem>>, vector<64x32xf32>
    %17 = arith.truncf %16 : vector<64x32xf32> to vector<64x32xbf16>
    %cst = arith.constant dense<0.000000e+00> : vector<64x128xf32>
    %18 = tpu.matmul %17, %0, %cst {dimension_numbers = #tpu.dot_dimension_numbers<[1], [0], [0], [1], [0, 0, 1, 1], [], []>} : vector<64x32xbf16>, vector<32x128xbf16>, vector<64x128xf32> -> vector<64x128xf32>
    %19 = vector.broadcast %2 : vector<1x128xf32> to vector<64x128xf32>
    %20 = arith.addf %18, %19 : vector<64x128xf32>
    %21 = vector.extract_strided_slice %20 {offsets = [0, 0], sizes = [8, 128], strides = [1, 1]} : vector<64x128xf32> to vector<8x128xf32>
    %22 = vector.extract_strided_slice %21 {offsets = [0, 0], sizes = [8, 96], strides = [1, 1]} : vector<8x128xf32> to vector<8x96xf32>
    %23 = arith.negf %22 : vector<8x96xf32>
    %24 = math.exp %23 : vector<8x96xf32>
    %cst_33 = arith.constant 1.000000e+00 : f32
    %25 = vector.broadcast %cst_33 : f32 to vector<8x96xf32>
    %26 = arith.addf %25, %24 : vector<8x96xf32>
    %27 = arith.divf %25, %26 : vector<8x96xf32>
    %28 = vector.extract_strided_slice %21 {offsets = [0, 96], sizes = [8, 32], strides = [1, 1]} : vector<8x128xf32> to vector<8x32xf32>
    %29 = math.tanh %28 : vector<8x32xf32>
    %30 = vector.extract_strided_slice %27 {offsets = [0, 0], sizes = [8, 32], strides = [1, 1]} : vector<8x96xf32> to vector<8x32xf32>
    %31 = vector.extract_strided_slice %27 {offsets = [0, 64], sizes = [8, 32], strides = [1, 1]} : vector<8x96xf32> to vector<8x32xf32>
    %32 = arith.mulf %30, %29 : vector<8x32xf32>
    %33 = math.tanh %32 : vector<8x32xf32>
    %34 = arith.mulf %31, %33 : vector<8x32xf32>
    %35 = arith.truncf %34 : vector<8x32xf32> to vector<8x32xbf16>
    %cst_34 = arith.constant dense<0.000000e+00> : vector<8x128xf32>
    %36 = tpu.matmul %35, %3, %cst_34 {dimension_numbers = #tpu.dot_dimension_numbers<[1], [0], [0], [1], [0, 0, 1, 1], [], []>} : vector<8x32xbf16>, vector<32x128xbf16>, vector<8x128xf32> -> vector<8x128xf32>
    %37 = vector.broadcast %5 : vector<1x128xf32> to vector<8x128xf32>
    %38 = arith.addf %36, %37 : vector<8x128xf32>
    %39 = vector.extract_strided_slice %38 {offsets = [0, 0], sizes = [8, 96], strides = [1, 1]} : vector<8x128xf32> to vector<8x96xf32>
    %40 = arith.negf %39 : vector<8x96xf32>
    %41 = math.exp %40 : vector<8x96xf32>
    %cst_35 = arith.constant 1.000000e+00 : f32
    %42 = vector.broadcast %cst_35 : f32 to vector<8x96xf32>
    %43 = arith.addf %42, %41 : vector<8x96xf32>
    %44 = arith.divf %42, %43 : vector<8x96xf32>
    %45 = vector.extract_strided_slice %38 {offsets = [0, 96], sizes = [8, 32], strides = [1, 1]} : vector<8x128xf32> to vector<8x32xf32>
    %46 = math.tanh %45 : vector<8x32xf32>
    %47 = vector.extract_strided_slice %44 {offsets = [0, 0], sizes = [8, 32], strides = [1, 1]} : vector<8x96xf32> to vector<8x32xf32>
    %48 = vector.extract_strided_slice %44 {offsets = [0, 64], sizes = [8, 32], strides = [1, 1]} : vector<8x96xf32> to vector<8x32xf32>
    %49 = arith.mulf %47, %46 : vector<8x32xf32>
    %50 = math.tanh %49 : vector<8x32xf32>
    %51 = arith.mulf %48, %50 : vector<8x32xf32>
    %52 = vector.extract_strided_slice %20 {offsets = [8, 0], sizes = [8, 128], strides = [1, 1]} : vector<64x128xf32> to vector<8x128xf32>
    %53 = arith.truncf %34 : vector<8x32xf32> to vector<8x32xbf16>
    %cst_36 = arith.constant dense<0.000000e+00> : vector<8x128xf32>
    %54 = tpu.matmul %53, %1, %cst_36 {dimension_numbers = #tpu.dot_dimension_numbers<[1], [0], [0], [1], [0, 0, 1, 1], [], []>} : vector<8x32xbf16>, vector<32x128xbf16>, vector<8x128xf32> -> vector<8x128xf32>
    %55 = arith.addf %52, %54 : vector<8x128xf32>
    %56 = vector.extract_strided_slice %55 {offsets = [0, 0], sizes = [8, 96], strides = [1, 1]} : vector<8x128xf32> to vector<8x96xf32>
    %57 = arith.negf %56 : vector<8x96xf32>
    %58 = math.exp %57 : vector<8x96xf32>
    %cst_37 = arith.constant 1.000000e+00 : f32
    %59 = vector.broadcast %cst_37 : f32 to vector<8x96xf32>
    %60 = arith.addf %59, %58 : vector<8x96xf32>
    %61 = arith.divf %59, %60 : vector<8x96xf32>
    %62 = vector.extract_strided_slice %55 {offsets = [0, 96], sizes = [8, 32], strides = [1, 1]} : vector<8x128xf32> to vector<8x32xf32>
    %63 = math.tanh %62 : vector<8x32xf32>
    %64 = vector.extract_strided_slice %61 {offsets = [0, 0], sizes = [8, 32], strides = [1, 1]} : vector<8x96xf32> to vector<8x32xf32>
    %65 = vector.extract_strided_slice %61 {offsets = [0, 32], sizes = [8, 32], strides = [1, 1]} : vector<8x96xf32> to vector<8x32xf32>
    %66 = vector.extract_strided_slice %61 {offsets = [0, 64], sizes = [8, 32], strides = [1, 1]} : vector<8x96xf32> to vector<8x32xf32>
    %67 = arith.mulf %65, %32 : vector<8x32xf32>
    %68 = arith.mulf %64, %63 : vector<8x32xf32>
    %69 = arith.addf %67, %68 : vector<8x32xf32>
    %70 = math.tanh %69 : vector<8x32xf32>
    %71 = arith.mulf %66, %70 : vector<8x32xf32>
    %72 = arith.truncf %71 : vector<8x32xf32> to vector<8x32xbf16>
    %cst_38 = arith.constant dense<0.000000e+00> : vector<8x128xf32>
    %73 = tpu.matmul %72, %3, %cst_38 {dimension_numbers = #tpu.dot_dimension_numbers<[1], [0], [0], [1], [0, 0, 1, 1], [], []>} : vector<8x32xbf16>, vector<32x128xbf16>, vector<8x128xf32> -> vector<8x128xf32>
    %74 = vector.broadcast %5 : vector<1x128xf32> to vector<8x128xf32>
    %75 = arith.addf %73, %74 : vector<8x128xf32>
    %76 = arith.truncf %51 : vector<8x32xf32> to vector<8x32xbf16>
    %cst_39 = arith.constant dense<0.000000e+00> : vector<8x128xf32>
    %77 = tpu.matmul %76, %4, %cst_39 {dimension_numbers = #tpu.dot_dimension_numbers<[1], [0], [0], [1], [0, 0, 1, 1], [], []>} : vector<8x32xbf16>, vector<32x128xbf16>, vector<8x128xf32> -> vector<8x128xf32>
    %78 = arith.addf %75, %77 : vector<8x128xf32>
    %79 = vector.extract_strided_slice %78 {offsets = [0, 0], sizes = [8, 96], strides = [1, 1]} : vector<8x128xf32> to vector<8x96xf32>
    %80 = arith.negf %79 : vector<8x96xf32>
    %81 = math.exp %80 : vector<8x96xf32>
    %cst_40 = arith.constant 1.000000e+00 : f32
    %82 = vector.broadcast %cst_40 : f32 to vector<8x96xf32>
    %83 = arith.addf %82, %81 : vector<8x96xf32>
    %84 = arith.divf %82, %83 : vector<8x96xf32>
    %85 = vector.extract_strided_slice %78 {offsets = [0, 96], sizes = [8, 32], strides = [1, 1]} : vector<8x128xf32> to vector<8x32xf32>
    %86 = math.tanh %85 : vector<8x32xf32>
    %87 = vector.extract_strided_slice %84 {offsets = [0, 0], sizes = [8, 32], strides = [1, 1]} : vector<8x96xf32> to vector<8x32xf32>
    %88 = vector.extract_strided_slice %84 {offsets = [0, 32], sizes = [8, 32], strides = [1, 1]} : vector<8x96xf32> to vector<8x32xf32>
    %89 = vector.extract_strided_slice %84 {offsets = [0, 64], sizes = [8, 32], strides = [1, 1]} : vector<8x96xf32> to vector<8x32xf32>
    %90 = arith.mulf %88, %49 : vector<8x32xf32>
    %91 = arith.mulf %87, %86 : vector<8x32xf32>
    %92 = arith.addf %90, %91 : vector<8x32xf32>
    %93 = math.tanh %92 : vector<8x32xf32>
    %94 = arith.mulf %89, %93 : vector<8x32xf32>
    %95 = vector.extract_strided_slice %20 {offsets = [16, 0], sizes = [8, 128], strides = [1, 1]} : vector<64x128xf32> to vector<8x128xf32>
    %96 = arith.truncf %71 : vector<8x32xf32> to vector<8x32xbf16>
    %cst_41 = arith.constant dense<0.000000e+00> : vector<8x128xf32>
    %97 = tpu.matmul %96, %1, %cst_41 {dimension_numbers = #tpu.dot_dimension_numbers<[1], [0], [0], [1], [0, 0, 1, 1], [], []>} : vector<8x32xbf16>, vector<32x128xbf16>, vector<8x128xf32> -> vector<8x128xf32>
    %98 = arith.addf %95, %97 : vector<8x128xf32>
    %99 = vector.extract_strided_slice %98 {offsets = [0, 0], sizes = [8, 96], strides = [1, 1]} : vector<8x128xf32> to vector<8x96xf32>
    %100 = arith.negf %99 : vector<8x96xf32>
    %101 = math.exp %100 : vector<8x96xf32>
    %cst_42 = arith.constant 1.000000e+00 : f32
    %102 = vector.broadcast %cst_42 : f32 to vector<8x96xf32>
    %103 = arith.addf %102, %101 : vector<8x96xf32>
    %104 = arith.divf %102, %103 : vector<8x96xf32>
    %105 = vector.extract_strided_slice %98 {offsets = [0, 96], sizes = [8, 32], strides = [1, 1]} : vector<8x128xf32> to vector<8x32xf32>
    %106 = math.tanh %105 : vector<8x32xf32>
    %107 = vector.extract_strided_slice %104 {offsets = [0, 0], sizes = [8, 32], strides = [1, 1]} : vector<8x96xf32> to vector<8x32xf32>
    %108 = vector.extract_strided_slice %104 {offsets = [0, 32], sizes = [8, 32], strides = [1, 1]} : vector<8x96xf32> to vector<8x32xf32>
    %109 = vector.extract_strided_slice %104 {offsets = [0, 64], sizes = [8, 32], strides = [1, 1]} : vector<8x96xf32> to vector<8x32xf32>
    %110 = arith.mulf %108, %69 : vector<8x32xf32>
    %111 = arith.mulf %107, %106 : vector<8x32xf32>
    %112 = arith.addf %110, %111 : vector<8x32xf32>
    %113 = math.tanh %112 : vector<8x32xf32>
    %114 = arith.mulf %109, %113 : vector<8x32xf32>
    %115 = arith.truncf %114 : vector<8x32xf32> to vector<8x32xbf16>
    %cst_43 = arith.constant dense<0.000000e+00> : vector<8x128xf32>
    %116 = tpu.matmul %115, %3, %cst_43 {dimension_numbers = #tpu.dot_dimension_numbers<[1], [0], [0], [1], [0, 0, 1, 1], [], []>} : vector<8x32xbf16>, vector<32x128xbf16>, vector<8x128xf32> -> vector<8x128xf32>
    %117 = vector.broadcast %5 : vector<1x128xf32> to vector<8x128xf32>
    %118 = arith.addf %116, %117 : vector<8x128xf32>
    %119 = arith.truncf %94 : vector<8x32xf32> to vector<8x32xbf16>
    %cst_44 = arith.constant dense<0.000000e+00> : vector<8x128xf32>
    %120 = tpu.matmul %119, %4, %cst_44 {dimension_numbers = #tpu.dot_dimension_numbers<[1], [0], [0], [1], [0, 0, 1, 1], [], []>} : vector<8x32xbf16>, vector<32x128xbf16>, vector<8x128xf32> -> vector<8x128xf32>
    %121 = arith.addf %118, %120 : vector<8x128xf32>
    %122 = vector.extract_strided_slice %121 {offsets = [0, 0], sizes = [8, 96], strides = [1, 1]} : vector<8x128xf32> to vector<8x96xf32>
    %123 = arith.negf %122 : vector<8x96xf32>
    %124 = math.exp %123 : vector<8x96xf32>
    %cst_45 = arith.constant 1.000000e+00 : f32
    %125 = vector.broadcast %cst_45 : f32 to vector<8x96xf32>
    %126 = arith.addf %125, %124 : vector<8x96xf32>
    %127 = arith.divf %125, %126 : vector<8x96xf32>
    %128 = vector.extract_strided_slice %121 {offsets = [0, 96], sizes = [8, 32], strides = [1, 1]} : vector<8x128xf32> to vector<8x32xf32>
    %129 = math.tanh %128 : vector<8x32xf32>
    %130 = vector.extract_strided_slice %127 {offsets = [0, 0], sizes = [8, 32], strides = [1, 1]} : vector<8x96xf32> to vector<8x32xf32>
    %131 = vector.extract_strided_slice %127 {offsets = [0, 32], sizes = [8, 32], strides = [1, 1]} : vector<8x96xf32> to vector<8x32xf32>
    %132 = vector.extract_strided_slice %127 {offsets = [0, 64], sizes = [8, 32], strides = [1, 1]} : vector<8x96xf32> to vector<8x32xf32>
    %133 = arith.mulf %131, %92 : vector<8x32xf32>
    %134 = arith.mulf %130, %129 : vector<8x32xf32>
    %135 = arith.addf %133, %134 : vector<8x32xf32>
    %136 = math.tanh %135 : vector<8x32xf32>
    %137 = arith.mulf %132, %136 : vector<8x32xf32>
    %138 = vector.extract_strided_slice %20 {offsets = [24, 0], sizes = [8, 128], strides = [1, 1]} : vector<64x128xf32> to vector<8x128xf32>
    %139 = arith.truncf %114 : vector<8x32xf32> to vector<8x32xbf16>
    %cst_46 = arith.constant dense<0.000000e+00> : vector<8x128xf32>
    %140 = tpu.matmul %139, %1, %cst_46 {dimension_numbers = #tpu.dot_dimension_numbers<[1], [0], [0], [1], [0, 0, 1, 1], [], []>} : vector<8x32xbf16>, vector<32x128xbf16>, vector<8x128xf32> -> vector<8x128xf32>
    %141 = arith.addf %138, %140 : vector<8x128xf32>
    %142 = vector.extract_strided_slice %141 {offsets = [0, 0], sizes = [8, 96], strides = [1, 1]} : vector<8x128xf32> to vector<8x96xf32>
    %143 = arith.negf %142 : vector<8x96xf32>
    %144 = math.exp %143 : vector<8x96xf32>
    %cst_47 = arith.constant 1.000000e+00 : f32
    %145 = vector.broadcast %cst_47 : f32 to vector<8x96xf32>
    %146 = arith.addf %145, %144 : vector<8x96xf32>
    %147 = arith.divf %145, %146 : vector<8x96xf32>
    %148 = vector.extract_strided_slice %141 {offsets = [0, 96], sizes = [8, 32], strides = [1, 1]} : vector<8x128xf32> to vector<8x32xf32>
    %149 = math.tanh %148 : vector<8x32xf32>
    %150 = vector.extract_strided_slice %147 {offsets = [0, 0], sizes = [8, 32], strides = [1, 1]} : vector<8x96xf32> to vector<8x32xf32>
    %151 = vector.extract_strided_slice %147 {offsets = [0, 32], sizes = [8, 32], strides = [1, 1]} : vector<8x96xf32> to vector<8x32xf32>
    %152 = vector.extract_strided_slice %147 {offsets = [0, 64], sizes = [8, 32], strides = [1, 1]} : vector<8x96xf32> to vector<8x32xf32>
    %153 = arith.mulf %151, %112 : vector<8x32xf32>
    %154 = arith.mulf %150, %149 : vector<8x32xf32>
    %155 = arith.addf %153, %154 : vector<8x32xf32>
    %156 = math.tanh %155 : vector<8x32xf32>
    %157 = arith.mulf %152, %156 : vector<8x32xf32>
    %158 = arith.truncf %157 : vector<8x32xf32> to vector<8x32xbf16>
    %cst_48 = arith.constant dense<0.000000e+00> : vector<8x128xf32>
    %159 = tpu.matmul %158, %3, %cst_48 {dimension_numbers = #tpu.dot_dimension_numbers<[1], [0], [0], [1], [0, 0, 1, 1], [], []>} : vector<8x32xbf16>, vector<32x128xbf16>, vector<8x128xf32> -> vector<8x128xf32>
    %160 = vector.broadcast %5 : vector<1x128xf32> to vector<8x128xf32>
    %161 = arith.addf %159, %160 : vector<8x128xf32>
    %162 = arith.truncf %137 : vector<8x32xf32> to vector<8x32xbf16>
    %cst_49 = arith.constant dense<0.000000e+00> : vector<8x128xf32>
    %163 = tpu.matmul %162, %4, %cst_49 {dimension_numbers = #tpu.dot_dimension_numbers<[1], [0], [0], [1], [0, 0, 1, 1], [], []>} : vector<8x32xbf16>, vector<32x128xbf16>, vector<8x128xf32> -> vector<8x128xf32>
    %164 = arith.addf %161, %163 : vector<8x128xf32>
    %165 = vector.extract_strided_slice %164 {offsets = [0, 0], sizes = [8, 96], strides = [1, 1]} : vector<8x128xf32> to vector<8x96xf32>
    %166 = arith.negf %165 : vector<8x96xf32>
    %167 = math.exp %166 : vector<8x96xf32>
    %cst_50 = arith.constant 1.000000e+00 : f32
    %168 = vector.broadcast %cst_50 : f32 to vector<8x96xf32>
    %169 = arith.addf %168, %167 : vector<8x96xf32>
    %170 = arith.divf %168, %169 : vector<8x96xf32>
    %171 = vector.extract_strided_slice %164 {offsets = [0, 96], sizes = [8, 32], strides = [1, 1]} : vector<8x128xf32> to vector<8x32xf32>
    %172 = math.tanh %171 : vector<8x32xf32>
    %173 = vector.extract_strided_slice %170 {offsets = [0, 0], sizes = [8, 32], strides = [1, 1]} : vector<8x96xf32> to vector<8x32xf32>
    %174 = vector.extract_strided_slice %170 {offsets = [0, 32], sizes = [8, 32], strides = [1, 1]} : vector<8x96xf32> to vector<8x32xf32>
    %175 = vector.extract_strided_slice %170 {offsets = [0, 64], sizes = [8, 32], strides = [1, 1]} : vector<8x96xf32> to vector<8x32xf32>
    %176 = arith.mulf %174, %135 : vector<8x32xf32>
    %177 = arith.mulf %173, %172 : vector<8x32xf32>
    %178 = arith.addf %176, %177 : vector<8x32xf32>
    %179 = math.tanh %178 : vector<8x32xf32>
    %180 = arith.mulf %175, %179 : vector<8x32xf32>
    %181 = vector.extract_strided_slice %20 {offsets = [32, 0], sizes = [8, 128], strides = [1, 1]} : vector<64x128xf32> to vector<8x128xf32>
    %182 = arith.truncf %157 : vector<8x32xf32> to vector<8x32xbf16>
    %cst_51 = arith.constant dense<0.000000e+00> : vector<8x128xf32>
    %183 = tpu.matmul %182, %1, %cst_51 {dimension_numbers = #tpu.dot_dimension_numbers<[1], [0], [0], [1], [0, 0, 1, 1], [], []>} : vector<8x32xbf16>, vector<32x128xbf16>, vector<8x128xf32> -> vector<8x128xf32>
    %184 = arith.addf %181, %183 : vector<8x128xf32>
    %185 = vector.extract_strided_slice %184 {offsets = [0, 0], sizes = [8, 96], strides = [1, 1]} : vector<8x128xf32> to vector<8x96xf32>
    %186 = arith.negf %185 : vector<8x96xf32>
    %187 = math.exp %186 : vector<8x96xf32>
    %cst_52 = arith.constant 1.000000e+00 : f32
    %188 = vector.broadcast %cst_52 : f32 to vector<8x96xf32>
    %189 = arith.addf %188, %187 : vector<8x96xf32>
    %190 = arith.divf %188, %189 : vector<8x96xf32>
    %191 = vector.extract_strided_slice %184 {offsets = [0, 96], sizes = [8, 32], strides = [1, 1]} : vector<8x128xf32> to vector<8x32xf32>
    %192 = math.tanh %191 : vector<8x32xf32>
    %193 = vector.extract_strided_slice %190 {offsets = [0, 0], sizes = [8, 32], strides = [1, 1]} : vector<8x96xf32> to vector<8x32xf32>
    %194 = vector.extract_strided_slice %190 {offsets = [0, 32], sizes = [8, 32], strides = [1, 1]} : vector<8x96xf32> to vector<8x32xf32>
    %195 = vector.extract_strided_slice %190 {offsets = [0, 64], sizes = [8, 32], strides = [1, 1]} : vector<8x96xf32> to vector<8x32xf32>
    %196 = arith.mulf %194, %155 : vector<8x32xf32>
    %197 = arith.mulf %193, %192 : vector<8x32xf32>
    %198 = arith.addf %196, %197 : vector<8x32xf32>
    %199 = math.tanh %198 : vector<8x32xf32>
    %200 = arith.mulf %195, %199 : vector<8x32xf32>
    %201 = arith.truncf %200 : vector<8x32xf32> to vector<8x32xbf16>
    %cst_53 = arith.constant dense<0.000000e+00> : vector<8x128xf32>
    %202 = tpu.matmul %201, %3, %cst_53 {dimension_numbers = #tpu.dot_dimension_numbers<[1], [0], [0], [1], [0, 0, 1, 1], [], []>} : vector<8x32xbf16>, vector<32x128xbf16>, vector<8x128xf32> -> vector<8x128xf32>
    %203 = vector.broadcast %5 : vector<1x128xf32> to vector<8x128xf32>
    %204 = arith.addf %202, %203 : vector<8x128xf32>
    %205 = arith.truncf %180 : vector<8x32xf32> to vector<8x32xbf16>
    %cst_54 = arith.constant dense<0.000000e+00> : vector<8x128xf32>
    %206 = tpu.matmul %205, %4, %cst_54 {dimension_numbers = #tpu.dot_dimension_numbers<[1], [0], [0], [1], [0, 0, 1, 1], [], []>} : vector<8x32xbf16>, vector<32x128xbf16>, vector<8x128xf32> -> vector<8x128xf32>
    %207 = arith.addf %204, %206 : vector<8x128xf32>
    %208 = vector.extract_strided_slice %207 {offsets = [0, 0], sizes = [8, 96], strides = [1, 1]} : vector<8x128xf32> to vector<8x96xf32>
    %209 = arith.negf %208 : vector<8x96xf32>
    %210 = math.exp %209 : vector<8x96xf32>
    %cst_55 = arith.constant 1.000000e+00 : f32
    %211 = vector.broadcast %cst_55 : f32 to vector<8x96xf32>
    %212 = arith.addf %211, %210 : vector<8x96xf32>
    %213 = arith.divf %211, %212 : vector<8x96xf32>
    %214 = vector.extract_strided_slice %207 {offsets = [0, 96], sizes = [8, 32], strides = [1, 1]} : vector<8x128xf32> to vector<8x32xf32>
    %215 = math.tanh %214 : vector<8x32xf32>
    %216 = vector.extract_strided_slice %213 {offsets = [0, 0], sizes = [8, 32], strides = [1, 1]} : vector<8x96xf32> to vector<8x32xf32>
    %217 = vector.extract_strided_slice %213 {offsets = [0, 32], sizes = [8, 32], strides = [1, 1]} : vector<8x96xf32> to vector<8x32xf32>
    %218 = vector.extract_strided_slice %213 {offsets = [0, 64], sizes = [8, 32], strides = [1, 1]} : vector<8x96xf32> to vector<8x32xf32>
    %219 = arith.mulf %217, %178 : vector<8x32xf32>
    %220 = arith.mulf %216, %215 : vector<8x32xf32>
    %221 = arith.addf %219, %220 : vector<8x32xf32>
    %222 = math.tanh %221 : vector<8x32xf32>
    %223 = arith.mulf %218, %222 : vector<8x32xf32>
    %224 = vector.extract_strided_slice %20 {offsets = [40, 0], sizes = [8, 128], strides = [1, 1]} : vector<64x128xf32> to vector<8x128xf32>
    %225 = arith.truncf %200 : vector<8x32xf32> to vector<8x32xbf16>
    %cst_56 = arith.constant dense<0.000000e+00> : vector<8x128xf32>
    %226 = tpu.matmul %225, %1, %cst_56 {dimension_numbers = #tpu.dot_dimension_numbers<[1], [0], [0], [1], [0, 0, 1, 1], [], []>} : vector<8x32xbf16>, vector<32x128xbf16>, vector<8x128xf32> -> vector<8x128xf32>
    %227 = arith.addf %224, %226 : vector<8x128xf32>
    %228 = vector.extract_strided_slice %227 {offsets = [0, 0], sizes = [8, 96], strides = [1, 1]} : vector<8x128xf32> to vector<8x96xf32>
    %229 = arith.negf %228 : vector<8x96xf32>
    %230 = math.exp %229 : vector<8x96xf32>
    %cst_57 = arith.constant 1.000000e+00 : f32
    %231 = vector.broadcast %cst_57 : f32 to vector<8x96xf32>
    %232 = arith.addf %231, %230 : vector<8x96xf32>
    %233 = arith.divf %231, %232 : vector<8x96xf32>
    %234 = vector.extract_strided_slice %227 {offsets = [0, 96], sizes = [8, 32], strides = [1, 1]} : vector<8x128xf32> to vector<8x32xf32>
    %235 = math.tanh %234 : vector<8x32xf32>
    %236 = vector.extract_strided_slice %233 {offsets = [0, 0], sizes = [8, 32], strides = [1, 1]} : vector<8x96xf32> to vector<8x32xf32>
    %237 = vector.extract_strided_slice %233 {offsets = [0, 32], sizes = [8, 32], strides = [1, 1]} : vector<8x96xf32> to vector<8x32xf32>
    %238 = vector.extract_strided_slice %233 {offsets = [0, 64], sizes = [8, 32], strides = [1, 1]} : vector<8x96xf32> to vector<8x32xf32>
    %239 = arith.mulf %237, %198 : vector<8x32xf32>
    %240 = arith.mulf %236, %235 : vector<8x32xf32>
    %241 = arith.addf %239, %240 : vector<8x32xf32>
    %242 = math.tanh %241 : vector<8x32xf32>
    %243 = arith.mulf %238, %242 : vector<8x32xf32>
    %244 = arith.truncf %243 : vector<8x32xf32> to vector<8x32xbf16>
    %cst_58 = arith.constant dense<0.000000e+00> : vector<8x128xf32>
    %245 = tpu.matmul %244, %3, %cst_58 {dimension_numbers = #tpu.dot_dimension_numbers<[1], [0], [0], [1], [0, 0, 1, 1], [], []>} : vector<8x32xbf16>, vector<32x128xbf16>, vector<8x128xf32> -> vector<8x128xf32>
    %246 = vector.broadcast %5 : vector<1x128xf32> to vector<8x128xf32>
    %247 = arith.addf %245, %246 : vector<8x128xf32>
    %248 = arith.truncf %223 : vector<8x32xf32> to vector<8x32xbf16>
    %cst_59 = arith.constant dense<0.000000e+00> : vector<8x128xf32>
    %249 = tpu.matmul %248, %4, %cst_59 {dimension_numbers = #tpu.dot_dimension_numbers<[1], [0], [0], [1], [0, 0, 1, 1], [], []>} : vector<8x32xbf16>, vector<32x128xbf16>, vector<8x128xf32> -> vector<8x128xf32>
    %250 = arith.addf %247, %249 : vector<8x128xf32>
    %251 = vector.extract_strided_slice %250 {offsets = [0, 0], sizes = [8, 96], strides = [1, 1]} : vector<8x128xf32> to vector<8x96xf32>
    %252 = arith.negf %251 : vector<8x96xf32>
    %253 = math.exp %252 : vector<8x96xf32>
    %cst_60 = arith.constant 1.000000e+00 : f32
    %254 = vector.broadcast %cst_60 : f32 to vector<8x96xf32>
    %255 = arith.addf %254, %253 : vector<8x96xf32>
    %256 = arith.divf %254, %255 : vector<8x96xf32>
    %257 = vector.extract_strided_slice %250 {offsets = [0, 96], sizes = [8, 32], strides = [1, 1]} : vector<8x128xf32> to vector<8x32xf32>
    %258 = math.tanh %257 : vector<8x32xf32>
    %259 = vector.extract_strided_slice %256 {offsets = [0, 0], sizes = [8, 32], strides = [1, 1]} : vector<8x96xf32> to vector<8x32xf32>
    %260 = vector.extract_strided_slice %256 {offsets = [0, 32], sizes = [8, 32], strides = [1, 1]} : vector<8x96xf32> to vector<8x32xf32>
    %261 = vector.extract_strided_slice %256 {offsets = [0, 64], sizes = [8, 32], strides = [1, 1]} : vector<8x96xf32> to vector<8x32xf32>
    %262 = arith.mulf %260, %221 : vector<8x32xf32>
    %263 = arith.mulf %259, %258 : vector<8x32xf32>
    %264 = arith.addf %262, %263 : vector<8x32xf32>
    %265 = math.tanh %264 : vector<8x32xf32>
    %266 = arith.mulf %261, %265 : vector<8x32xf32>
    %267 = vector.extract_strided_slice %20 {offsets = [48, 0], sizes = [8, 128], strides = [1, 1]} : vector<64x128xf32> to vector<8x128xf32>
    %268 = arith.truncf %243 : vector<8x32xf32> to vector<8x32xbf16>
    %cst_61 = arith.constant dense<0.000000e+00> : vector<8x128xf32>
    %269 = tpu.matmul %268, %1, %cst_61 {dimension_numbers = #tpu.dot_dimension_numbers<[1], [0], [0], [1], [0, 0, 1, 1], [], []>} : vector<8x32xbf16>, vector<32x128xbf16>, vector<8x128xf32> -> vector<8x128xf32>
    %270 = arith.addf %267, %269 : vector<8x128xf32>
    %271 = vector.extract_strided_slice %270 {offsets = [0, 0], sizes = [8, 96], strides = [1, 1]} : vector<8x128xf32> to vector<8x96xf32>
    %272 = arith.negf %271 : vector<8x96xf32>
    %273 = math.exp %272 : vector<8x96xf32>
    %cst_62 = arith.constant 1.000000e+00 : f32
    %274 = vector.broadcast %cst_62 : f32 to vector<8x96xf32>
    %275 = arith.addf %274, %273 : vector<8x96xf32>
    %276 = arith.divf %274, %275 : vector<8x96xf32>
    %277 = vector.extract_strided_slice %270 {offsets = [0, 96], sizes = [8, 32], strides = [1, 1]} : vector<8x128xf32> to vector<8x32xf32>
    %278 = math.tanh %277 : vector<8x32xf32>
    %279 = vector.extract_strided_slice %276 {offsets = [0, 0], sizes = [8, 32], strides = [1, 1]} : vector<8x96xf32> to vector<8x32xf32>
    %280 = vector.extract_strided_slice %276 {offsets = [0, 32], sizes = [8, 32], strides = [1, 1]} : vector<8x96xf32> to vector<8x32xf32>
    %281 = vector.extract_strided_slice %276 {offsets = [0, 64], sizes = [8, 32], strides = [1, 1]} : vector<8x96xf32> to vector<8x32xf32>
    %282 = arith.mulf %280, %241 : vector<8x32xf32>
    %283 = arith.mulf %279, %278 : vector<8x32xf32>
    %284 = arith.addf %282, %283 : vector<8x32xf32>
    %285 = math.tanh %284 : vector<8x32xf32>
    %286 = arith.mulf %281, %285 : vector<8x32xf32>
    %287 = arith.truncf %286 : vector<8x32xf32> to vector<8x32xbf16>
    %cst_63 = arith.constant dense<0.000000e+00> : vector<8x128xf32>
    %288 = tpu.matmul %287, %3, %cst_63 {dimension_numbers = #tpu.dot_dimension_numbers<[1], [0], [0], [1], [0, 0, 1, 1], [], []>} : vector<8x32xbf16>, vector<32x128xbf16>, vector<8x128xf32> -> vector<8x128xf32>
    %289 = vector.broadcast %5 : vector<1x128xf32> to vector<8x128xf32>
    %290 = arith.addf %288, %289 : vector<8x128xf32>
    %291 = arith.truncf %266 : vector<8x32xf32> to vector<8x32xbf16>
    %cst_64 = arith.constant dense<0.000000e+00> : vector<8x128xf32>
    %292 = tpu.matmul %291, %4, %cst_64 {dimension_numbers = #tpu.dot_dimension_numbers<[1], [0], [0], [1], [0, 0, 1, 1], [], []>} : vector<8x32xbf16>, vector<32x128xbf16>, vector<8x128xf32> -> vector<8x128xf32>
    %293 = arith.addf %290, %292 : vector<8x128xf32>
    %294 = vector.extract_strided_slice %293 {offsets = [0, 0], sizes = [8, 96], strides = [1, 1]} : vector<8x128xf32> to vector<8x96xf32>
    %295 = arith.negf %294 : vector<8x96xf32>
    %296 = math.exp %295 : vector<8x96xf32>
    %cst_65 = arith.constant 1.000000e+00 : f32
    %297 = vector.broadcast %cst_65 : f32 to vector<8x96xf32>
    %298 = arith.addf %297, %296 : vector<8x96xf32>
    %299 = arith.divf %297, %298 : vector<8x96xf32>
    %300 = vector.extract_strided_slice %293 {offsets = [0, 96], sizes = [8, 32], strides = [1, 1]} : vector<8x128xf32> to vector<8x32xf32>
    %301 = math.tanh %300 : vector<8x32xf32>
    %302 = vector.extract_strided_slice %299 {offsets = [0, 0], sizes = [8, 32], strides = [1, 1]} : vector<8x96xf32> to vector<8x32xf32>
    %303 = vector.extract_strided_slice %299 {offsets = [0, 32], sizes = [8, 32], strides = [1, 1]} : vector<8x96xf32> to vector<8x32xf32>
    %304 = vector.extract_strided_slice %299 {offsets = [0, 64], sizes = [8, 32], strides = [1, 1]} : vector<8x96xf32> to vector<8x32xf32>
    %305 = arith.mulf %303, %264 : vector<8x32xf32>
    %306 = arith.mulf %302, %301 : vector<8x32xf32>
    %307 = arith.addf %305, %306 : vector<8x32xf32>
    %308 = math.tanh %307 : vector<8x32xf32>
    %309 = arith.mulf %304, %308 : vector<8x32xf32>
    %310 = vector.extract_strided_slice %20 {offsets = [56, 0], sizes = [8, 128], strides = [1, 1]} : vector<64x128xf32> to vector<8x128xf32>
    %311 = arith.truncf %286 : vector<8x32xf32> to vector<8x32xbf16>
    %cst_66 = arith.constant dense<0.000000e+00> : vector<8x128xf32>
    %312 = tpu.matmul %311, %1, %cst_66 {dimension_numbers = #tpu.dot_dimension_numbers<[1], [0], [0], [1], [0, 0, 1, 1], [], []>} : vector<8x32xbf16>, vector<32x128xbf16>, vector<8x128xf32> -> vector<8x128xf32>
    %313 = arith.addf %310, %312 : vector<8x128xf32>
    %314 = vector.extract_strided_slice %313 {offsets = [0, 0], sizes = [8, 96], strides = [1, 1]} : vector<8x128xf32> to vector<8x96xf32>
    %315 = arith.negf %314 : vector<8x96xf32>
    %316 = math.exp %315 : vector<8x96xf32>
    %cst_67 = arith.constant 1.000000e+00 : f32
    %317 = vector.broadcast %cst_67 : f32 to vector<8x96xf32>
    %318 = arith.addf %317, %316 : vector<8x96xf32>
    %319 = arith.divf %317, %318 : vector<8x96xf32>
    %320 = vector.extract_strided_slice %313 {offsets = [0, 96], sizes = [8, 32], strides = [1, 1]} : vector<8x128xf32> to vector<8x32xf32>
    %321 = math.tanh %320 : vector<8x32xf32>
    %322 = vector.extract_strided_slice %319 {offsets = [0, 0], sizes = [8, 32], strides = [1, 1]} : vector<8x96xf32> to vector<8x32xf32>
    %323 = vector.extract_strided_slice %319 {offsets = [0, 32], sizes = [8, 32], strides = [1, 1]} : vector<8x96xf32> to vector<8x32xf32>
    %324 = vector.extract_strided_slice %319 {offsets = [0, 64], sizes = [8, 32], strides = [1, 1]} : vector<8x96xf32> to vector<8x32xf32>
    %325 = arith.mulf %323, %284 : vector<8x32xf32>
    %326 = arith.mulf %322, %321 : vector<8x32xf32>
    %327 = arith.addf %325, %326 : vector<8x32xf32>
    %328 = math.tanh %327 : vector<8x32xf32>
    %329 = arith.mulf %324, %328 : vector<8x32xf32>
    %330 = arith.truncf %329 : vector<8x32xf32> to vector<8x32xbf16>
    %cst_68 = arith.constant dense<0.000000e+00> : vector<8x128xf32>
    %331 = tpu.matmul %330, %3, %cst_68 {dimension_numbers = #tpu.dot_dimension_numbers<[1], [0], [0], [1], [0, 0, 1, 1], [], []>} : vector<8x32xbf16>, vector<32x128xbf16>, vector<8x128xf32> -> vector<8x128xf32>
    %332 = vector.broadcast %5 : vector<1x128xf32> to vector<8x128xf32>
    %333 = arith.addf %331, %332 : vector<8x128xf32>
    %334 = arith.truncf %309 : vector<8x32xf32> to vector<8x32xbf16>
    %cst_69 = arith.constant dense<0.000000e+00> : vector<8x128xf32>
    %335 = tpu.matmul %334, %4, %cst_69 {dimension_numbers = #tpu.dot_dimension_numbers<[1], [0], [0], [1], [0, 0, 1, 1], [], []>} : vector<8x32xbf16>, vector<32x128xbf16>, vector<8x128xf32> -> vector<8x128xf32>
    %336 = arith.addf %333, %335 : vector<8x128xf32>
    %337 = vector.extract_strided_slice %336 {offsets = [0, 0], sizes = [8, 96], strides = [1, 1]} : vector<8x128xf32> to vector<8x96xf32>
    %338 = arith.negf %337 : vector<8x96xf32>
    %339 = math.exp %338 : vector<8x96xf32>
    %cst_70 = arith.constant 1.000000e+00 : f32
    %340 = vector.broadcast %cst_70 : f32 to vector<8x96xf32>
    %341 = arith.addf %340, %339 : vector<8x96xf32>
    %342 = arith.divf %340, %341 : vector<8x96xf32>
    %343 = vector.extract_strided_slice %336 {offsets = [0, 96], sizes = [8, 32], strides = [1, 1]} : vector<8x128xf32> to vector<8x32xf32>
    %344 = math.tanh %343 : vector<8x32xf32>
    %345 = vector.extract_strided_slice %342 {offsets = [0, 0], sizes = [8, 32], strides = [1, 1]} : vector<8x96xf32> to vector<8x32xf32>
    %346 = vector.extract_strided_slice %342 {offsets = [0, 32], sizes = [8, 32], strides = [1, 1]} : vector<8x96xf32> to vector<8x32xf32>
    %347 = vector.extract_strided_slice %342 {offsets = [0, 64], sizes = [8, 32], strides = [1, 1]} : vector<8x96xf32> to vector<8x32xf32>
    %348 = arith.mulf %346, %307 : vector<8x32xf32>
    %349 = arith.mulf %345, %344 : vector<8x32xf32>
    %350 = arith.addf %348, %349 : vector<8x32xf32>
    %351 = math.tanh %350 : vector<8x32xf32>
    %352 = arith.mulf %347, %351 : vector<8x32xf32>
    %353 = arith.truncf %352 : vector<8x32xf32> to vector<8x32xbf16>
    %cst_71 = arith.constant dense<0.000000e+00> : vector<8x32xf32>
    %354 = tpu.matmul %353, %12, %cst_71 {dimension_numbers = #tpu.dot_dimension_numbers<[1], [0], [0], [1], [0, 0, 1, 1], [], []>} : vector<8x32xbf16>, vector<32x32xbf16>, vector<8x32xf32> -> vector<8x32xf32>
    %355 = vector.broadcast %13 : vector<1x32xf32> to vector<8x32xf32>
    %356 = arith.addf %354, %355 : vector<8x32xf32>
    %cst_72 = arith.constant 0.000000e+00 : f32
    %357 = vector.broadcast %cst_72 : f32 to vector<8x32xf32>
    %358 = arith.maximumf %356, %357 : vector<8x32xf32>
    %359 = arith.truncf %358 : vector<8x32xf32> to vector<8x32xbf16>
    %cst_73 = arith.constant dense<0.000000e+00> : vector<8x128xf32>
    %360 = tpu.matmul %359, %6, %cst_73 {dimension_numbers = #tpu.dot_dimension_numbers<[1], [0], [0], [1], [0, 0, 1, 1], [], []>} : vector<8x32xbf16>, vector<32x128xbf16>, vector<8x128xf32> -> vector<8x128xf32>
    %361 = vector.broadcast %8 : vector<1x128xf32> to vector<8x128xf32>
    %362 = arith.addf %360, %361 : vector<8x128xf32>
    %363 = vector.extract_strided_slice %362 {offsets = [0, 0], sizes = [8, 96], strides = [1, 1]} : vector<8x128xf32> to vector<8x96xf32>
    %364 = arith.negf %363 : vector<8x96xf32>
    %365 = math.exp %364 : vector<8x96xf32>
    %cst_74 = arith.constant 1.000000e+00 : f32
    %366 = vector.broadcast %cst_74 : f32 to vector<8x96xf32>
    %367 = arith.addf %366, %365 : vector<8x96xf32>
    %368 = arith.divf %366, %367 : vector<8x96xf32>
    %369 = vector.extract_strided_slice %362 {offsets = [0, 96], sizes = [8, 32], strides = [1, 1]} : vector<8x128xf32> to vector<8x32xf32>
    %370 = math.tanh %369 : vector<8x32xf32>
    %371 = vector.extract_strided_slice %368 {offsets = [0, 0], sizes = [8, 32], strides = [1, 1]} : vector<8x96xf32> to vector<8x32xf32>
    %372 = vector.extract_strided_slice %368 {offsets = [0, 64], sizes = [8, 32], strides = [1, 1]} : vector<8x96xf32> to vector<8x32xf32>
    %373 = arith.mulf %371, %370 : vector<8x32xf32>
    %374 = math.tanh %373 : vector<8x32xf32>
    %375 = arith.mulf %372, %374 : vector<8x32xf32>
    %376 = arith.truncf %375 : vector<8x32xf32> to vector<8x32xbf16>
    %cst_75 = arith.constant dense<0.000000e+00> : vector<8x128xf32>
    %377 = tpu.matmul %376, %9, %cst_75 {dimension_numbers = #tpu.dot_dimension_numbers<[1], [0], [0], [1], [0, 0, 1, 1], [], []>} : vector<8x32xbf16>, vector<32x128xbf16>, vector<8x128xf32> -> vector<8x128xf32>
    %378 = vector.broadcast %11 : vector<1x128xf32> to vector<8x128xf32>
    %379 = arith.addf %377, %378 : vector<8x128xf32>
    %380 = vector.extract_strided_slice %379 {offsets = [0, 0], sizes = [8, 96], strides = [1, 1]} : vector<8x128xf32> to vector<8x96xf32>
    %381 = arith.negf %380 : vector<8x96xf32>
    %382 = math.exp %381 : vector<8x96xf32>
    %cst_76 = arith.constant 1.000000e+00 : f32
    %383 = vector.broadcast %cst_76 : f32 to vector<8x96xf32>
    %384 = arith.addf %383, %382 : vector<8x96xf32>
    %385 = arith.divf %383, %384 : vector<8x96xf32>
    %386 = vector.extract_strided_slice %379 {offsets = [0, 96], sizes = [8, 32], strides = [1, 1]} : vector<8x128xf32> to vector<8x32xf32>
    %387 = math.tanh %386 : vector<8x32xf32>
    %388 = vector.extract_strided_slice %385 {offsets = [0, 0], sizes = [8, 32], strides = [1, 1]} : vector<8x96xf32> to vector<8x32xf32>
    %389 = vector.extract_strided_slice %385 {offsets = [0, 64], sizes = [8, 32], strides = [1, 1]} : vector<8x96xf32> to vector<8x32xf32>
    %390 = arith.mulf %388, %387 : vector<8x32xf32>
    %391 = math.tanh %390 : vector<8x32xf32>
    %392 = arith.mulf %389, %391 : vector<8x32xf32>
    %393 = arith.truncf %375 : vector<8x32xf32> to vector<8x32xbf16>
    %cst_77 = arith.constant dense<0.000000e+00> : vector<8x128xf32>
    %394 = tpu.matmul %393, %7, %cst_77 {dimension_numbers = #tpu.dot_dimension_numbers<[1], [0], [0], [1], [0, 0, 1, 1], [], []>} : vector<8x32xbf16>, vector<32x128xbf16>, vector<8x128xf32> -> vector<8x128xf32>
    %395 = arith.addf %362, %394 : vector<8x128xf32>
    %396 = vector.extract_strided_slice %395 {offsets = [0, 0], sizes = [8, 96], strides = [1, 1]} : vector<8x128xf32> to vector<8x96xf32>
    %397 = arith.negf %396 : vector<8x96xf32>
    %398 = math.exp %397 : vector<8x96xf32>
    %cst_78 = arith.constant 1.000000e+00 : f32
    %399 = vector.broadcast %cst_78 : f32 to vector<8x96xf32>
    %400 = arith.addf %399, %398 : vector<8x96xf32>
    %401 = arith.divf %399, %400 : vector<8x96xf32>
    %402 = vector.extract_strided_slice %395 {offsets = [0, 96], sizes = [8, 32], strides = [1, 1]} : vector<8x128xf32> to vector<8x32xf32>
    %403 = math.tanh %402 : vector<8x32xf32>
    %404 = vector.extract_strided_slice %401 {offsets = [0, 0], sizes = [8, 32], strides = [1, 1]} : vector<8x96xf32> to vector<8x32xf32>
    %405 = vector.extract_strided_slice %401 {offsets = [0, 32], sizes = [8, 32], strides = [1, 1]} : vector<8x96xf32> to vector<8x32xf32>
    %406 = vector.extract_strided_slice %401 {offsets = [0, 64], sizes = [8, 32], strides = [1, 1]} : vector<8x96xf32> to vector<8x32xf32>
    %407 = arith.mulf %405, %373 : vector<8x32xf32>
    %408 = arith.mulf %404, %403 : vector<8x32xf32>
    %409 = arith.addf %407, %408 : vector<8x32xf32>
    %410 = math.tanh %409 : vector<8x32xf32>
    %411 = arith.mulf %406, %410 : vector<8x32xf32>
    %412 = arith.truncf %411 : vector<8x32xf32> to vector<8x32xbf16>
    %cst_79 = arith.constant dense<0.000000e+00> : vector<8x128xf32>
    %413 = tpu.matmul %412, %9, %cst_79 {dimension_numbers = #tpu.dot_dimension_numbers<[1], [0], [0], [1], [0, 0, 1, 1], [], []>} : vector<8x32xbf16>, vector<32x128xbf16>, vector<8x128xf32> -> vector<8x128xf32>
    %414 = vector.broadcast %11 : vector<1x128xf32> to vector<8x128xf32>
    %415 = arith.addf %413, %414 : vector<8x128xf32>
    %416 = arith.truncf %392 : vector<8x32xf32> to vector<8x32xbf16>
    %cst_80 = arith.constant dense<0.000000e+00> : vector<8x128xf32>
    %417 = tpu.matmul %416, %10, %cst_80 {dimension_numbers = #tpu.dot_dimension_numbers<[1], [0], [0], [1], [0, 0, 1, 1], [], []>} : vector<8x32xbf16>, vector<32x128xbf16>, vector<8x128xf32> -> vector<8x128xf32>
    %418 = arith.addf %415, %417 : vector<8x128xf32>
    %419 = vector.extract_strided_slice %418 {offsets = [0, 0], sizes = [8, 96], strides = [1, 1]} : vector<8x128xf32> to vector<8x96xf32>
    %420 = arith.negf %419 : vector<8x96xf32>
    %421 = math.exp %420 : vector<8x96xf32>
    %cst_81 = arith.constant 1.000000e+00 : f32
    %422 = vector.broadcast %cst_81 : f32 to vector<8x96xf32>
    %423 = arith.addf %422, %421 : vector<8x96xf32>
    %424 = arith.divf %422, %423 : vector<8x96xf32>
    %425 = vector.extract_strided_slice %418 {offsets = [0, 96], sizes = [8, 32], strides = [1, 1]} : vector<8x128xf32> to vector<8x32xf32>
    %426 = math.tanh %425 : vector<8x32xf32>
    %427 = vector.extract_strided_slice %424 {offsets = [0, 0], sizes = [8, 32], strides = [1, 1]} : vector<8x96xf32> to vector<8x32xf32>
    %428 = vector.extract_strided_slice %424 {offsets = [0, 32], sizes = [8, 32], strides = [1, 1]} : vector<8x96xf32> to vector<8x32xf32>
    %429 = vector.extract_strided_slice %424 {offsets = [0, 64], sizes = [8, 32], strides = [1, 1]} : vector<8x96xf32> to vector<8x32xf32>
    %430 = arith.mulf %428, %390 : vector<8x32xf32>
    %431 = arith.mulf %427, %426 : vector<8x32xf32>
    %432 = arith.addf %430, %431 : vector<8x32xf32>
    %433 = math.tanh %432 : vector<8x32xf32>
    %434 = arith.mulf %429, %433 : vector<8x32xf32>
    %435 = arith.truncf %411 : vector<8x32xf32> to vector<8x32xbf16>
    %cst_82 = arith.constant dense<0.000000e+00> : vector<8x128xf32>
    %436 = tpu.matmul %435, %7, %cst_82 {dimension_numbers = #tpu.dot_dimension_numbers<[1], [0], [0], [1], [0, 0, 1, 1], [], []>} : vector<8x32xbf16>, vector<32x128xbf16>, vector<8x128xf32> -> vector<8x128xf32>
    %437 = arith.addf %362, %436 : vector<8x128xf32>
    %438 = vector.extract_strided_slice %437 {offsets = [0, 0], sizes = [8, 96], strides = [1, 1]} : vector<8x128xf32> to vector<8x96xf32>
    %439 = arith.negf %438 : vector<8x96xf32>
    %440 = math.exp %439 : vector<8x96xf32>
    %cst_83 = arith.constant 1.000000e+00 : f32
    %441 = vector.broadcast %cst_83 : f32 to vector<8x96xf32>
    %442 = arith.addf %441, %440 : vector<8x96xf32>
    %443 = arith.divf %441, %442 : vector<8x96xf32>
    %444 = vector.extract_strided_slice %437 {offsets = [0, 96], sizes = [8, 32], strides = [1, 1]} : vector<8x128xf32> to vector<8x32xf32>
    %445 = math.tanh %444 : vector<8x32xf32>
    %446 = vector.extract_strided_slice %443 {offsets = [0, 0], sizes = [8, 32], strides = [1, 1]} : vector<8x96xf32> to vector<8x32xf32>
    %447 = vector.extract_strided_slice %443 {offsets = [0, 32], sizes = [8, 32], strides = [1, 1]} : vector<8x96xf32> to vector<8x32xf32>
    %448 = vector.extract_strided_slice %443 {offsets = [0, 64], sizes = [8, 32], strides = [1, 1]} : vector<8x96xf32> to vector<8x32xf32>
    %449 = arith.mulf %447, %409 : vector<8x32xf32>
    %450 = arith.mulf %446, %445 : vector<8x32xf32>
    %451 = arith.addf %449, %450 : vector<8x32xf32>
    %452 = math.tanh %451 : vector<8x32xf32>
    %453 = arith.mulf %448, %452 : vector<8x32xf32>
    %454 = arith.truncf %453 : vector<8x32xf32> to vector<8x32xbf16>
    %cst_84 = arith.constant dense<0.000000e+00> : vector<8x128xf32>
    %455 = tpu.matmul %454, %9, %cst_84 {dimension_numbers = #tpu.dot_dimension_numbers<[1], [0], [0], [1], [0, 0, 1, 1], [], []>} : vector<8x32xbf16>, vector<32x128xbf16>, vector<8x128xf32> -> vector<8x128xf32>
    %456 = vector.broadcast %11 : vector<1x128xf32> to vector<8x128xf32>
    %457 = arith.addf %455, %456 : vector<8x128xf32>
    %458 = arith.truncf %434 : vector<8x32xf32> to vector<8x32xbf16>
    %cst_85 = arith.constant dense<0.000000e+00> : vector<8x128xf32>
    %459 = tpu.matmul %458, %10, %cst_85 {dimension_numbers = #tpu.dot_dimension_numbers<[1], [0], [0], [1], [0, 0, 1, 1], [], []>} : vector<8x32xbf16>, vector<32x128xbf16>, vector<8x128xf32> -> vector<8x128xf32>
    %460 = arith.addf %457, %459 : vector<8x128xf32>
    %461 = vector.extract_strided_slice %460 {offsets = [0, 0], sizes = [8, 96], strides = [1, 1]} : vector<8x128xf32> to vector<8x96xf32>
    %462 = arith.negf %461 : vector<8x96xf32>
    %463 = math.exp %462 : vector<8x96xf32>
    %cst_86 = arith.constant 1.000000e+00 : f32
    %464 = vector.broadcast %cst_86 : f32 to vector<8x96xf32>
    %465 = arith.addf %464, %463 : vector<8x96xf32>
    %466 = arith.divf %464, %465 : vector<8x96xf32>
    %467 = vector.extract_strided_slice %460 {offsets = [0, 96], sizes = [8, 32], strides = [1, 1]} : vector<8x128xf32> to vector<8x32xf32>
    %468 = math.tanh %467 : vector<8x32xf32>
    %469 = vector.extract_strided_slice %466 {offsets = [0, 0], sizes = [8, 32], strides = [1, 1]} : vector<8x96xf32> to vector<8x32xf32>
    %470 = vector.extract_strided_slice %466 {offsets = [0, 32], sizes = [8, 32], strides = [1, 1]} : vector<8x96xf32> to vector<8x32xf32>
    %471 = vector.extract_strided_slice %466 {offsets = [0, 64], sizes = [8, 32], strides = [1, 1]} : vector<8x96xf32> to vector<8x32xf32>
    %472 = arith.mulf %470, %432 : vector<8x32xf32>
    %473 = arith.mulf %469, %468 : vector<8x32xf32>
    %474 = arith.addf %472, %473 : vector<8x32xf32>
    %475 = math.tanh %474 : vector<8x32xf32>
    %476 = arith.mulf %471, %475 : vector<8x32xf32>
    %477 = arith.truncf %453 : vector<8x32xf32> to vector<8x32xbf16>
    %cst_87 = arith.constant dense<0.000000e+00> : vector<8x128xf32>
    %478 = tpu.matmul %477, %7, %cst_87 {dimension_numbers = #tpu.dot_dimension_numbers<[1], [0], [0], [1], [0, 0, 1, 1], [], []>} : vector<8x32xbf16>, vector<32x128xbf16>, vector<8x128xf32> -> vector<8x128xf32>
    %479 = arith.addf %362, %478 : vector<8x128xf32>
    %480 = vector.extract_strided_slice %479 {offsets = [0, 0], sizes = [8, 96], strides = [1, 1]} : vector<8x128xf32> to vector<8x96xf32>
    %481 = arith.negf %480 : vector<8x96xf32>
    %482 = math.exp %481 : vector<8x96xf32>
    %cst_88 = arith.constant 1.000000e+00 : f32
    %483 = vector.broadcast %cst_88 : f32 to vector<8x96xf32>
    %484 = arith.addf %483, %482 : vector<8x96xf32>
    %485 = arith.divf %483, %484 : vector<8x96xf32>
    %486 = vector.extract_strided_slice %479 {offsets = [0, 96], sizes = [8, 32], strides = [1, 1]} : vector<8x128xf32> to vector<8x32xf32>
    %487 = math.tanh %486 : vector<8x32xf32>
    %488 = vector.extract_strided_slice %485 {offsets = [0, 0], sizes = [8, 32], strides = [1, 1]} : vector<8x96xf32> to vector<8x32xf32>
    %489 = vector.extract_strided_slice %485 {offsets = [0, 32], sizes = [8, 32], strides = [1, 1]} : vector<8x96xf32> to vector<8x32xf32>
    %490 = vector.extract_strided_slice %485 {offsets = [0, 64], sizes = [8, 32], strides = [1, 1]} : vector<8x96xf32> to vector<8x32xf32>
    %491 = arith.mulf %489, %451 : vector<8x32xf32>
    %492 = arith.mulf %488, %487 : vector<8x32xf32>
    %493 = arith.addf %491, %492 : vector<8x32xf32>
    %494 = math.tanh %493 : vector<8x32xf32>
    %495 = arith.mulf %490, %494 : vector<8x32xf32>
    %496 = arith.truncf %495 : vector<8x32xf32> to vector<8x32xbf16>
    %cst_89 = arith.constant dense<0.000000e+00> : vector<8x128xf32>
    %497 = tpu.matmul %496, %9, %cst_89 {dimension_numbers = #tpu.dot_dimension_numbers<[1], [0], [0], [1], [0, 0, 1, 1], [], []>} : vector<8x32xbf16>, vector<32x128xbf16>, vector<8x128xf32> -> vector<8x128xf32>
    %498 = vector.broadcast %11 : vector<1x128xf32> to vector<8x128xf32>
    %499 = arith.addf %497, %498 : vector<8x128xf32>
    %500 = arith.truncf %476 : vector<8x32xf32> to vector<8x32xbf16>
    %cst_90 = arith.constant dense<0.000000e+00> : vector<8x128xf32>
    %501 = tpu.matmul %500, %10, %cst_90 {dimension_numbers = #tpu.dot_dimension_numbers<[1], [0], [0], [1], [0, 0, 1, 1], [], []>} : vector<8x32xbf16>, vector<32x128xbf16>, vector<8x128xf32> -> vector<8x128xf32>
    %502 = arith.addf %499, %501 : vector<8x128xf32>
    %503 = vector.extract_strided_slice %502 {offsets = [0, 0], sizes = [8, 96], strides = [1, 1]} : vector<8x128xf32> to vector<8x96xf32>
    %504 = arith.negf %503 : vector<8x96xf32>
    %505 = math.exp %504 : vector<8x96xf32>
    %cst_91 = arith.constant 1.000000e+00 : f32
    %506 = vector.broadcast %cst_91 : f32 to vector<8x96xf32>
    %507 = arith.addf %506, %505 : vector<8x96xf32>
    %508 = arith.divf %506, %507 : vector<8x96xf32>
    %509 = vector.extract_strided_slice %502 {offsets = [0, 96], sizes = [8, 32], strides = [1, 1]} : vector<8x128xf32> to vector<8x32xf32>
    %510 = math.tanh %509 : vector<8x32xf32>
    %511 = vector.extract_strided_slice %508 {offsets = [0, 0], sizes = [8, 32], strides = [1, 1]} : vector<8x96xf32> to vector<8x32xf32>
    %512 = vector.extract_strided_slice %508 {offsets = [0, 32], sizes = [8, 32], strides = [1, 1]} : vector<8x96xf32> to vector<8x32xf32>
    %513 = vector.extract_strided_slice %508 {offsets = [0, 64], sizes = [8, 32], strides = [1, 1]} : vector<8x96xf32> to vector<8x32xf32>
    %514 = arith.mulf %512, %474 : vector<8x32xf32>
    %515 = arith.mulf %511, %510 : vector<8x32xf32>
    %516 = arith.addf %514, %515 : vector<8x32xf32>
    %517 = math.tanh %516 : vector<8x32xf32>
    %518 = arith.mulf %513, %517 : vector<8x32xf32>
    %519 = arith.truncf %495 : vector<8x32xf32> to vector<8x32xbf16>
    %cst_92 = arith.constant dense<0.000000e+00> : vector<8x128xf32>
    %520 = tpu.matmul %519, %7, %cst_92 {dimension_numbers = #tpu.dot_dimension_numbers<[1], [0], [0], [1], [0, 0, 1, 1], [], []>} : vector<8x32xbf16>, vector<32x128xbf16>, vector<8x128xf32> -> vector<8x128xf32>
    %521 = arith.addf %362, %520 : vector<8x128xf32>
    %522 = vector.extract_strided_slice %521 {offsets = [0, 0], sizes = [8, 96], strides = [1, 1]} : vector<8x128xf32> to vector<8x96xf32>
    %523 = arith.negf %522 : vector<8x96xf32>
    %524 = math.exp %523 : vector<8x96xf32>
    %cst_93 = arith.constant 1.000000e+00 : f32
    %525 = vector.broadcast %cst_93 : f32 to vector<8x96xf32>
    %526 = arith.addf %525, %524 : vector<8x96xf32>
    %527 = arith.divf %525, %526 : vector<8x96xf32>
    %528 = vector.extract_strided_slice %521 {offsets = [0, 96], sizes = [8, 32], strides = [1, 1]} : vector<8x128xf32> to vector<8x32xf32>
    %529 = math.tanh %528 : vector<8x32xf32>
    %530 = vector.extract_strided_slice %527 {offsets = [0, 0], sizes = [8, 32], strides = [1, 1]} : vector<8x96xf32> to vector<8x32xf32>
    %531 = vector.extract_strided_slice %527 {offsets = [0, 32], sizes = [8, 32], strides = [1, 1]} : vector<8x96xf32> to vector<8x32xf32>
    %532 = vector.extract_strided_slice %527 {offsets = [0, 64], sizes = [8, 32], strides = [1, 1]} : vector<8x96xf32> to vector<8x32xf32>
    %533 = arith.mulf %531, %493 : vector<8x32xf32>
    %534 = arith.mulf %530, %529 : vector<8x32xf32>
    %535 = arith.addf %533, %534 : vector<8x32xf32>
    %536 = math.tanh %535 : vector<8x32xf32>
    %537 = arith.mulf %532, %536 : vector<8x32xf32>
    %538 = arith.truncf %537 : vector<8x32xf32> to vector<8x32xbf16>
    %cst_94 = arith.constant dense<0.000000e+00> : vector<8x128xf32>
    %539 = tpu.matmul %538, %9, %cst_94 {dimension_numbers = #tpu.dot_dimension_numbers<[1], [0], [0], [1], [0, 0, 1, 1], [], []>} : vector<8x32xbf16>, vector<32x128xbf16>, vector<8x128xf32> -> vector<8x128xf32>
    %540 = vector.broadcast %11 : vector<1x128xf32> to vector<8x128xf32>
    %541 = arith.addf %539, %540 : vector<8x128xf32>
    %542 = arith.truncf %518 : vector<8x32xf32> to vector<8x32xbf16>
    %cst_95 = arith.constant dense<0.000000e+00> : vector<8x128xf32>
    %543 = tpu.matmul %542, %10, %cst_95 {dimension_numbers = #tpu.dot_dimension_numbers<[1], [0], [0], [1], [0, 0, 1, 1], [], []>} : vector<8x32xbf16>, vector<32x128xbf16>, vector<8x128xf32> -> vector<8x128xf32>
    %544 = arith.addf %541, %543 : vector<8x128xf32>
    %545 = vector.extract_strided_slice %544 {offsets = [0, 0], sizes = [8, 96], strides = [1, 1]} : vector<8x128xf32> to vector<8x96xf32>
    %546 = arith.negf %545 : vector<8x96xf32>
    %547 = math.exp %546 : vector<8x96xf32>
    %cst_96 = arith.constant 1.000000e+00 : f32
    %548 = vector.broadcast %cst_96 : f32 to vector<8x96xf32>
    %549 = arith.addf %548, %547 : vector<8x96xf32>
    %550 = arith.divf %548, %549 : vector<8x96xf32>
    %551 = vector.extract_strided_slice %544 {offsets = [0, 96], sizes = [8, 32], strides = [1, 1]} : vector<8x128xf32> to vector<8x32xf32>
    %552 = math.tanh %551 : vector<8x32xf32>
    %553 = vector.extract_strided_slice %550 {offsets = [0, 0], sizes = [8, 32], strides = [1, 1]} : vector<8x96xf32> to vector<8x32xf32>
    %554 = vector.extract_strided_slice %550 {offsets = [0, 32], sizes = [8, 32], strides = [1, 1]} : vector<8x96xf32> to vector<8x32xf32>
    %555 = vector.extract_strided_slice %550 {offsets = [0, 64], sizes = [8, 32], strides = [1, 1]} : vector<8x96xf32> to vector<8x32xf32>
    %556 = arith.mulf %554, %516 : vector<8x32xf32>
    %557 = arith.mulf %553, %552 : vector<8x32xf32>
    %558 = arith.addf %556, %557 : vector<8x32xf32>
    %559 = math.tanh %558 : vector<8x32xf32>
    %560 = arith.mulf %555, %559 : vector<8x32xf32>
    %561 = arith.truncf %537 : vector<8x32xf32> to vector<8x32xbf16>
    %cst_97 = arith.constant dense<0.000000e+00> : vector<8x128xf32>
    %562 = tpu.matmul %561, %7, %cst_97 {dimension_numbers = #tpu.dot_dimension_numbers<[1], [0], [0], [1], [0, 0, 1, 1], [], []>} : vector<8x32xbf16>, vector<32x128xbf16>, vector<8x128xf32> -> vector<8x128xf32>
    %563 = arith.addf %362, %562 : vector<8x128xf32>
    %564 = vector.extract_strided_slice %563 {offsets = [0, 0], sizes = [8, 96], strides = [1, 1]} : vector<8x128xf32> to vector<8x96xf32>
    %565 = arith.negf %564 : vector<8x96xf32>
    %566 = math.exp %565 : vector<8x96xf32>
    %cst_98 = arith.constant 1.000000e+00 : f32
    %567 = vector.broadcast %cst_98 : f32 to vector<8x96xf32>
    %568 = arith.addf %567, %566 : vector<8x96xf32>
    %569 = arith.divf %567, %568 : vector<8x96xf32>
    %570 = vector.extract_strided_slice %563 {offsets = [0, 96], sizes = [8, 32], strides = [1, 1]} : vector<8x128xf32> to vector<8x32xf32>
    %571 = math.tanh %570 : vector<8x32xf32>
    %572 = vector.extract_strided_slice %569 {offsets = [0, 0], sizes = [8, 32], strides = [1, 1]} : vector<8x96xf32> to vector<8x32xf32>
    %573 = vector.extract_strided_slice %569 {offsets = [0, 32], sizes = [8, 32], strides = [1, 1]} : vector<8x96xf32> to vector<8x32xf32>
    %574 = vector.extract_strided_slice %569 {offsets = [0, 64], sizes = [8, 32], strides = [1, 1]} : vector<8x96xf32> to vector<8x32xf32>
    %575 = arith.mulf %573, %535 : vector<8x32xf32>
    %576 = arith.mulf %572, %571 : vector<8x32xf32>
    %577 = arith.addf %575, %576 : vector<8x32xf32>
    %578 = math.tanh %577 : vector<8x32xf32>
    %579 = arith.mulf %574, %578 : vector<8x32xf32>
    %580 = arith.truncf %579 : vector<8x32xf32> to vector<8x32xbf16>
    %cst_99 = arith.constant dense<0.000000e+00> : vector<8x128xf32>
    %581 = tpu.matmul %580, %9, %cst_99 {dimension_numbers = #tpu.dot_dimension_numbers<[1], [0], [0], [1], [0, 0, 1, 1], [], []>} : vector<8x32xbf16>, vector<32x128xbf16>, vector<8x128xf32> -> vector<8x128xf32>
    %582 = vector.broadcast %11 : vector<1x128xf32> to vector<8x128xf32>
    %583 = arith.addf %581, %582 : vector<8x128xf32>
    %584 = arith.truncf %560 : vector<8x32xf32> to vector<8x32xbf16>
    %cst_100 = arith.constant dense<0.000000e+00> : vector<8x128xf32>
    %585 = tpu.matmul %584, %10, %cst_100 {dimension_numbers = #tpu.dot_dimension_numbers<[1], [0], [0], [1], [0, 0, 1, 1], [], []>} : vector<8x32xbf16>, vector<32x128xbf16>, vector<8x128xf32> -> vector<8x128xf32>
    %586 = arith.addf %583, %585 : vector<8x128xf32>
    %587 = vector.extract_strided_slice %586 {offsets = [0, 0], sizes = [8, 96], strides = [1, 1]} : vector<8x128xf32> to vector<8x96xf32>
    %588 = arith.negf %587 : vector<8x96xf32>
    %589 = math.exp %588 : vector<8x96xf32>
    %cst_101 = arith.constant 1.000000e+00 : f32
    %590 = vector.broadcast %cst_101 : f32 to vector<8x96xf32>
    %591 = arith.addf %590, %589 : vector<8x96xf32>
    %592 = arith.divf %590, %591 : vector<8x96xf32>
    %593 = vector.extract_strided_slice %586 {offsets = [0, 96], sizes = [8, 32], strides = [1, 1]} : vector<8x128xf32> to vector<8x32xf32>
    %594 = math.tanh %593 : vector<8x32xf32>
    %595 = vector.extract_strided_slice %592 {offsets = [0, 0], sizes = [8, 32], strides = [1, 1]} : vector<8x96xf32> to vector<8x32xf32>
    %596 = vector.extract_strided_slice %592 {offsets = [0, 32], sizes = [8, 32], strides = [1, 1]} : vector<8x96xf32> to vector<8x32xf32>
    %597 = vector.extract_strided_slice %592 {offsets = [0, 64], sizes = [8, 32], strides = [1, 1]} : vector<8x96xf32> to vector<8x32xf32>
    %598 = arith.mulf %596, %558 : vector<8x32xf32>
    %599 = arith.mulf %595, %594 : vector<8x32xf32>
    %600 = arith.addf %598, %599 : vector<8x32xf32>
    %601 = math.tanh %600 : vector<8x32xf32>
    %602 = arith.mulf %597, %601 : vector<8x32xf32>
    %603 = arith.truncf %579 : vector<8x32xf32> to vector<8x32xbf16>
    %cst_102 = arith.constant dense<0.000000e+00> : vector<8x128xf32>
    %604 = tpu.matmul %603, %7, %cst_102 {dimension_numbers = #tpu.dot_dimension_numbers<[1], [0], [0], [1], [0, 0, 1, 1], [], []>} : vector<8x32xbf16>, vector<32x128xbf16>, vector<8x128xf32> -> vector<8x128xf32>
    %605 = arith.addf %362, %604 : vector<8x128xf32>
    %606 = vector.extract_strided_slice %605 {offsets = [0, 0], sizes = [8, 96], strides = [1, 1]} : vector<8x128xf32> to vector<8x96xf32>
    %607 = arith.negf %606 : vector<8x96xf32>
    %608 = math.exp %607 : vector<8x96xf32>
    %cst_103 = arith.constant 1.000000e+00 : f32
    %609 = vector.broadcast %cst_103 : f32 to vector<8x96xf32>
    %610 = arith.addf %609, %608 : vector<8x96xf32>
    %611 = arith.divf %609, %610 : vector<8x96xf32>
    %612 = vector.extract_strided_slice %605 {offsets = [0, 96], sizes = [8, 32], strides = [1, 1]} : vector<8x128xf32> to vector<8x32xf32>
    %613 = math.tanh %612 : vector<8x32xf32>
    %614 = vector.extract_strided_slice %611 {offsets = [0, 0], sizes = [8, 32], strides = [1, 1]} : vector<8x96xf32> to vector<8x32xf32>
    %615 = vector.extract_strided_slice %611 {offsets = [0, 32], sizes = [8, 32], strides = [1, 1]} : vector<8x96xf32> to vector<8x32xf32>
    %616 = vector.extract_strided_slice %611 {offsets = [0, 64], sizes = [8, 32], strides = [1, 1]} : vector<8x96xf32> to vector<8x32xf32>
    %617 = arith.mulf %615, %577 : vector<8x32xf32>
    %618 = arith.mulf %614, %613 : vector<8x32xf32>
    %619 = arith.addf %617, %618 : vector<8x32xf32>
    %620 = math.tanh %619 : vector<8x32xf32>
    %621 = arith.mulf %616, %620 : vector<8x32xf32>
    %622 = arith.truncf %621 : vector<8x32xf32> to vector<8x32xbf16>
    %cst_104 = arith.constant dense<0.000000e+00> : vector<8x128xf32>
    %623 = tpu.matmul %622, %9, %cst_104 {dimension_numbers = #tpu.dot_dimension_numbers<[1], [0], [0], [1], [0, 0, 1, 1], [], []>} : vector<8x32xbf16>, vector<32x128xbf16>, vector<8x128xf32> -> vector<8x128xf32>
    %624 = vector.broadcast %11 : vector<1x128xf32> to vector<8x128xf32>
    %625 = arith.addf %623, %624 : vector<8x128xf32>
    %626 = arith.truncf %602 : vector<8x32xf32> to vector<8x32xbf16>
    %cst_105 = arith.constant dense<0.000000e+00> : vector<8x128xf32>
    %627 = tpu.matmul %626, %10, %cst_105 {dimension_numbers = #tpu.dot_dimension_numbers<[1], [0], [0], [1], [0, 0, 1, 1], [], []>} : vector<8x32xbf16>, vector<32x128xbf16>, vector<8x128xf32> -> vector<8x128xf32>
    %628 = arith.addf %625, %627 : vector<8x128xf32>
    %629 = vector.extract_strided_slice %628 {offsets = [0, 0], sizes = [8, 96], strides = [1, 1]} : vector<8x128xf32> to vector<8x96xf32>
    %630 = arith.negf %629 : vector<8x96xf32>
    %631 = math.exp %630 : vector<8x96xf32>
    %cst_106 = arith.constant 1.000000e+00 : f32
    %632 = vector.broadcast %cst_106 : f32 to vector<8x96xf32>
    %633 = arith.addf %632, %631 : vector<8x96xf32>
    %634 = arith.divf %632, %633 : vector<8x96xf32>
    %635 = vector.extract_strided_slice %628 {offsets = [0, 96], sizes = [8, 32], strides = [1, 1]} : vector<8x128xf32> to vector<8x32xf32>
    %636 = math.tanh %635 : vector<8x32xf32>
    %637 = vector.extract_strided_slice %634 {offsets = [0, 0], sizes = [8, 32], strides = [1, 1]} : vector<8x96xf32> to vector<8x32xf32>
    %638 = vector.extract_strided_slice %634 {offsets = [0, 32], sizes = [8, 32], strides = [1, 1]} : vector<8x96xf32> to vector<8x32xf32>
    %639 = vector.extract_strided_slice %634 {offsets = [0, 64], sizes = [8, 32], strides = [1, 1]} : vector<8x96xf32> to vector<8x32xf32>
    %640 = arith.mulf %638, %600 : vector<8x32xf32>
    %641 = arith.mulf %637, %636 : vector<8x32xf32>
    %642 = arith.addf %640, %641 : vector<8x32xf32>
    %643 = math.tanh %642 : vector<8x32xf32>
    %644 = arith.mulf %639, %643 : vector<8x32xf32>
    %645 = arith.truncf %621 : vector<8x32xf32> to vector<8x32xbf16>
    %cst_107 = arith.constant dense<0.000000e+00> : vector<8x128xf32>
    %646 = tpu.matmul %645, %7, %cst_107 {dimension_numbers = #tpu.dot_dimension_numbers<[1], [0], [0], [1], [0, 0, 1, 1], [], []>} : vector<8x32xbf16>, vector<32x128xbf16>, vector<8x128xf32> -> vector<8x128xf32>
    %647 = arith.addf %362, %646 : vector<8x128xf32>
    %648 = vector.extract_strided_slice %647 {offsets = [0, 0], sizes = [8, 96], strides = [1, 1]} : vector<8x128xf32> to vector<8x96xf32>
    %649 = arith.negf %648 : vector<8x96xf32>
    %650 = math.exp %649 : vector<8x96xf32>
    %cst_108 = arith.constant 1.000000e+00 : f32
    %651 = vector.broadcast %cst_108 : f32 to vector<8x96xf32>
    %652 = arith.addf %651, %650 : vector<8x96xf32>
    %653 = arith.divf %651, %652 : vector<8x96xf32>
    %654 = vector.extract_strided_slice %647 {offsets = [0, 96], sizes = [8, 32], strides = [1, 1]} : vector<8x128xf32> to vector<8x32xf32>
    %655 = math.tanh %654 : vector<8x32xf32>
    %656 = vector.extract_strided_slice %653 {offsets = [0, 0], sizes = [8, 32], strides = [1, 1]} : vector<8x96xf32> to vector<8x32xf32>
    %657 = vector.extract_strided_slice %653 {offsets = [0, 32], sizes = [8, 32], strides = [1, 1]} : vector<8x96xf32> to vector<8x32xf32>
    %658 = vector.extract_strided_slice %653 {offsets = [0, 64], sizes = [8, 32], strides = [1, 1]} : vector<8x96xf32> to vector<8x32xf32>
    %659 = arith.mulf %657, %619 : vector<8x32xf32>
    %660 = arith.mulf %656, %655 : vector<8x32xf32>
    %661 = arith.addf %659, %660 : vector<8x32xf32>
    %662 = math.tanh %661 : vector<8x32xf32>
    %663 = arith.mulf %658, %662 : vector<8x32xf32>
    %664 = arith.truncf %663 : vector<8x32xf32> to vector<8x32xbf16>
    %cst_109 = arith.constant dense<0.000000e+00> : vector<8x128xf32>
    %665 = tpu.matmul %664, %9, %cst_109 {dimension_numbers = #tpu.dot_dimension_numbers<[1], [0], [0], [1], [0, 0, 1, 1], [], []>} : vector<8x32xbf16>, vector<32x128xbf16>, vector<8x128xf32> -> vector<8x128xf32>
    %666 = vector.broadcast %11 : vector<1x128xf32> to vector<8x128xf32>
    %667 = arith.addf %665, %666 : vector<8x128xf32>
    %668 = arith.truncf %644 : vector<8x32xf32> to vector<8x32xbf16>
    %cst_110 = arith.constant dense<0.000000e+00> : vector<8x128xf32>
    %669 = tpu.matmul %668, %10, %cst_110 {dimension_numbers = #tpu.dot_dimension_numbers<[1], [0], [0], [1], [0, 0, 1, 1], [], []>} : vector<8x32xbf16>, vector<32x128xbf16>, vector<8x128xf32> -> vector<8x128xf32>
    %670 = arith.addf %667, %669 : vector<8x128xf32>
    %671 = vector.extract_strided_slice %670 {offsets = [0, 0], sizes = [8, 96], strides = [1, 1]} : vector<8x128xf32> to vector<8x96xf32>
    %672 = arith.negf %671 : vector<8x96xf32>
    %673 = math.exp %672 : vector<8x96xf32>
    %cst_111 = arith.constant 1.000000e+00 : f32
    %674 = vector.broadcast %cst_111 : f32 to vector<8x96xf32>
    %675 = arith.addf %674, %673 : vector<8x96xf32>
    %676 = arith.divf %674, %675 : vector<8x96xf32>
    %677 = vector.extract_strided_slice %670 {offsets = [0, 96], sizes = [8, 32], strides = [1, 1]} : vector<8x128xf32> to vector<8x32xf32>
    %678 = math.tanh %677 : vector<8x32xf32>
    %679 = vector.extract_strided_slice %676 {offsets = [0, 0], sizes = [8, 32], strides = [1, 1]} : vector<8x96xf32> to vector<8x32xf32>
    %680 = vector.extract_strided_slice %676 {offsets = [0, 32], sizes = [8, 32], strides = [1, 1]} : vector<8x96xf32> to vector<8x32xf32>
    %681 = vector.extract_strided_slice %676 {offsets = [0, 64], sizes = [8, 32], strides = [1, 1]} : vector<8x96xf32> to vector<8x32xf32>
    %682 = arith.mulf %680, %642 : vector<8x32xf32>
    %683 = arith.mulf %679, %678 : vector<8x32xf32>
    %684 = arith.addf %682, %683 : vector<8x32xf32>
    %685 = math.tanh %684 : vector<8x32xf32>
    %686 = arith.mulf %681, %685 : vector<8x32xf32>
    %687 = tpu.concatenate %392, %434, %476, %518, %560, %602, %644, %686 in 0 : vector<8x32xf32>, vector<8x32xf32>, vector<8x32xf32>, vector<8x32xf32>, vector<8x32xf32>, vector<8x32xf32>, vector<8x32xf32>, vector<8x32xf32> -> vector<64x32xf32>
    %688 = arith.truncf %687 : vector<64x32xf32> to vector<64x32xbf16>
    %cst_112 = arith.constant dense<0.000000e+00> : vector<64x32xf32>
    %689 = tpu.matmul %688, %14, %cst_112 {dimension_numbers = #tpu.dot_dimension_numbers<[1], [0], [0], [1], [0, 0, 1, 1], [], []>} : vector<64x32xbf16>, vector<32x32xbf16>, vector<64x32xf32> -> vector<64x32xf32>
    %690 = vector.broadcast %15 : vector<1x32xf32> to vector<64x32xf32>
    %691 = arith.addf %689, %690 : vector<64x32xf32>
    %cst_113 = arith.constant 0.000000e+00 : f32
    %692 = vector.broadcast %cst_113 : f32 to vector<64x32xf32>
    %693 = arith.maximumf %691, %692 : vector<64x32xf32>
    %c0_114 = arith.constant 0 : index
    %c0_115 = arith.constant 0 : index
    %694 = vector.load %arg17[%c0_114, %c0_115] : memref<64x32xf32, #tpu.memory_space<vmem>>, vector<64x32xf32>
    tpu.vector_store %arg17[%c0_114, %c0_115], %693 {strides = array<i32>} : memref<64x32xf32, #tpu.memory_space<vmem>>, vector<64x32xf32>,
    return
  }
}

</mosaic_0001>

<bundles_post_ra>
// kernel: word_seq2seq_forward.1
= control target key start
LH: loop header
LB: loop body
LE: loop exit
PB: predicated region body
PF: predicated region fallthrough
CT: control target
= control target key end

     0   :  { %vm133_vm0 = vcmask 261120   ;;  %s4318_s25 = smov 32   ;;  %v4319_v21 = vmov 0.0   ;;  %vm4320_vm1 = vmmov 0   ;;  %s5212_s1 = inlined_call_operand.vmem [shape: bf16[32,128], index: 1, kind: input, shape index: {}]   ;;  %s5213_s0 = inlined_call_operand.vmem [shape: f32[64,32], index: 0, kind: input, shape index: {}]   ;;  %s5214_s3 = inlined_call_operand.vmem [shape: f32[1,128], index: 3, kind: input, shape index: {}]   ;;  %s5215_s4 = inlined_call_operand.vmem [shape: bf16[32,128], index: 4, kind: input, shape index: {}]   ;;  %s5216_s2 = inlined_call_operand.vmem [shape: bf16[32,128], index: 2, kind: input, shape index: {}]   ;;  %s5217_s6 = inlined_call_operand.vmem [shape: f32[1,128], index: 6, kind: input, shape index: {}]   ;;  %s5218_s5 = inlined_call_operand.vmem [shape: bf16[32,128], index: 5, kind: input, shape index: {}]   ;;  %s5219_s7 = inlined_call_operand.vmem [shape: bf16[32,32], index: 7, kind: input, shape index: {}]   ;;  %s5220_s9 = inlined_call_operand.vmem [shape: bf16[32,128], index: 9, kind: input, shape index: {}]   ;;  %s5221_s8 = inlined_call_operand.vmem [shape: f32[1,32], index: 8, kind: input, shape index: {}]   ;;  %s5222_s11 = inlined_call_operand.vmem [shape: f32[1,128], index: 11, kind: input, shape index: {}]   ;;  %s5223_s10 = inlined_call_operand.vmem [shape: bf16[32,128], index: 10, kind: input, shape index: {}]   ;;  %s5224_s12 = inlined_call_operand.vmem [shape: bf16[32,128], index: 12, kind: input, shape index: {}]   ;;  %s5225_s14 = inlined_call_operand.vmem [shape: f32[1,128], index: 14, kind: input, shape index: {}]   ;;  %s5226_s13 = inlined_call_operand.vmem [shape: bf16[32,128], index: 13, kind: input, shape index: {}]   ;;  %s5227_s15 = inlined_call_operand.vmem [shape: bf16[32,32], index: 15, kind: input, shape index: {}]   ;;  %s5228_s16 = inlined_call_operand.vmem [shape: f32[1,32], index: 16, kind: input, shape index: {}]   ;;  %s5229_s17 = inlined_call_operand.vmem [shape: f32[64,32], index: 17, kind: output, shape index: {}]  }
   0x1   :  { %5232 = sst [smem:[#allocation2_spill]] %s5212_s1  ;;  %v4435_v8 = vld [vmem:[%s5214_s3] ss:$0 sm:$0xff]  ;;  %3586 = vmatprep.subr.bf16.mxu1 %v4319_v21  ;;  %3590 = vmatprep.mubr.msk.bf16.mxu1 %vm4320_vm1, %v4319_v21  ;;  %v4456_v23 = vld [vmem:[%s5215_s4 + $0x8] sm:$0xff]   ;;  %s4321_s1 = smov 64  }
   0x2   :  { %5233 = sst [smem:[#allocation3_spill]] %s5213_s0  ;;  %s5234_s26 = sld [smem:[#allocation2_spill]]  ;;  %v4447_v22 = vld [vmem:[%s5215_s4] sm:$0xff]   ;;  %v4478_v30 = vld [vmem:[%s5216_s2 + $0x8] sm:$0xff]  }
   0x3   :  { %s5235_s30 = sld [smem:[#allocation3_spill]]  ;;  %3587 = vmatpush3.bf16.msra.mxu1 %v4447_v22  ;;  %v4471_v28 = vld [vmem:[%s5216_s2] sm:$0xff]  }
   0x4   :  { %3588 = vmatprep.subr.bf16.mxu1 %v4319_v21  ;;  %v4495_v31 = vld [vmem:[%s5217_s6] ss:$0 sm:$0xff] }
   0x7   :  { %3589 = vmatpush3.bf16.msra.mxu1 %v4456_v23 }
   0x8   :  { %v4040_v0 = vld [vmem:[%s5234_s26] sm:$0xff]   ;;  %v4041_v1 = vld [vmem:[%s5234_s26 + $0x8] sm:$0xff]   ;;  %3594 = vmatprep.subr.bf16.mxu1 %v4319_v21 }
   0x9   :  { %3574 = vmatprep.subr.bf16.mxu0 %v4040_v0  ;;  %v103_v2 = vld [vmem:[%s5235_s30] sm:$0xff]  ;;  %v104_v3 = vld [vmem:[%s5235_s30 + $0x8] sm:$0xff]  ;;  %v105_v5 = vld [vmem:[%s5235_s30 + $0x10] sm:$0xff] }
   0xa   :  { %3575 = vmatpush3.bf16.msra.mxu0 %v4040_v0  ;;  %v111_v4 = vpack.c.bf16 %v104_v3, %v103_v2  ;;  %v106_v6 = vld [vmem:[%s5235_s30 + $0x18] sm:$0xff]  ;;  %v107_v0 = vld [vmem:[%s5235_s30 + $0x20] sm:$0xff]  ;;  %v109_v2 = vld [vmem:[%s5235_s30 + $0x30] sm:$0xff] }
   0xb   :  { %3576 = vmatprep.subr.bf16.mxu0 %v4041_v1  ;;  %v112_v7 = vpack.c.bf16 %v106_v6, %v105_v5  ;;  %v110_v5 = vld [vmem:[%s5235_s30 + $0x38] sm:$0xff] }
   0xc   :  { %3578 = vmatprep.mubr.msk.bf16.mxu0 %vm133_vm0, %v111_v4  ;;  %v114_v6 = vpack.c.bf16 %v110_v5, %v109_v2 }
   0xe   :  { %3577 = vmatpush3.bf16.msra.mxu0 %v4041_v1  ;;  %v108_v1 = vld [vmem:[%s5235_s30 + $0x28] sm:$0xff] }
   0xf   :  { %3602 = vmatprep.subr.bf16.mxu0 %v4319_v21  ;;  %v113_v4 = vpack.c.bf16 %v108_v1, %v107_v0 }
  0x11   :  { %3579 = vmatmul.mubr.msk.bf16.vlgmr.msra.gmra.mrb[0].mxu0 %vm133_vm0, %v112_v7 }
  0x12   :  { %3603 = vmatpush3.bf16.msra.mxu0 %v4447_v22  ;;  %3582 = vmatprep.mubr.msk.bf16.mxu0 %vm133_vm0, %v113_v4 }
  0x13   :  { %3604 = vmatprep.subr.bf16.mxu0 %v4319_v21 }
  0x16   :  { %3605 = vmatpush3.bf16.msra.mxu0 %v4456_v23 }
  0x17   :  { %3610 = vmatprep.subr.bf16.mxu0 %v4319_v21 }
  0x19   :  { %3583 = vmatmul.mubr.msk.bf16.gmra.mrb[4].mxu0 %vm133_vm0, %v114_v6 }
  0x1a   :  { %3606 = vmatprep.mubr.msk.bf16.mxu0 %vm4320_vm1, %v4319_v21 }
  0xe4   :  { %v4437_v9 = vpop.f32.mrb[0].mxu0 }
  0xe5   :  { %v180_v10 = vpop.f32.mrb[1].mxu0 }
  0xe6   :  { %v181_v11 = vadd.f32 %v4435_v8, %v180_v10  ;;  %v4440_v12 = vpop.f32.mrb[2].mxu0 }
  0xe7   :  { %v183_v13 = vpop.f32.mrb[3].mxu0  ;;  %v192_v5 = vadd.f32 %v4440_v12, %v4435_v8 }
  0xe8   :  { %4060 = vtanh.f32 %v181_v11  ;;  %v3319_v15 = vmul.f32 -1.442695, %v181_v11  ;;  %v184_v37 = vadd.f32 %v4435_v8, %v183_v13 }
  0xea   :  { %4062 = vpow2.f32 %v3319_v15 }
  0xf2   :  { %v4061_v14 = vpop.eup %4060 }
  0xf3   :  { %219 = vrot.lane.b32.xlu0 %v4061_v14, %s4318_s25  ;;  %v4528_v14 = vpop.f32.mrb[4].mxu0 }
  0xf4   :  { %v4063_v16 = vpop.eup %4062  ;;  %v4530_v15 = vpop.f32.mrb[5].mxu0 }
  0xf5   :  { %v214_v17 = vadd.f32 1.0, %v4063_v16  ;;  %v4532_v16 = vpop.f32.mrb[6].mxu0 }
  0xf7   :  { %4064 = vrcp.f32 %v214_v17  ;;  %v4534_v17 = vpop.f32.mrb[7].mxu0 }
 0x101   :  { %v4065_v18 = vpop.eup %4064 }
 0x165   :  { %v220_v19 = vpop.permute.xlu0 %219 }
 0x166   :  { %v222_v20 = vmul.f32 %v4065_v18, %v220_v19 }
 0x168   :  { %4066 = vtanh.f32 %v222_v20 }
 0x172   :  { %v4067_v24 = vpop.eup %4066 }
 0x173   :  { %225 = vrot.lane.b32.xlu0 %v4067_v24, %s4321_s1 }
 0x177   :  { %373 = vrot.lane.b32.xlu0 %v222_v20, %s4318_s25  ;;  %v4547_v20 = vld [vmem:[%s5218_s5 + $0x8] sm:$0xff]  }
 0x1e5   :  { %v226_v25 = vpop.permute.xlu0 %225 }
 0x1e6   :  { %v228_v26 = vmul.f32 %v4065_v18, %v226_v25  ;;  %v4539_v18 = vld [vmem:[%s5218_s5] sm:$0xff]   ;;  %v189_v25 = vadd.f32 %v4437_v9, %v4435_v8 }
 0x1e8   :  { %v229_v27 = vpack.c.bf16 %v228_v26, %v228_v26 }
 0x1e9   :  { %v374_v51 = vpop.permute.xlu0 %373 }
 0x1ea   :  { %237 = vrot.lane.b32.xlu1 %v229_v27, %s4321_s1 }
 0x25c   :  { %v238_v29 = vpop.permute.xlu1 %237 }
 0x25d   :  { %3591 = vmatmul.mubr.msk.bf16.vlgmr.msra.gmra.mrb[0].mxu1 %vm133_vm0, %v238_v29 }
 0x25e   :  { %3595 = vmatpush3.bf16.msra.mxu1 %v4471_v28  ;;  %3598 = vmatprep.mubr.msk.bf16.mxu1 %vm4320_vm1, %v4319_v21 }
 0x25f   :  { %3596 = vmatprep.subr.bf16.mxu1 %v4319_v21 }
 0x262   :  { %3597 = vmatpush3.bf16.msra.mxu1 %v4478_v30 }
 0x263   :  { %3618 = vmatprep.subr.bf16.mxu1 %v4319_v21 }
 0x265   :  { %3599 = vmatmul.mubr.msk.bf16.vlgmr.msra.gmra.mrb[4].mxu1 %vm133_vm0, %v238_v29 }
 0x266   :  { %3619 = vmatpush3.bf16.msra.mxu1 %v4471_v28  ;;  %3622 = vmatprep.mubr.msk.bf16.mxu1 %vm4320_vm1, %v4319_v21 }
 0x267   :  { %3620 = vmatprep.subr.bf16.mxu1 %v4319_v21 }
 0x26a   :  { %3621 = vmatpush3.bf16.msra.mxu1 %v4478_v30 }
 0x26b   :  { %3626 = vmatprep.subr.bf16.mxu1 %v4319_v21 }
 0x330   :  { %v288_v32 = vpop.f32.mrb[0].mxu1 }
 0x331   :  { %v289_v33 = vadd.f32 %v4495_v31, %v288_v32  ;;  %v3592_v34 = vpop.f32.mrb[1].mxu1 }
 0x332   :  { %v291_v35 = vpop.f32.mrb[2].mxu1 }
 0x333   :  { %4068 = vtanh.f32 %v289_v33  ;;  %v3593_v36 = vpop.f32.mrb[3].mxu1  ;;  %v3324_v45 = vmul.f32 -1.442695, %v289_v33 }
 0x338   :  { %v358_v38 = vpop.f32.mrb[4].mxu1 }
 0x339   :  { %v364_v39 = vadd.f32 %v358_v38, %v184_v37  ;;  %v3600_v40 = vpop.f32.mrb[5].mxu1 }
 0x33a   :  { %v361_v41 = vpop.f32.mrb[6].mxu1 }
 0x33b   :  { %4070 = vtanh.f32 %v364_v39  ;;  %v3601_v42 = vpop.f32.mrb[7].mxu1  ;;  %v3328_v46 = vmul.f32 -1.442695, %v364_v39 }
 0x33c   :  { %4072 = vpow2.f32 %v3324_v45 }
 0x33d   :  { %v4069_v43 = vpop.eup %4068  ;;  %4074 = vpow2.f32 %v3328_v46 }
 0x33e   :  { %302 = vrot.lane.b32.xlu0 %v4069_v43, %s4318_s25 }
 0x345   :  { %v4071_v44 = vpop.eup %4070 }
 0x346   :  { %378 = vrot.lane.b32.xlu1 %v4071_v44, %s4318_s25  ;;  %v4073_v47 = vpop.eup %4072 }
 0x347   :  { %v297_v48 = vadd.f32 1.0, %v4073_v47  ;;  %v4075_v49 = vpop.eup %4074 }
 0x348   :  { %v368_v50 = vadd.f32 1.0, %v4075_v49 }
 0x349   :  { %4076 = vrcp.f32 %v297_v48 }
 0x34a   :  { %4078 = vrcp.f32 %v368_v50 }
 0x353   :  { %v4077_v52 = vpop.eup %4076 }
 0x354   :  { %v4079_v55 = vpop.eup %4078 }
 0x355   :  { %v376_v59 = vmul.f32 %v4079_v55, %v374_v51 }
 0x3b0   :  { %v303_v53 = vpop.permute.xlu0 %302 }
 0x3b1   :  { %v4501_v54 = vmul.f32 %v4077_v52, %v303_v53 }
 0x3b3   :  { %4080 = vtanh.f32 %v4501_v54 }
 0x3b8   :  { %v379_v56 = vpop.permute.xlu1 %378 }
 0x3b9   :  { %v381_v57 = vmul.f32 %v4079_v55, %v379_v56 }
 0x3bb   :  { %383 = vrot.lane.b32.xlu1 %v381_v57, %s4318_s25 }
 0x3bd   :  { %v4081_v58 = vpop.eup %4080 }
 0x3be   :  { %308 = vrot.lane.b32.xlu0 %v4081_v58, %s4321_s1 }
 0x42d   :  { %v384_v60 = vpop.permute.xlu1 %383 }
 0x42e   :  { %v4506_v61 = vadd.f32 %v384_v60, %v376_v59 }
 0x430   :  { %4082 = vtanh.f32 %v4506_v61  ;;  %v309_v62 = vpop.permute.xlu0 %308 }
 0x431   :  { %v311_v63 = vmul.f32 %v4077_v52, %v309_v62 }
 0x433   :  { %v440_v3 = vpack.c.bf16 %v311_v63, %v311_v63 }
 0x435   :  { %442 = vrot.lane.b32.xlu0 %v440_v3, %s4321_s1 }
 0x43a   :  { %v4083_v7 = vpop.eup %4082 }
 0x43b   :  { %389 = vrot.lane.b32.xlu1 %v4083_v7, %s4318_s25 }
 0x4a7   :  { %v443_v24 = vpop.permute.xlu0 %442 }
 0x4ad   :  { %v390_v10 = vpop.permute.xlu1 %389 }
 0x4ae   :  { %v392_v11 = vmul.f32 %v4079_v55, %v390_v10 }
 0x4b0   :  { %v393_v13 = vpack.c.bf16 %v392_v11, %v392_v11 }
 0x4b2   :  { %395 = vrot.lane.b32.xlu1 %v393_v13, %s4321_s1 }
 0x524   :  { %v396_v19 = vpop.permute.xlu1 %395 }
 0x525   :  { %3607 = vmatmul.mubr.msk.bf16.vlgmr.msra.gmra.mrb[8].mxu0 %vm133_vm0, %v396_v19  ;;  %3623 = vmatmul.mubr.msk.bf16.vlgmr.msra.gmra.mrb[8].mxu1 %vm133_vm0, %v396_v19 }
 0x526   :  { %3611 = vmatpush3.bf16.msra.mxu0 %v4539_v18  ;;  %3614 = vmatprep.mubr.msk.bf16.mxu0 %vm4320_vm1, %v4319_v21 }
 0x527   :  { %3612 = vmatprep.subr.bf16.mxu0 %v4319_v21  ;;  %3627 = vmatpush3.bf16.msra.mxu1 %v4447_v22 }
 0x528   :  { %3628 = vmatprep.subr.bf16.mxu1 %v4319_v21  ;;  %3630 = vmatprep.mubr.msk.bf16.mxu1 %vm4320_vm1, %v4319_v21 }
 0x52a   :  { %3613 = vmatpush3.bf16.msra.mxu0 %v4547_v20 }
 0x52b   :  { %3642 = vmatprep.subr.bf16.mxu0 %v4319_v21  ;;  %3629 = vmatpush3.bf16.msra.mxu1 %v4456_v23 }
 0x52c   :  { %3634 = vmatprep.subr.bf16.mxu1 %v4319_v21 }
 0x531   :  { %3615 = vmatmul.mubr.msk.bf16.vlgmr.msra.gmra.mrb[8].mxu0 %vm133_vm0, %v443_v24 }
 0x532   :  { %3643 = vmatpush3.bf16.msra.mxu0 %v4471_v28  ;;  %3646 = vmatprep.mubr.msk.bf16.mxu0 %vm4320_vm1, %v4319_v21 }
 0x533   :  { %3644 = vmatprep.subr.bf16.mxu0 %v4319_v21 }
 0x536   :  { %3645 = vmatpush3.bf16.msra.mxu0 %v4478_v30 }
 0x537   :  { %3650 = vmatprep.subr.bf16.mxu0 %v4319_v21 }
 0x5f8   :  { %v562_v26 = vpop.f32.mrb[8].mxu1 }
 0x5f9   :  { %v568_v27 = vadd.f32 %v562_v26, %v189_v25  ;;  %v3624_v29 = vpop.f32.mrb[9].mxu1 }
 0x5fa   :  { %v565_v32 = vpop.f32.mrb[10].mxu1 }
 0x5fb   :  { %4084 = vtanh.f32 %v568_v27  ;;  %v3625_v33 = vpop.f32.mrb[11].mxu1  ;;  %v3335_v9 = vmul.f32 -1.442695, %v568_v27 }
 0x604   :  { %v493_v34 = vpop.f32.mrb[8].mxu0 }
 0x605   :  { %v4085_v35 = vpop.eup %4084  ;;  %v3966_v36 = vadd.f32 %v4495_v31, %v493_v34  ;;  %v3616_v37 = vpop.f32.mrb[9].mxu0 }
 0x606   :  { %578 = vrot.lane.b32.xlu1 %v4085_v35, %s4318_s25  ;;  %v496_v38 = vpop.f32.mrb[10].mxu0 }
 0x607   :  { %4086 = vtanh.f32 %v3966_v36  ;;  %v3617_v39 = vpop.f32.mrb[11].mxu0  ;;  %v3333_v41 = vmul.f32 -1.442695, %v3966_v36 }
 0x608   :  { %4088 = vpow2.f32 %v3335_v9 }
 0x609   :  { %4090 = vpow2.f32 %v3333_v41 }
 0x611   :  { %v4087_v40 = vpop.eup %4086 }
 0x612   :  { %513 = vrot.lane.b32.xlu0 %v4087_v40, %s4318_s25  ;;  %v4089_v42 = vpop.eup %4088 }
 0x613   :  { %v572_v43 = vadd.f32 1.0, %v4089_v42  ;;  %v4091_v44 = vpop.eup %4090 }
 0x614   :  { %v503_v45 = vadd.f32 1.0, %v4091_v44 }
 0x615   :  { %4092 = vrcp.f32 %v572_v43 }
 0x616   :  { %508 = vrot.lane.b32.xlu0 %v4501_v54, %s4318_s25  ;;  %4094 = vrcp.f32 %v503_v45 }
 0x61f   :  { %v4093_v46 = vpop.eup %4092 }
 0x620   :  { %v4095_v49 = vpop.eup %4094  ;;  %v576_v52 = vmul.f32 %v4093_v46, %v4506_v61 }
 0x678   :  { %v579_v47 = vpop.permute.xlu1 %578 }
 0x679   :  { %v581_v48 = vmul.f32 %v4093_v46, %v579_v47 }
 0x67b   :  { %583 = vrot.lane.b32.xlu1 %v581_v48, %s4318_s25 }
 0x684   :  { %v514_v50 = vpop.permute.xlu0 %513 }
 0x685   :  { %v516_v51 = vmul.f32 %v4095_v49, %v514_v50 }
 0x687   :  { %518 = vrot.lane.b32.xlu1 %v516_v51, %s4318_s25 }
 0x688   :  { %v509_v55 = vpop.permute.xlu0 %508 }
 0x689   :  { %v511_v56 = vmul.f32 %v4095_v49, %v509_v55 }
 0x6ed   :  { %v584_v53 = vpop.permute.xlu1 %583 }
 0x6ee   :  { %v4577_v54 = vadd.f32 %v584_v53, %v576_v52 }
 0x6f0   :  { %4096 = vtanh.f32 %v4577_v54 }
 0x6f9   :  { %v519_v57 = vpop.permute.xlu1 %518 }
 0x6fa   :  { %v4097_v58 = vpop.eup %4096  ;;  %v4580_v59 = vadd.f32 %v519_v57, %v511_v56 }
 0x6fb   :  { %589 = vrot.lane.b32.xlu0 %v4097_v58, %s4318_s25 }
 0x6fc   :  { %4098 = vtanh.f32 %v4580_v59 }
 0x706   :  { %v4099_v60 = vpop.eup %4098 }
 0x707   :  { %524 = vrot.lane.b32.xlu1 %v4099_v60, %s4318_s25 }
 0x76d   :  { %v590_v62 = vpop.permute.xlu0 %589 }
 0x76e   :  { %v592_v61 = vmul.f32 %v4093_v46, %v590_v62 }
 0x770   :  { %v593_v63 = vpack.c.bf16 %v592_v61, %v592_v61 }
 0x772   :  { %595 = vrot.lane.b32.xlu0 %v593_v63, %s4321_s1 }
 0x779   :  { %v525_v0 = vpop.permute.xlu1 %524 }
 0x77a   :  { %v527_v1 = vmul.f32 %v4095_v49, %v525_v0 }
 0x77c   :  { %v640_v2 = vpack.c.bf16 %v527_v1, %v527_v1 }
 0x77e   :  { %642 = vrot.lane.b32.xlu1 %v640_v2, %s4321_s1 }
 0x7e4   :  { %v596_v3 = vpop.permute.xlu0 %595 }
 0x7e5   :  { %3631 = vmatmul.mubr.msk.bf16.vlgmr.msra.gmra.mrb[12].mxu1 %vm133_vm0, %v596_v3  ;;  %3647 = vmatmul.mubr.msk.bf16.vlgmr.msra.gmra.mrb[12].mxu0 %vm133_vm0, %v596_v3 }
 0x7e6   :  { %3635 = vmatpush3.bf16.msra.mxu1 %v4539_v18  ;;  %3638 = vmatprep.mubr.msk.bf16.mxu1 %vm4320_vm1, %v4319_v21 }
 0x7e7   :  { %3636 = vmatprep.subr.bf16.mxu1 %v4319_v21  ;;  %3651 = vmatpush3.bf16.msra.mxu0 %v4447_v22 }
 0x7e8   :  { %3652 = vmatprep.subr.bf16.mxu0 %v4319_v21  ;;  %3654 = vmatprep.mubr.msk.bf16.mxu0 %vm4320_vm1, %v4319_v21 }
 0x7ea   :  { %3637 = vmatpush3.bf16.msra.mxu1 %v4547_v20 }
 0x7eb   :  { %3666 = vmatprep.subr.bf16.mxu1 %v4319_v21  ;;  %3653 = vmatpush3.bf16.msra.mxu0 %v4456_v23 }
 0x7ec   :  { %3658 = vmatprep.subr.bf16.mxu0 %v4319_v21 }
 0x7f0   :  { %v643_v4 = vpop.permute.xlu1 %642 }
 0x7f1   :  { %3639 = vmatmul.mubr.msk.bf16.vlgmr.msra.gmra.mrb[12].mxu1 %vm133_vm0, %v643_v4 }
 0x7f2   :  { %3667 = vmatpush3.bf16.msra.mxu1 %v4471_v28  ;;  %3670 = vmatprep.mubr.msk.bf16.mxu1 %vm4320_vm1, %v4319_v21 }
 0x7f3   :  { %3668 = vmatprep.subr.bf16.mxu1 %v4319_v21 }
 0x7f6   :  { %3669 = vmatpush3.bf16.msra.mxu1 %v4478_v30 }
 0x7f7   :  { %3674 = vmatprep.subr.bf16.mxu1 %v4319_v21 }
 0x8b8   :  { %v746_v6 = vpop.f32.mrb[12].mxu0 }
 0x8b9   :  { %v752_v7 = vadd.f32 %v746_v6, %v192_v5  ;;  %v3648_v10 = vpop.f32.mrb[13].mxu0 }
 0x8ba   :  { %v749_v11 = vpop.f32.mrb[14].mxu0 }
 0x8bb   :  { %4100 = vtanh.f32 %v752_v7  ;;  %v3649_v13 = vpop.f32.mrb[15].mxu0  ;;  %v3340_v12 = vmul.f32 -1.442695, %v752_v7 }
 0x8c4   :  { %v681_v19 = vpop.f32.mrb[12].mxu1 }
 0x8c5   :  { %v4101_v24 = vpop.eup %4100  ;;  %v3967_v25 = vadd.f32 %v4495_v31, %v681_v19  ;;  %v3640_v26 = vpop.f32.mrb[13].mxu1 }
 0x8c6   :  { %v684_v27 = vpop.f32.mrb[14].mxu1  ;;  %762 = vrot.lane.b32.xlu0 %v4101_v24, %s4318_s25 }
 0x8c7   :  { %4102 = vtanh.f32 %v3967_v25  ;;  %v3641_v29 = vpop.f32.mrb[15].mxu1  ;;  %v3338_v33 = vmul.f32 -1.442695, %v3967_v25 }
 0x8c8   :  { %4104 = vpow2.f32 %v3340_v12 }
 0x8c9   :  { %4106 = vpow2.f32 %v3338_v33 }
 0x8d1   :  { %v4103_v32 = vpop.eup %4102 }
 0x8d2   :  { %697 = vrot.lane.b32.xlu1 %v4103_v32, %s4318_s25  ;;  %v4105_v34 = vpop.eup %4104 }
 0x8d3   :  { %v756_v35 = vadd.f32 1.0, %v4105_v34  ;;  %v4107_v36 = vpop.eup %4106 }
 0x8d4   :  { %v691_v37 = vadd.f32 1.0, %v4107_v36 }
 0x8d5   :  { %4108 = vrcp.f32 %v756_v35 }
 0x8d6   :  { %4110 = vrcp.f32 %v691_v37 }
 0x8df   :  { %v4109_v38 = vpop.eup %4108 }
 0x8e0   :  { %v4111_v9 = vpop.eup %4110  ;;  %v760_v43 = vmul.f32 %v4109_v38, %v4577_v54 }
 0x8e1   :  { %v695_v46 = vmul.f32 %v4111_v9, %v4580_v59  ;;  %v197_v59 = vadd.f32 %v4435_v8, %v4530_v15 }
 0x938   :  { %v763_v39 = vpop.permute.xlu0 %762 }
 0x939   :  { %v765_v40 = vmul.f32 %v4109_v38, %v763_v39 }
 0x93b   :  { %767 = vrot.lane.b32.xlu0 %v765_v40, %s4318_s25 }
 0x944   :  { %v698_v41 = vpop.permute.xlu1 %697 }
 0x945   :  { %v700_v42 = vmul.f32 %v4111_v9, %v698_v41 }
 0x947   :  { %702 = vrot.lane.b32.xlu1 %v700_v42, %s4318_s25 }
 0x9ad   :  { %v768_v44 = vpop.permute.xlu0 %767 }
 0x9ae   :  { %v4616_v45 = vadd.f32 %v768_v44, %v760_v43 }
 0x9b0   :  { %4112 = vtanh.f32 %v4616_v45 }
 0x9b9   :  { %v703_v47 = vpop.permute.xlu1 %702 }
 0x9ba   :  { %v4113_v48 = vpop.eup %4112  ;;  %v4620_v49 = vadd.f32 %v703_v47, %v695_v46 }
 0x9bb   :  { %773 = vrot.lane.b32.xlu0 %v4113_v48, %s4318_s25  ;;  %v200_v48 = vadd.f32 %v4435_v8, %v4534_v17 }
 0x9bc   :  { %4114 = vtanh.f32 %v4620_v49 }
 0x9c6   :  { %v4115_v50 = vpop.eup %4114 }
 0x9c7   :  { %708 = vrot.lane.b32.xlu1 %v4115_v50, %s4318_s25 }
 0xa2d   :  { %v774_v51 = vpop.permute.xlu0 %773 }
 0xa2e   :  { %v776_v52 = vmul.f32 %v4109_v38, %v774_v51 }
 0xa30   :  { %v777_v53 = vpack.c.bf16 %v776_v52, %v776_v52 }
 0xa32   :  { %779 = vrot.lane.b32.xlu0 %v777_v53, %s4321_s1 }
 0xa39   :  { %v709_v54 = vpop.permute.xlu1 %708 }
 0xa3a   :  { %v711_v55 = vmul.f32 %v4111_v9, %v709_v54 }
 0xa3c   :  { %v824_v56 = vpack.c.bf16 %v711_v55, %v711_v55 }
 0xa3e   :  { %826 = vrot.lane.b32.xlu1 %v824_v56, %s4321_s1 }
 0xaa4   :  { %v780_v57 = vpop.permute.xlu0 %779 }
 0xaa5   :  { %3655 = vmatmul.mubr.msk.bf16.vlgmr.msra.gmra.mrb[16].mxu0 %vm133_vm0, %v780_v57  ;;  %3671 = vmatmul.mubr.msk.bf16.vlgmr.msra.gmra.mrb[16].mxu1 %vm133_vm0, %v780_v57 }
 0xaa6   :  { %3659 = vmatpush3.bf16.msra.mxu0 %v4539_v18  ;;  %3662 = vmatprep.mubr.msk.bf16.mxu0 %vm4320_vm1, %v4319_v21 }
 0xaa7   :  { %3660 = vmatprep.subr.bf16.mxu0 %v4319_v21  ;;  %3675 = vmatpush3.bf16.msra.mxu1 %v4447_v22 }
 0xaa8   :  { %3676 = vmatprep.subr.bf16.mxu1 %v4319_v21  ;;  %3678 = vmatprep.mubr.msk.bf16.mxu1 %vm4320_vm1, %v4319_v21 }
 0xaaa   :  { %3661 = vmatpush3.bf16.msra.mxu0 %v4547_v20 }
 0xaab   :  { %3690 = vmatprep.subr.bf16.mxu0 %v4319_v21  ;;  %3677 = vmatpush3.bf16.msra.mxu1 %v4456_v23 }
 0xaac   :  { %3682 = vmatprep.subr.bf16.mxu1 %v4319_v21 }
 0xab0   :  { %v827_v58 = vpop.permute.xlu1 %826 }
 0xab1   :  { %3663 = vmatmul.mubr.msk.bf16.vlgmr.msra.gmra.mrb[16].mxu0 %vm133_vm0, %v827_v58 }
 0xab2   :  { %3691 = vmatpush3.bf16.msra.mxu0 %v4471_v28  ;;  %3694 = vmatprep.mubr.msk.bf16.mxu0 %vm4320_vm1, %v4319_v21 }
 0xab3   :  { %3692 = vmatprep.subr.bf16.mxu0 %v4319_v21 }
 0xab6   :  { %3693 = vmatpush3.bf16.msra.mxu0 %v4478_v30 }
 0xab7   :  { %3698 = vmatprep.subr.bf16.mxu0 %v4319_v21 }
 0xb78   :  { %v930_v60 = vpop.f32.mrb[16].mxu1 }
 0xb79   :  { %v936_v62 = vadd.f32 %v930_v60, %v197_v59  ;;  %v3672_v61 = vpop.f32.mrb[17].mxu1 }
 0xb7a   :  { %v933_v63 = vpop.f32.mrb[18].mxu1 }
 0xb7b   :  { %4116 = vtanh.f32 %v936_v62  ;;  %v3673_v0 = vpop.f32.mrb[19].mxu1  ;;  %v3345_v15 = vmul.f32 -1.442695, %v936_v62 }
 0xb84   :  { %v865_v1 = vpop.f32.mrb[16].mxu0 }
 0xb85   :  { %v4117_v2 = vpop.eup %4116  ;;  %v3968_v3 = vadd.f32 %v4495_v31, %v865_v1  ;;  %v3664_v4 = vpop.f32.mrb[17].mxu0 }
 0xb86   :  { %946 = vrot.lane.b32.xlu0 %v4117_v2, %s4318_s25  ;;  %v868_v5 = vpop.f32.mrb[18].mxu0 }
 0xb87   :  { %4118 = vtanh.f32 %v3968_v3  ;;  %v3665_v6 = vpop.f32.mrb[19].mxu0  ;;  %v3343_v10 = vmul.f32 -1.442695, %v3968_v3 }
 0xb88   :  { %4120 = vpow2.f32 %v3345_v15 }
 0xb89   :  { %4122 = vpow2.f32 %v3343_v10 }
 0xb91   :  { %v4119_v7 = vpop.eup %4118 }
 0xb92   :  { %881 = vrot.lane.b32.xlu1 %v4119_v7, %s4318_s25  ;;  %v4121_v11 = vpop.eup %4120 }
 0xb93   :  { %v940_v13 = vadd.f32 1.0, %v4121_v11  ;;  %v4123_v19 = vpop.eup %4122 }
 0xb94   :  { %v875_v24 = vadd.f32 1.0, %v4123_v19 }
 0xb95   :  { %4124 = vrcp.f32 %v940_v13 }
 0xb96   :  { %4126 = vrcp.f32 %v875_v24 }
 0xb9f   :  { %v4125_v25 = vpop.eup %4124 }
 0xba0   :  { %v4127_v29 = vpop.eup %4126  ;;  %v944_v33 = vmul.f32 %v4125_v25, %v4616_v45 }
 0xba1   :  { %v879_v36 = vmul.f32 %v4127_v29, %v4620_v49 }
 0xbf8   :  { %v947_v26 = vpop.permute.xlu0 %946 }
 0xbf9   :  { %v949_v27 = vmul.f32 %v4125_v25, %v947_v26 }
 0xbfb   :  { %951 = vrot.lane.b32.xlu0 %v949_v27, %s4318_s25 }
 0xc04   :  { %v882_v32 = vpop.permute.xlu1 %881 }
 0xc05   :  { %v884_v12 = vmul.f32 %v4127_v29, %v882_v32 }
 0xc07   :  { %886 = vrot.lane.b32.xlu1 %v884_v12, %s4318_s25 }
 0xc6d   :  { %v952_v34 = vpop.permute.xlu0 %951 }
 0xc6e   :  { %v4656_v35 = vadd.f32 %v952_v34, %v944_v33 }
 0xc70   :  { %4128 = vtanh.f32 %v4656_v35 }
 0xc79   :  { %v887_v37 = vpop.permute.xlu1 %886 }
 0xc7a   :  { %v4129_v38 = vpop.eup %4128  ;;  %v4660_v39 = vadd.f32 %v887_v37, %v879_v36  ;;  %v205_v37 = vadd.f32 %v4528_v14, %v4435_v8 }
 0xc7b   :  { %957 = vrot.lane.b32.xlu0 %v4129_v38, %s4318_s25 }
 0xc7c   :  { %4130 = vtanh.f32 %v4660_v39 }
 0xc86   :  { %v4131_v40 = vpop.eup %4130 }
 0xc87   :  { %892 = vrot.lane.b32.xlu1 %v4131_v40, %s4318_s25 }
 0xced   :  { %v958_v9 = vpop.permute.xlu0 %957 }
 0xcee   :  { %v960_v41 = vmul.f32 %v4125_v25, %v958_v9 }
 0xcf0   :  { %v961_v42 = vpack.c.bf16 %v960_v41, %v960_v41 }
 0xcf2   :  { %963 = vrot.lane.b32.xlu0 %v961_v42, %s4321_s1 }
 0xcf9   :  { %v893_v43 = vpop.permute.xlu1 %892 }
 0xcfa   :  { %v895_v44 = vmul.f32 %v4127_v29, %v893_v43 }
 0xcfc   :  { %v1008_v45 = vpack.c.bf16 %v895_v44, %v895_v44 }
 0xcfe   :  { %1010 = vrot.lane.b32.xlu1 %v1008_v45, %s4321_s1 }
 0xd64   :  { %v964_v46 = vpop.permute.xlu0 %963 }
 0xd65   :  { %3679 = vmatmul.mubr.msk.bf16.vlgmr.msra.gmra.mrb[20].mxu1 %vm133_vm0, %v964_v46  ;;  %3695 = vmatmul.mubr.msk.bf16.vlgmr.msra.gmra.mrb[20].mxu0 %vm133_vm0, %v964_v46 }
 0xd66   :  { %3683 = vmatpush3.bf16.msra.mxu1 %v4539_v18  ;;  %3686 = vmatprep.mubr.msk.bf16.mxu1 %vm4320_vm1, %v4319_v21 }
 0xd67   :  { %3684 = vmatprep.subr.bf16.mxu1 %v4319_v21  ;;  %3699 = vmatpush3.bf16.msra.mxu0 %v4447_v22 }
 0xd68   :  { %3700 = vmatprep.subr.bf16.mxu0 %v4319_v21  ;;  %3702 = vmatprep.mubr.msk.bf16.mxu0 %vm4320_vm1, %v4319_v21 }
 0xd6a   :  { %3685 = vmatpush3.bf16.msra.mxu1 %v4547_v20 }
 0xd6b   :  { %3714 = vmatprep.subr.bf16.mxu1 %v4319_v21  ;;  %3701 = vmatpush3.bf16.msra.mxu0 %v4456_v23 }
 0xd6c   :  { %3706 = vmatprep.subr.bf16.mxu0 %v4319_v21 }
 0xd70   :  { %v1011_v47 = vpop.permute.xlu1 %1010 }
 0xd71   :  { %3687 = vmatmul.mubr.msk.bf16.vlgmr.msra.gmra.mrb[20].mxu1 %vm133_vm0, %v1011_v47 }
 0xd72   :  { %3715 = vmatpush3.bf16.msra.mxu1 %v4471_v28  ;;  %3718 = vmatprep.mubr.msk.bf16.mxu1 %vm4320_vm1, %v4319_v21 }
 0xd73   :  { %3716 = vmatprep.subr.bf16.mxu1 %v4319_v21 }
 0xd76   :  { %3717 = vmatpush3.bf16.msra.mxu1 %v4478_v30 }
 0xd77   :  { %3722 = vmatprep.subr.bf16.mxu1 %v4319_v21 }
 0xe38   :  { %v1114_v49 = vpop.f32.mrb[20].mxu0 }
 0xe39   :  { %v1120_v50 = vadd.f32 %v1114_v49, %v200_v48  ;;  %v3696_v51 = vpop.f32.mrb[21].mxu0 }
 0xe3a   :  { %v1117_v52 = vpop.f32.mrb[22].mxu0 }
 0xe3b   :  { %4132 = vtanh.f32 %v1120_v50  ;;  %v3697_v53 = vpop.f32.mrb[23].mxu0  ;;  %v3350_v17 = vmul.f32 -1.442695, %v1120_v50 }
 0xe44   :  { %v1049_v54 = vpop.f32.mrb[20].mxu1 }
 0xe45   :  { %v4133_v55 = vpop.eup %4132  ;;  %v3969_v56 = vadd.f32 %v4495_v31, %v1049_v54  ;;  %v3688_v57 = vpop.f32.mrb[21].mxu1 }
 0xe46   :  { %v1052_v58 = vpop.f32.mrb[22].mxu1  ;;  %1130 = vrot.lane.b32.xlu0 %v4133_v55, %s4318_s25 }
 0xe47   :  { %4134 = vtanh.f32 %v3969_v56  ;;  %v3689_v59 = vpop.f32.mrb[23].mxu1  ;;  %v3348_v62 = vmul.f32 -1.442695, %v3969_v56 }
 0xe48   :  { %4136 = vpow2.f32 %v3350_v17 }
 0xe49   :  { %4138 = vpow2.f32 %v3348_v62 }
 0xe51   :  { %v4135_v60 = vpop.eup %4134 }
 0xe52   :  { %1065 = vrot.lane.b32.xlu1 %v4135_v60, %s4318_s25  ;;  %v4137_v61 = vpop.eup %4136 }
 0xe53   :  { %v1124_v63 = vadd.f32 1.0, %v4137_v61  ;;  %v4139_v0 = vpop.eup %4138 }
 0xe54   :  { %v1059_v1 = vadd.f32 1.0, %v4139_v0 }
 0xe55   :  { %4140 = vrcp.f32 %v1124_v63 }
 0xe56   :  { %4142 = vrcp.f32 %v1059_v1 }
 0xe5f   :  { %v4141_v2 = vpop.eup %4140 }
 0xe60   :  { %v4143_v5 = vpop.eup %4142  ;;  %v1128_v15 = vmul.f32 %v4141_v2, %v4656_v35 }
 0xe61   :  { %v1063_v13 = vmul.f32 %v4143_v5, %v4660_v39 }
 0xeb8   :  { %v1131_v3 = vpop.permute.xlu0 %1130 }
 0xeb9   :  { %v1133_v4 = vmul.f32 %v4141_v2, %v1131_v3 }
 0xebb   :  { %1135 = vrot.lane.b32.xlu0 %v1133_v4, %s4318_s25 }
 0xec4   :  { %v1066_v6 = vpop.permute.xlu1 %1065 }
 0xec5   :  { %v1068_v7 = vmul.f32 %v4143_v5, %v1066_v6 }
 0xec7   :  { %1070 = vrot.lane.b32.xlu1 %v1068_v7, %s4318_s25 }
 0xf2d   :  { %v1136_v10 = vpop.permute.xlu0 %1135 }
 0xf2e   :  { %v4696_v11 = vadd.f32 %v1136_v10, %v1128_v15 }
 0xf30   :  { %4144 = vtanh.f32 %v4696_v11 }
 0xf39   :  { %v1071_v19 = vpop.permute.xlu1 %1070 }
 0xf3a   :  { %v4145_v24 = vpop.eup %4144  ;;  %v4700_v25 = vadd.f32 %v1071_v19, %v1063_v13 }
 0xf3b   :  { %1141 = vrot.lane.b32.xlu0 %v4145_v24, %s4318_s25 }
 0xf3c   :  { %4146 = vtanh.f32 %v4700_v25 }
 0xf46   :  { %v4147_v26 = vpop.eup %4146 }
 0xf47   :  { %1076 = vrot.lane.b32.xlu1 %v4147_v26, %s4318_s25 }
 0xfad   :  { %v1142_v27 = vpop.permute.xlu0 %1141 }
 0xfae   :  { %v1144_v29 = vmul.f32 %v4141_v2, %v1142_v27 }
 0xfb0   :  { %v1145_v32 = vpack.c.bf16 %v1144_v29, %v1144_v29 }
 0xfb2   :  { %1147 = vrot.lane.b32.xlu0 %v1145_v32, %s4321_s1 }
 0xfb9   :  { %v1077_v12 = vpop.permute.xlu1 %1076 }
 0xfba   :  { %v1079_v33 = vmul.f32 %v4143_v5, %v1077_v12 }
 0xfbc   :  { %v1192_v34 = vpack.c.bf16 %v1079_v33, %v1079_v33 }
 0xfbe   :  { %1194 = vrot.lane.b32.xlu1 %v1192_v34, %s4321_s1 }
0x1024   :  { %v1148_v35 = vpop.permute.xlu0 %1147 }
0x1025   :  { %3703 = vmatmul.mubr.msk.bf16.vlgmr.msra.gmra.mrb[24].mxu0 %vm133_vm0, %v1148_v35  ;;  %3719 = vmatmul.mubr.msk.bf16.vlgmr.msra.gmra.mrb[24].mxu1 %vm133_vm0, %v1148_v35 }
0x1026   :  { %3707 = vmatpush3.bf16.msra.mxu0 %v4539_v18  ;;  %3710 = vmatprep.mubr.msk.bf16.mxu0 %vm4320_vm1, %v4319_v21 }
0x1027   :  { %3708 = vmatprep.subr.bf16.mxu0 %v4319_v21  ;;  %3723 = vmatpush3.bf16.msra.mxu1 %v4447_v22 }
0x1028   :  { %3724 = vmatprep.subr.bf16.mxu1 %v4319_v21  ;;  %3726 = vmatprep.mubr.msk.bf16.mxu1 %vm4320_vm1, %v4319_v21 }
0x102a   :  { %3709 = vmatpush3.bf16.msra.mxu0 %v4547_v20 }
0x102b   :  { %3738 = vmatprep.subr.bf16.mxu0 %v4319_v21  ;;  %3725 = vmatpush3.bf16.msra.mxu1 %v4456_v23 }
0x102c   :  { %3730 = vmatprep.subr.bf16.mxu1 %v4319_v21 }
0x1030   :  { %v1195_v36 = vpop.permute.xlu1 %1194 }
0x1031   :  { %3711 = vmatmul.mubr.msk.bf16.vlgmr.msra.gmra.mrb[24].mxu0 %vm133_vm0, %v1195_v36 }
0x1032   :  { %3739 = vmatpush3.bf16.msra.mxu0 %v4471_v28  ;;  %3742 = vmatprep.mubr.msk.bf16.mxu0 %vm4320_vm1, %v4319_v21 }
0x1033   :  { %3740 = vmatprep.subr.bf16.mxu0 %v4319_v21 }
0x1036   :  { %3741 = vmatpush3.bf16.msra.mxu0 %v4478_v30 }
0x1037   :  { %3746 = vmatprep.subr.bf16.mxu0 %v4319_v21 }
0x10f8   :  { %v1298_v38 = vpop.f32.mrb[24].mxu1 }
0x10f9   :  { %v1304_v39 = vadd.f32 %v1298_v38, %v205_v37  ;;  %v3720_v40 = vpop.f32.mrb[25].mxu1 }
0x10fa   :  { %v1301_v9 = vpop.f32.mrb[26].mxu1 }
0x10fb   :  { %4148 = vtanh.f32 %v1304_v39  ;;  %v3721_v41 = vpop.f32.mrb[27].mxu1  ;;  %v3355_v8 = vmul.f32 -1.442695, %v1304_v39 }
0x1104   :  { %v1233_v42 = vpop.f32.mrb[24].mxu0 }
0x1105   :  { %v4149_v28 = vpop.eup %4148  ;;  %v3970_v43 = vadd.f32 %v4495_v31, %v1233_v42  ;;  %v3712_v44 = vpop.f32.mrb[25].mxu0 }
0x1106   :  { %1314 = vrot.lane.b32.xlu0 %v4149_v28, %s4318_s25  ;;  %v1236_v45 = vpop.f32.mrb[26].mxu0 }
0x1107   :  { %4150 = vtanh.f32 %v3970_v43  ;;  %v3713_v30 = vpop.f32.mrb[27].mxu0  ;;  %v3353_v14 = vmul.f32 -1.442695, %v3970_v43 }
0x1108   :  { %4152 = vpow2.f32 %v3355_v8 }
0x1109   :  { %4154 = vpow2.f32 %v3353_v14 }
0x1111   :  { %v4151_v46 = vpop.eup %4150 }
0x1112   :  { %1249 = vrot.lane.b32.xlu1 %v4151_v46, %s4318_s25  ;;  %v4153_v47 = vpop.eup %4152 }
0x1113   :  { %v1308_v48 = vadd.f32 1.0, %v4153_v47  ;;  %v4155_v49 = vpop.eup %4154 }
0x1114   :  { %v1243_v50 = vadd.f32 1.0, %v4155_v49 }
0x1115   :  { %4156 = vrcp.f32 %v1308_v48 }
0x1116   :  { %4158 = vrcp.f32 %v1243_v50 }
0x111f   :  { %v4157_v51 = vpop.eup %4156 }
0x1120   :  { %v4159_v54 = vpop.eup %4158  ;;  %v1312_v57 = vmul.f32 %v4157_v51, %v4696_v11 }
0x1121   :  { %v1247_v60 = vmul.f32 %v4159_v54, %v4700_v25 }
0x1178   :  { %v1315_v52 = vpop.permute.xlu0 %1314 }
0x1179   :  { %v1317_v53 = vmul.f32 %v4157_v51, %v1315_v52 }
0x117b   :  { %1319 = vrot.lane.b32.xlu0 %v1317_v53, %s4318_s25 }
0x1184   :  { %v1250_v55 = vpop.permute.xlu1 %1249 }
0x1185   :  { %v1252_v56 = vmul.f32 %v4159_v54, %v1250_v55 }
0x1187   :  { %1254 = vrot.lane.b32.xlu1 %v1252_v56, %s4318_s25 }
0x11ed   :  { %v1320_v58 = vpop.permute.xlu0 %1319 }
0x11ee   :  { %v4736_v59 = vadd.f32 %v1320_v58, %v1312_v57 }
0x11f0   :  { %4160 = vtanh.f32 %v4736_v59 }
0x11f9   :  { %v1255_v17 = vpop.permute.xlu1 %1254 }
0x11fa   :  { %v4161_v62 = vpop.eup %4160  ;;  %v4740_v61 = vadd.f32 %v1255_v17, %v1247_v60 }
0x11fb   :  { %1325 = vrot.lane.b32.xlu0 %v4161_v62, %s4318_s25 }
0x11fc   :  { %4162 = vtanh.f32 %v4740_v61 }
0x1206   :  { %v4163_v63 = vpop.eup %4162 }
0x1207   :  { %1260 = vrot.lane.b32.xlu1 %v4163_v63, %s4318_s25 }
0x126d   :  { %v1326_v0 = vpop.permute.xlu0 %1325 }
0x126e   :  { %v1328_v1 = vmul.f32 %v4157_v51, %v1326_v0 }
0x1270   :  { %v1329_v2 = vpack.c.bf16 %v1328_v1, %v1328_v1 }
0x1272   :  { %1331 = vrot.lane.b32.xlu0 %v1329_v2, %s4321_s1 }
0x1279   :  { %v1261_v3 = vpop.permute.xlu1 %1260 }
0x127a   :  { %v1263_v4 = vmul.f32 %v4159_v54, %v1261_v3  ;;  %v4048_v3 = vld [vmem:[%s5219_s7] sm:$0xff]  }
0x127c   :  { %v1376_v5 = vpack.c.bf16 %v1263_v4, %v1263_v4  ;;  %v4049_v4 = vld [vmem:[%s5219_s7 + $0x8] sm:$0xff]  }
0x127e   :  { %1378 = vrot.lane.b32.xlu1 %v1376_v5, %s4321_s1 }
0x12e4   :  { %v1332_v6 = vpop.permute.xlu0 %1331 }
0x12e5   :  { %3727 = vmatmul.mubr.msk.bf16.vlgmr.msra.gmra.mrb[28].mxu1 %vm133_vm0, %v1332_v6  ;;  %3743 = vmatmul.mubr.msk.bf16.vlgmr.msra.gmra.mrb[28].mxu0 %vm133_vm0, %v1332_v6 }
0x12e6   :  { %3731 = vmatpush3.bf16.msra.mxu1 %v4539_v18  ;;  %3734 = vmatprep.mubr.msk.bf16.mxu1 %vm4320_vm1, %v4319_v21 }
0x12e7   :  { %3732 = vmatprep.subr.bf16.mxu1 %v4319_v21  ;;  %3747 = vmatpush3.bf16.msra.mxu0 %v4447_v22  ;;  %v4316_v22 = vld [vmem:[%s5214_s3] ss:$0 sm:$0xff] }
0x12e8   :  { %3748 = vmatprep.subr.bf16.mxu0 %v4319_v21  ;;  %3750 = vmatprep.mubr.msk.bf16.mxu0 %vm4320_vm1, %v4319_v21  ;;  %v208_v15 = vadd.f32 %v4316_v22, %v4532_v16 }
0x12ea   :  { %3733 = vmatpush3.bf16.msra.mxu1 %v4547_v20 }
0x12eb   :  { %3749 = vmatpush3.bf16.msra.mxu0 %v4456_v23  ;;  %3762 = vmatprep.subr.bf16.mxu1 %v4319_v21 }
0x12ec   :  { %3754 = vmatprep.subr.bf16.mxu0 %v4319_v21 }
0x12f0   :  { %v1379_v7 = vpop.permute.xlu1 %1378 }
0x12f1   :  { %3735 = vmatmul.mubr.msk.bf16.vlgmr.msra.gmra.mrb[28].mxu1 %vm133_vm0, %v1379_v7 }
0x12f2   :  { %3766 = vmatprep.mubr.msk.bf16.mxu1 %vm4320_vm1, %v4319_v21  ;;  %3763 = vmatpush3.bf16.msra.mxu1 %v4048_v3 }
0x12f3   :  { %3764 = vmatprep.subr.bf16.mxu1 %v4319_v21 }
0x12f6   :  { %3765 = vmatpush3.bf16.msra.mxu1 %v4049_v4 }
0x12f7   :  { %3770 = vmatprep.subr.bf16.mxu1 %v4319_v21 }
0x13b8   :  { %v1482_v10 = vpop.f32.mrb[28].mxu0 }
0x13b9   :  { %v1488_v11 = vadd.f32 %v1482_v10, %v208_v15  ;;  %v3744_v13 = vpop.f32.mrb[29].mxu0  ;;  %v4050_v15 = vld [vmem:[%s5220_s9] sm:$0xff]  }
0x13ba   :  { %v1485_v23 = vpop.f32.mrb[30].mxu0  ;;  %v3364_v13 = vld [vmem:[%s5221_s8] ss:$0 sm:$0xff] }
0x13bb   :  { %4164 = vtanh.f32 %v1488_v11  ;;  %v3745_v19 = vpop.f32.mrb[31].mxu0  ;;  %v3360_v16 = vmul.f32 -1.442695, %v1488_v11  ;;  %v4051_v11 = vld [vmem:[%s5220_s9 + $0x8] sm:$0xff]  }
0x13c4   :  { %v1417_v24 = vpop.f32.mrb[28].mxu1 }
0x13c5   :  { %v4165_v25 = vpop.eup %4164  ;;  %v3971_v26 = vadd.f32 %v4495_v31, %v1417_v24  ;;  %v3736_v27 = vpop.f32.mrb[29].mxu1 }
0x13c6   :  { %v1420_v29 = vpop.f32.mrb[30].mxu1  ;;  %1498 = vrot.lane.b32.xlu0 %v4165_v25, %s4318_s25 }
0x13c7   :  { %4166 = vtanh.f32 %v3971_v26  ;;  %v3737_v32 = vpop.f32.mrb[31].mxu1  ;;  %v3358_v33 = vmul.f32 -1.442695, %v3971_v26 }
0x13c8   :  { %4168 = vpow2.f32 %v3360_v16  ;;  %v3368_v32 = vld [vmem:[%s5222_s11] ss:$0 sm:$0xff] }
0x13c9   :  { %4170 = vpow2.f32 %v3358_v33 }
0x13d1   :  { %v4167_v12 = vpop.eup %4166 }
0x13d2   :  { %1433 = vrot.lane.b32.xlu1 %v4167_v12, %s4318_s25  ;;  %v4169_v34 = vpop.eup %4168 }
0x13d3   :  { %v1492_v35 = vadd.f32 1.0, %v4169_v34  ;;  %v4171_v36 = vpop.eup %4170 }
0x13d4   :  { %v1427_v37 = vadd.f32 1.0, %v4171_v36 }
0x13d5   :  { %4172 = vrcp.f32 %v1492_v35 }
0x13d6   :  { %4174 = vrcp.f32 %v1427_v37 }
0x13df   :  { %v4173_v38 = vpop.eup %4172 }
0x13e0   :  { %v4175_v40 = vpop.eup %4174  ;;  %v1496_v42 = vmul.f32 %v4173_v38, %v4736_v59 }
0x13e1   :  { %v1431_v44 = vmul.f32 %v4175_v40, %v4740_v61 }
0x1438   :  { %v1499_v31 = vpop.permute.xlu0 %1498 }
0x1439   :  { %v1501_v39 = vmul.f32 %v4173_v38, %v1499_v31 }
0x143b   :  { %1503 = vrot.lane.b32.xlu0 %v1501_v39, %s4318_s25 }
0x1444   :  { %v1434_v9 = vpop.permute.xlu1 %1433 }
0x1445   :  { %v1436_v41 = vmul.f32 %v4175_v40, %v1434_v9 }
0x1447   :  { %1438 = vrot.lane.b32.xlu1 %v1436_v41, %s4318_s25  ;;  %v4832_v41 = vld [vmem:[%s5223_s10] sm:$0xff]  }
0x14ad   :  { %v1504_v28 = vpop.permute.xlu0 %1503 }
0x14ae   :  { %v1506_v43 = vadd.f32 %v1504_v28, %v1496_v42  ;;  %v4837_v42 = vld [vmem:[%s5224_s12] sm:$0xff]   ;;  %v4843_v28 = vld [vmem:[%s5223_s10 + $0x8] sm:$0xff]  }
0x14b0   :  { %4176 = vtanh.f32 %v1506_v43 }
0x14b9   :  { %v1439_v45 = vpop.permute.xlu1 %1438 }
0x14ba   :  { %v4177_v30 = vpop.eup %4176  ;;  %v1441_v46 = vadd.f32 %v1439_v45, %v1431_v44  ;;  %v4850_v44 = vld [vmem:[%s5224_s12 + $0x8] sm:$0xff]  }
0x14bb   :  { %1509 = vrot.lane.b32.xlu0 %v4177_v30, %s4318_s25 }
0x14bc   :  { %4178 = vtanh.f32 %v1441_v46 }
0x14c6   :  { %v4179_v8 = vpop.eup %4178 }
0x14c7   :  { %1444 = vrot.lane.b32.xlu1 %v4179_v8, %s4318_s25 }
0x152d   :  { %v1510_v14 = vpop.permute.xlu0 %1509 }
0x152e   :  { %v1512_v47 = vmul.f32 %v4173_v38, %v1510_v14  ;;  %v4877_v14 = vld [vmem:[%s5225_s14] ss:$0 sm:$0xff] }
0x1530   :  { %v1513_v48 = vpack.c.bf16 %v1512_v47, %v1512_v47 }
0x1532   :  { %1515 = vrot.lane.b32.xlu0 %v1513_v48, %s4321_s1 }
0x1539   :  { %v1445_v49 = vpop.permute.xlu1 %1444 }
0x153a   :  { %v1447_v50 = vmul.f32 %v4175_v40, %v1445_v49 }
0x153c   :  { %v1560_v51 = vpack.c.bf16 %v1447_v50, %v1447_v50 }
0x153e   :  { %1562 = vrot.lane.b32.xlu1 %v1560_v51, %s4321_s1 }
0x15a4   :  { %v1516_v52 = vpop.permute.xlu0 %1515 }
0x15a5   :  { %3751 = vmatmul.mubr.msk.bf16.vlgmr.msra.gmra.mrb[32].mxu0 %vm133_vm0, %v1516_v52 }
0x15a6   :  { %3755 = vmatpush3.bf16.msra.mxu0 %v4539_v18  ;;  %3758 = vmatprep.mubr.msk.bf16.mxu0 %vm4320_vm1, %v4319_v21  ;;  %v4317_v18 = vld [vmem:[%s5217_s6] ss:$0 sm:$0xff] }
0x15a7   :  { %3756 = vmatprep.subr.bf16.mxu0 %v4319_v21 }
0x15aa   :  { %3757 = vmatpush3.bf16.msra.mxu0 %v4547_v20 }
0x15ab   :  { %3778 = vmatprep.subr.bf16.mxu0 %v4319_v21 }
0x15b0   :  { %v1563_v53 = vpop.permute.xlu1 %1562 }
0x15b1   :  { %3759 = vmatmul.mubr.msk.bf16.vlgmr.msra.gmra.mrb[32].mxu0 %vm133_vm0, %v1563_v53 }
0x15b2   :  { %3782 = vmatprep.mubr.msk.bf16.mxu0 %vm4320_vm1, %v4319_v21  ;;  %3779 = vmatpush3.bf16.msra.mxu0 %v4837_v42 }
0x15b3   :  { %3780 = vmatprep.subr.bf16.mxu0 %v4319_v21 }
0x15b6   :  { %3781 = vmatpush3.bf16.msra.mxu0 %v4850_v44 }
0x15b7   :  { %3794 = vmatprep.subr.bf16.mxu0 %v4319_v21 }
0x1684   :  { %v1601_v54 = vpop.f32.mrb[32].mxu0 }
0x1685   :  { %v3972_v55 = vadd.f32 %v4317_v18, %v1601_v54  ;;  %v3760_v56 = vpop.f32.mrb[33].mxu0 }
0x1686   :  { %v1604_v57 = vpop.f32.mrb[34].mxu0 }
0x1687   :  { %4180 = vtanh.f32 %v3972_v55  ;;  %v3761_v58 = vpop.f32.mrb[35].mxu0  ;;  %v3363_v20 = vmul.f32 -1.442695, %v3972_v55 }
0x1689   :  { %4182 = vpow2.f32 %v3363_v20 }
0x1691   :  { %v4181_v59 = vpop.eup %4180 }
0x1692   :  { %1617 = vrot.lane.b32.xlu0 %v4181_v59, %s4318_s25 }
0x1693   :  { %v4183_v60 = vpop.eup %4182 }
0x1694   :  { %v1611_v17 = vadd.f32 1.0, %v4183_v60 }
0x1696   :  { %4184 = vrcp.f32 %v1611_v17 }
0x16a0   :  { %v4185_v62 = vpop.eup %4184 }
0x16a1   :  { %v1615_v0 = vmul.f32 %v4185_v62, %v1441_v46 }
0x1704   :  { %v1618_v61 = vpop.permute.xlu0 %1617 }
0x1705   :  { %v1620_v63 = vmul.f32 %v4185_v62, %v1618_v61 }
0x1707   :  { %1622 = vrot.lane.b32.xlu1 %v1620_v63, %s4318_s25 }
0x1779   :  { %v1623_v1 = vpop.permute.xlu1 %1622 }
0x177a   :  { %v1625_v2 = vadd.f32 %v1623_v1, %v1615_v0 }
0x177c   :  { %4186 = vtanh.f32 %v1625_v2 }
0x1786   :  { %v4187_v5 = vpop.eup %4186 }
0x1787   :  { %1628 = vrot.lane.b32.xlu0 %v4187_v5, %s4318_s25 }
0x17f9   :  { %v1629_v6 = vpop.permute.xlu0 %1628 }
0x17fa   :  { %v1631_v7 = vmul.f32 %v4185_v62, %v1629_v6 }
0x17fc   :  { %v1632_v22 = vpack.c.bf16 %v1631_v7, %v1631_v7 }
0x17fe   :  { %1640 = vrot.lane.b32.xlu1 %v1632_v22, %s4321_s1 }
0x1870   :  { %v1641_v10 = vpop.permute.xlu1 %1640 }
0x1871   :  { %3767 = vmatmul.mubr.msk.bf16.vlgmr.msra.gmra.mrb[32].mxu1 %vm133_vm0, %v1641_v10 }
0x1872   :  { %3771 = vmatpush3.bf16.msra.mxu1 %v4050_v15  ;;  %3774 = vmatprep.mubr.msk.bf16.mxu1 %vm4320_vm1, %v4319_v21 }
0x1873   :  { %3772 = vmatprep.subr.bf16.mxu1 %v4319_v21 }
0x1876   :  { %3773 = vmatpush3.bf16.msra.mxu1 %v4051_v11 }
0x1877   :  { %3786 = vmatprep.subr.bf16.mxu1 %v4319_v21 }
0x1944   :  { %v1691_v23 = vpop.f32.mrb[32].mxu1 }
0x1945   :  { %v1692_v19 = vadd.f32 %v3364_v13, %v1691_v23  ;;  %v3768_v24 = vpop.f32.mrb[33].mxu1 }
0x1946   :  { %v1694_v25 = vpop.f32.mrb[34].mxu1 }
0x1947   :  { %v1697_v26 = vmax.f32 %v1692_v19, 0.0  ;;  %v3769_v27 = vpop.f32.mrb[35].mxu1  ;;  %v4898_v25 = vld [vmem:[%s5226_s13] sm:$0xff]  }
0x1948   :  { %v4906_v27 = vld [vmem:[%s5226_s13 + $0x8] sm:$0xff]  }
0x1949   :  { %v1698_v29 = vpack.c.bf16 %v1697_v26, %v1697_v26 }
0x194b   :  { %3775 = vmatmul.mubr.msk.bf16.vlgmr.msra.gmra.mrb[36].mxu1 %vm133_vm0, %v1698_v29 }
0x194c   :  { %3790 = vmatprep.mubr.msk.bf16.mxu1 %vm4320_vm1, %v4319_v21  ;;  %3787 = vmatpush3.bf16.msra.mxu1 %v4832_v41 }
0x194d   :  { %3788 = vmatprep.subr.bf16.mxu1 %v4319_v21 }
0x1950   :  { %3789 = vmatpush3.bf16.msra.mxu1 %v4843_v28 }
0x1951   :  { %3810 = vmatprep.subr.bf16.mxu1 %v4319_v21 }
0x1a1e   :  { %v1754_v12 = vpop.f32.mrb[36].mxu1 }
0x1a1f   :  { %v4824_v16 = vadd.f32 %v3368_v32, %v1754_v12  ;;  %v3776_v33 = vpop.f32.mrb[37].mxu1 }
0x1a20   :  { %v1757_v34 = vpop.f32.mrb[38].mxu1 }
0x1a21   :  { %v3777_v35 = vpop.f32.mrb[39].mxu1  ;;  %4188 = vtanh.f32 %v4824_v16  ;;  %v3372_v37 = vmul.f32 -1.442695, %v4824_v16 }
0x1a23   :  { %4190 = vpow2.f32 %v3372_v37 }
0x1a2b   :  { %v4189_v36 = vpop.eup %4188 }
0x1a2c   :  { %1768 = vrot.lane.b32.xlu0 %v4189_v36, %s4318_s25 }
0x1a2d   :  { %v4191_v38 = vpop.eup %4190 }
0x1a2e   :  { %v1763_v31 = vadd.f32 1.0, %v4191_v38 }
0x1a30   :  { %4192 = vrcp.f32 %v1763_v31 }
0x1a3a   :  { %v4193_v39 = vpop.eup %4192 }
0x1a9e   :  { %v1769_v40 = vpop.permute.xlu0 %1768 }
0x1a9f   :  { %v1771_v9 = vmul.f32 %v4193_v39, %v1769_v40 }
0x1aa1   :  { %4194 = vtanh.f32 %v1771_v9 }
0x1aab   :  { %v4195_v43 = vpop.eup %4194 }
0x1aac   :  { %1774 = vrot.lane.b32.xlu1 %v4195_v43, %s4321_s1 }
0x1b1e   :  { %v1775_v45 = vpop.permute.xlu1 %1774 }
0x1b1f   :  { %v1777_v30 = vmul.f32 %v4193_v39, %v1775_v45 }
0x1b21   :  { %v1778_v46 = vpack.c.bf16 %v1777_v30, %v1777_v30 }
0x1b23   :  { %1786 = vrot.lane.b32.xlu0 %v1778_v46, %s4321_s1 }
0x1b27   :  { %1922 = vrot.lane.b32.xlu0 %v1771_v9, %s4318_s25 }
0x1b95   :  { %v1787_v8 = vpop.permute.xlu0 %1786 }
0x1b96   :  { %3783 = vmatmul.mubr.msk.bf16.vlgmr.msra.gmra.mrb[36].mxu0 %vm133_vm0, %v1787_v8  ;;  %3791 = vmatmul.mubr.msk.bf16.vlgmr.msra.gmra.mrb[40].mxu1 %vm133_vm0, %v1787_v8 }
0x1b97   :  { %3795 = vmatpush3.bf16.msra.mxu0 %v4837_v42  ;;  %3811 = vmatpush3.bf16.msra.mxu1 %v4832_v41 }
0x1b98   :  { %3796 = vmatprep.subr.bf16.mxu0 %v4319_v21  ;;  %3812 = vmatprep.subr.bf16.mxu1 %v4319_v21 }
0x1b99   :  { %3798 = vmatprep.mubr.msk.bf16.mxu0 %vm4320_vm1, %v4319_v21  ;;  %3814 = vmatprep.mubr.msk.bf16.mxu1 %vm4320_vm1, %v4319_v21  ;;  %v1923_v61 = vpop.permute.xlu0 %1922 }
0x1b9b   :  { %3797 = vmatpush3.bf16.msra.mxu0 %v4850_v44  ;;  %3813 = vmatpush3.bf16.msra.mxu1 %v4843_v28 }
0x1b9c   :  { %3802 = vmatprep.subr.bf16.mxu0 %v4319_v21  ;;  %3818 = vmatprep.subr.bf16.mxu1 %v4319_v21 }
0x1c69   :  { %v1837_v47 = vpop.f32.mrb[36].mxu0  ;;  %v1907_v48 = vpop.f32.mrb[40].mxu1 }
0x1c6a   :  { %v1838_v49 = vadd.f32 %v4877_v14, %v1837_v47  ;;  %v1913_v50 = vadd.f32 %v1907_v48, %v4824_v16  ;;  %v3784_v51 = vpop.f32.mrb[37].mxu0  ;;  %v3792_v52 = vpop.f32.mrb[41].mxu1 }
0x1c6b   :  { %v1840_v53 = vpop.f32.mrb[38].mxu0  ;;  %v1910_v54 = vpop.f32.mrb[42].mxu1 }
0x1c6c   :  { %4196 = vtanh.f32 %v1838_v49  ;;  %v3785_v18 = vpop.f32.mrb[39].mxu0  ;;  %v3793_v55 = vpop.f32.mrb[43].mxu1  ;;  %v3377_v58 = vmul.f32 -1.442695, %v1838_v49  ;;  %v3381_v59 = vmul.f32 -1.442695, %v1913_v50 }
0x1c6d   :  { %4198 = vtanh.f32 %v1913_v50 }
0x1c6e   :  { %4200 = vpow2.f32 %v3377_v58 }
0x1c6f   :  { %4202 = vpow2.f32 %v3381_v59 }
0x1c76   :  { %v4197_v56 = vpop.eup %4196 }
0x1c77   :  { %v4199_v57 = vpop.eup %4198  ;;  %1851 = vrot.lane.b32.xlu0 %v4197_v56, %s4318_s25 }
0x1c78   :  { %1927 = vrot.lane.b32.xlu1 %v4199_v57, %s4318_s25  ;;  %v4201_v20 = vpop.eup %4200 }
0x1c79   :  { %v4203_v60 = vpop.eup %4202  ;;  %v1846_v17 = vadd.f32 1.0, %v4201_v20 }
0x1c7a   :  { %v1917_v62 = vadd.f32 1.0, %v4203_v60 }
0x1c7b   :  { %4204 = vrcp.f32 %v1846_v17 }
0x1c7c   :  { %4206 = vrcp.f32 %v1917_v62 }
0x1c85   :  { %v4205_v63 = vpop.eup %4204 }
0x1c86   :  { %v4207_v1 = vpop.eup %4206 }
0x1c87   :  { %v1925_v6 = vmul.f32 %v4207_v1, %v1923_v61 }
0x1ce9   :  { %v1852_v0 = vpop.permute.xlu0 %1851 }
0x1cea   :  { %v1928_v2 = vpop.permute.xlu1 %1927  ;;  %v1854_v3 = vmul.f32 %v4205_v63, %v1852_v0 }
0x1ceb   :  { %v1930_v4 = vmul.f32 %v4207_v1, %v1928_v2 }
0x1cec   :  { %4208 = vtanh.f32 %v1854_v3 }
0x1ced   :  { %1932 = vrot.lane.b32.xlu1 %v1930_v4, %s4318_s25 }
0x1cf6   :  { %v4209_v5 = vpop.eup %4208 }
0x1cf7   :  { %1857 = vrot.lane.b32.xlu0 %v4209_v5, %s4321_s1 }
0x1d5f   :  { %v1933_v7 = vpop.permute.xlu1 %1932 }
0x1d60   :  { %v4885_v22 = vadd.f32 %v1933_v7, %v1925_v6 }
0x1d62   :  { %4210 = vtanh.f32 %v4885_v22 }
0x1d69   :  { %v1858_v15 = vpop.permute.xlu0 %1857 }
0x1d6a   :  { %v4888_v10 = vmul.f32 %v4205_v63, %v1858_v15 }
0x1d6c   :  { %v4211_v11 = vpop.eup %4210  ;;  %v1989_v13 = vpack.c.bf16 %v4888_v10, %v4888_v10 }
0x1d6d   :  { %1938 = vrot.lane.b32.xlu1 %v4211_v11, %s4318_s25 }
0x1d6e   :  { %1991 = vrot.lane.b32.xlu0 %v1989_v13, %s4321_s1 }
0x1ddf   :  { %v1939_v23 = vpop.permute.xlu1 %1938 }
0x1de0   :  { %v1941_v19 = vmul.f32 %v4207_v1, %v1939_v23  ;;  %v1992_v29 = vpop.permute.xlu0 %1991 }
0x1de2   :  { %v1942_v24 = vpack.c.bf16 %v1941_v19, %v1941_v19 }
0x1de4   :  { %1944 = vrot.lane.b32.xlu1 %v1942_v24, %s4321_s1 }
0x1e56   :  { %v1945_v26 = vpop.permute.xlu1 %1944 }
0x1e57   :  { %3799 = vmatmul.mubr.msk.bf16.vlgmr.msra.gmra.mrb[40].mxu0 %vm133_vm0, %v1945_v26  ;;  %3815 = vmatmul.mubr.msk.bf16.vlgmr.msra.gmra.mrb[44].mxu1 %vm133_vm0, %v1945_v26 }
0x1e58   :  { %3803 = vmatpush3.bf16.msra.mxu0 %v4898_v25  ;;  %3806 = vmatprep.mubr.msk.bf16.mxu0 %vm4320_vm1, %v4319_v21 }
0x1e59   :  { %3804 = vmatprep.subr.bf16.mxu0 %v4319_v21  ;;  %3819 = vmatpush3.bf16.msra.mxu1 %v4837_v42 }
0x1e5a   :  { %3820 = vmatprep.subr.bf16.mxu1 %v4319_v21  ;;  %3822 = vmatprep.mubr.msk.bf16.mxu1 %vm4320_vm1, %v4319_v21 }
0x1e5c   :  { %3805 = vmatpush3.bf16.msra.mxu0 %v4906_v27 }
0x1e5d   :  { %3834 = vmatprep.subr.bf16.mxu0 %v4319_v21  ;;  %3821 = vmatpush3.bf16.msra.mxu1 %v4850_v44 }
0x1e5e   :  { %3826 = vmatprep.subr.bf16.mxu1 %v4319_v21 }
0x1e63   :  { %3807 = vmatmul.mubr.msk.bf16.vlgmr.msra.gmra.mrb[40].mxu0 %vm133_vm0, %v1992_v29 }
0x1e64   :  { %3835 = vmatpush3.bf16.msra.mxu0 %v4832_v41  ;;  %3838 = vmatprep.mubr.msk.bf16.mxu0 %vm4320_vm1, %v4319_v21 }
0x1e65   :  { %3836 = vmatprep.subr.bf16.mxu0 %v4319_v21 }
0x1e68   :  { %3837 = vmatpush3.bf16.msra.mxu0 %v4843_v28 }
0x1e69   :  { %3842 = vmatprep.subr.bf16.mxu0 %v4319_v21 }
0x1f2a   :  { %v2111_v32 = vpop.f32.mrb[44].mxu1 }
0x1f2b   :  { %v2117_v12 = vadd.f32 %v2111_v32, %v4824_v16  ;;  %v3816_v33 = vpop.f32.mrb[45].mxu1 }
0x1f2c   :  { %v2114_v34 = vpop.f32.mrb[46].mxu1 }
0x1f2d   :  { %4212 = vtanh.f32 %v2117_v12  ;;  %v3817_v35 = vpop.f32.mrb[47].mxu1  ;;  %v3388_v43 = vmul.f32 -1.442695, %v2117_v12 }
0x1f36   :  { %v2042_v36 = vpop.f32.mrb[40].mxu0 }
0x1f37   :  { %v4213_v37 = vpop.eup %4212  ;;  %v3973_v38 = vadd.f32 %v4877_v14, %v2042_v36  ;;  %v3808_v31 = vpop.f32.mrb[41].mxu0 }
0x1f38   :  { %2127 = vrot.lane.b32.xlu1 %v4213_v37, %s4318_s25  ;;  %v2045_v39 = vpop.f32.mrb[42].mxu0 }
0x1f39   :  { %4214 = vtanh.f32 %v3973_v38  ;;  %v3809_v40 = vpop.f32.mrb[43].mxu0  ;;  %v3386_v45 = vmul.f32 -1.442695, %v3973_v38 }
0x1f3a   :  { %4216 = vpow2.f32 %v3388_v43 }
0x1f3b   :  { %4218 = vpow2.f32 %v3386_v45 }
0x1f43   :  { %v4215_v9 = vpop.eup %4214 }
0x1f44   :  { %2062 = vrot.lane.b32.xlu0 %v4215_v9, %s4318_s25  ;;  %v4217_v30 = vpop.eup %4216 }
0x1f45   :  { %v2121_v46 = vadd.f32 1.0, %v4217_v30  ;;  %v4219_v8 = vpop.eup %4218 }
0x1f46   :  { %v2052_v47 = vadd.f32 1.0, %v4219_v8 }
0x1f47   :  { %4220 = vrcp.f32 %v2121_v46 }
0x1f48   :  { %2057 = vrot.lane.b32.xlu0 %v1854_v3, %s4318_s25  ;;  %4222 = vrcp.f32 %v2052_v47 }
0x1f51   :  { %v4221_v48 = vpop.eup %4220 }
0x1f52   :  { %v4223_v51 = vpop.eup %4222  ;;  %v2125_v54 = vmul.f32 %v4221_v48, %v4885_v22 }
0x1faa   :  { %v2128_v49 = vpop.permute.xlu1 %2127 }
0x1fab   :  { %v2130_v50 = vmul.f32 %v4221_v48, %v2128_v49 }
0x1fad   :  { %2132 = vrot.lane.b32.xlu1 %v2130_v50, %s4318_s25 }
0x1fb6   :  { %v2063_v52 = vpop.permute.xlu0 %2062 }
0x1fb7   :  { %v2065_v53 = vmul.f32 %v4223_v51, %v2063_v52 }
0x1fb9   :  { %2067 = vrot.lane.b32.xlu1 %v2065_v53, %s4318_s25 }
0x1fba   :  { %v2058_v56 = vpop.permute.xlu0 %2057 }
0x1fbb   :  { %v2060_v57 = vmul.f32 %v4223_v51, %v2058_v56 }
0x201f   :  { %v2133_v18 = vpop.permute.xlu1 %2132 }
0x2020   :  { %v4934_v55 = vadd.f32 %v2133_v18, %v2125_v54 }
0x2022   :  { %4224 = vtanh.f32 %v4934_v55 }
0x202b   :  { %v2068_v58 = vpop.permute.xlu1 %2067 }
0x202c   :  { %v4225_v59 = vpop.eup %4224  ;;  %v4937_v20 = vadd.f32 %v2068_v58, %v2060_v57 }
0x202d   :  { %2138 = vrot.lane.b32.xlu0 %v4225_v59, %s4318_s25 }
0x202e   :  { %4226 = vtanh.f32 %v4937_v20 }
0x2038   :  { %v4227_v60 = vpop.eup %4226 }
0x2039   :  { %2073 = vrot.lane.b32.xlu1 %v4227_v60, %s4318_s25 }
0x209f   :  { %v2139_v17 = vpop.permute.xlu0 %2138 }
0x20a0   :  { %v2141_v62 = vmul.f32 %v4221_v48, %v2139_v17 }
0x20a2   :  { %v2142_v61 = vpack.c.bf16 %v2141_v62, %v2141_v62 }
0x20a4   :  { %2144 = vrot.lane.b32.xlu0 %v2142_v61, %s4321_s1 }
0x20ab   :  { %v2074_v63 = vpop.permute.xlu1 %2073 }
0x20ac   :  { %v4943_v0 = vmul.f32 %v4223_v51, %v2074_v63 }
0x20ae   :  { %v2189_v1 = vpack.c.bf16 %v4943_v0, %v4943_v0 }
0x20b0   :  { %2191 = vrot.lane.b32.xlu1 %v2189_v1, %s4321_s1 }
0x2116   :  { %v2145_v2 = vpop.permute.xlu0 %2144 }
0x2117   :  { %3823 = vmatmul.mubr.msk.bf16.vlgmr.msra.gmra.mrb[48].mxu1 %vm133_vm0, %v2145_v2  ;;  %3839 = vmatmul.mubr.msk.bf16.vlgmr.msra.gmra.mrb[44].mxu0 %vm133_vm0, %v2145_v2 }
0x2118   :  { %3827 = vmatpush3.bf16.msra.mxu1 %v4898_v25  ;;  %3830 = vmatprep.mubr.msk.bf16.mxu1 %vm4320_vm1, %v4319_v21 }
0x2119   :  { %3828 = vmatprep.subr.bf16.mxu1 %v4319_v21  ;;  %3843 = vmatpush3.bf16.msra.mxu0 %v4837_v42 }
0x211a   :  { %3844 = vmatprep.subr.bf16.mxu0 %v4319_v21  ;;  %3846 = vmatprep.mubr.msk.bf16.mxu0 %vm4320_vm1, %v4319_v21 }
0x211c   :  { %3829 = vmatpush3.bf16.msra.mxu1 %v4906_v27 }
0x211d   :  { %3858 = vmatprep.subr.bf16.mxu1 %v4319_v21  ;;  %3845 = vmatpush3.bf16.msra.mxu0 %v4850_v44 }
0x211e   :  { %3850 = vmatprep.subr.bf16.mxu0 %v4319_v21 }
0x2122   :  { %v2192_v3 = vpop.permute.xlu1 %2191 }
0x2123   :  { %3831 = vmatmul.mubr.msk.bf16.vlgmr.msra.gmra.mrb[48].mxu1 %vm133_vm0, %v2192_v3 }
0x2124   :  { %3859 = vmatpush3.bf16.msra.mxu1 %v4832_v41  ;;  %3862 = vmatprep.mubr.msk.bf16.mxu1 %vm4320_vm1, %v4319_v21 }
0x2125   :  { %3860 = vmatprep.subr.bf16.mxu1 %v4319_v21 }
0x2128   :  { %3861 = vmatpush3.bf16.msra.mxu1 %v4843_v28 }
0x2129   :  { %3866 = vmatprep.subr.bf16.mxu1 %v4319_v21 }
0x21ea   :  { %v2295_v4 = vpop.f32.mrb[44].mxu0 }
0x21eb   :  { %v2301_v5 = vadd.f32 %v2295_v4, %v4824_v16  ;;  %v3840_v6 = vpop.f32.mrb[45].mxu0 }
0x21ec   :  { %v2298_v7 = vpop.f32.mrb[46].mxu0 }
0x21ed   :  { %4228 = vtanh.f32 %v2301_v5  ;;  %v3841_v22 = vpop.f32.mrb[47].mxu0  ;;  %v3393_v29 = vmul.f32 -1.442695, %v2301_v5 }
0x21f6   :  { %v2230_v15 = vpop.f32.mrb[48].mxu1 }
0x21f7   :  { %v4229_v11 = vpop.eup %4228  ;;  %v3974_v13 = vadd.f32 %v4877_v14, %v2230_v15  ;;  %v3832_v23 = vpop.f32.mrb[49].mxu1 }
0x21f8   :  { %v2233_v19 = vpop.f32.mrb[50].mxu1  ;;  %2311 = vrot.lane.b32.xlu0 %v4229_v11, %s4318_s25 }
0x21f9   :  { %4230 = vtanh.f32 %v3974_v13  ;;  %v3833_v24 = vpop.f32.mrb[51].mxu1  ;;  %v3391_v32 = vmul.f32 -1.442695, %v3974_v13 }
0x21fa   :  { %4232 = vpow2.f32 %v3393_v29 }
0x21fb   :  { %4234 = vpow2.f32 %v3391_v32 }
0x2203   :  { %v4231_v26 = vpop.eup %4230 }
0x2204   :  { %2246 = vrot.lane.b32.xlu1 %v4231_v26, %s4318_s25  ;;  %v4233_v12 = vpop.eup %4232 }
0x2205   :  { %v2305_v33 = vadd.f32 1.0, %v4233_v12  ;;  %v4235_v34 = vpop.eup %4234 }
0x2206   :  { %v2240_v35 = vadd.f32 1.0, %v4235_v34 }
0x2207   :  { %4236 = vrcp.f32 %v2305_v33 }
0x2208   :  { %4238 = vrcp.f32 %v2240_v35 }
0x2211   :  { %v4237_v36 = vpop.eup %4236 }
0x2212   :  { %v4239_v31 = vpop.eup %4238  ;;  %v2309_v9 = vmul.f32 %v4237_v36, %v4934_v55 }
0x2213   :  { %v2244_v30 = vmul.f32 %v4239_v31, %v4937_v20 }
0x226a   :  { %v2312_v37 = vpop.permute.xlu0 %2311 }
0x226b   :  { %v2314_v38 = vmul.f32 %v4237_v36, %v2312_v37 }
0x226d   :  { %2316 = vrot.lane.b32.xlu0 %v2314_v38, %s4318_s25 }
0x2276   :  { %v2247_v39 = vpop.permute.xlu1 %2246 }
0x2277   :  { %v2249_v40 = vmul.f32 %v4239_v31, %v2247_v39 }
0x2279   :  { %2251 = vrot.lane.b32.xlu1 %v2249_v40, %s4318_s25 }
0x22df   :  { %v2317_v43 = vpop.permute.xlu0 %2316 }
0x22e0   :  { %v4976_v45 = vadd.f32 %v2317_v43, %v2309_v9 }
0x22e2   :  { %4240 = vtanh.f32 %v4976_v45 }
0x22eb   :  { %v2252_v46 = vpop.permute.xlu1 %2251 }
0x22ec   :  { %v4241_v8 = vpop.eup %4240  ;;  %v4980_v47 = vadd.f32 %v2252_v46, %v2244_v30 }
0x22ed   :  { %2322 = vrot.lane.b32.xlu0 %v4241_v8, %s4318_s25 }
0x22ee   :  { %4242 = vtanh.f32 %v4980_v47 }
0x22f8   :  { %v4243_v48 = vpop.eup %4242 }
0x22f9   :  { %2257 = vrot.lane.b32.xlu1 %v4243_v48, %s4318_s25 }
0x235f   :  { %v2323_v49 = vpop.permute.xlu0 %2322 }
0x2360   :  { %v2325_v50 = vmul.f32 %v4237_v36, %v2323_v49 }
0x2362   :  { %v2326_v51 = vpack.c.bf16 %v2325_v50, %v2325_v50 }
0x2364   :  { %2328 = vrot.lane.b32.xlu0 %v2326_v51, %s4321_s1 }
0x236b   :  { %v2258_v52 = vpop.permute.xlu1 %2257 }
0x236c   :  { %v4986_v53 = vmul.f32 %v4239_v31, %v2258_v52 }
0x236e   :  { %v2373_v54 = vpack.c.bf16 %v4986_v53, %v4986_v53 }
0x2370   :  { %2375 = vrot.lane.b32.xlu1 %v2373_v54, %s4321_s1 }
0x23d6   :  { %v2329_v18 = vpop.permute.xlu0 %2328 }
0x23d7   :  { %3847 = vmatmul.mubr.msk.bf16.vlgmr.msra.gmra.mrb[48].mxu0 %vm133_vm0, %v2329_v18  ;;  %3863 = vmatmul.mubr.msk.bf16.vlgmr.msra.gmra.mrb[52].mxu1 %vm133_vm0, %v2329_v18 }
0x23d8   :  { %3851 = vmatpush3.bf16.msra.mxu0 %v4898_v25  ;;  %3854 = vmatprep.mubr.msk.bf16.mxu0 %vm4320_vm1, %v4319_v21 }
0x23d9   :  { %3852 = vmatprep.subr.bf16.mxu0 %v4319_v21  ;;  %3867 = vmatpush3.bf16.msra.mxu1 %v4837_v42 }
0x23da   :  { %3868 = vmatprep.subr.bf16.mxu1 %v4319_v21  ;;  %3870 = vmatprep.mubr.msk.bf16.mxu1 %vm4320_vm1, %v4319_v21 }
0x23dc   :  { %3853 = vmatpush3.bf16.msra.mxu0 %v4906_v27 }
0x23dd   :  { %3882 = vmatprep.subr.bf16.mxu0 %v4319_v21  ;;  %3869 = vmatpush3.bf16.msra.mxu1 %v4850_v44 }
0x23de   :  { %3874 = vmatprep.subr.bf16.mxu1 %v4319_v21 }
0x23e2   :  { %v2376_v55 = vpop.permute.xlu1 %2375 }
0x23e3   :  { %3855 = vmatmul.mubr.msk.bf16.vlgmr.msra.gmra.mrb[48].mxu0 %vm133_vm0, %v2376_v55 }
0x23e4   :  { %3883 = vmatpush3.bf16.msra.mxu0 %v4832_v41  ;;  %3886 = vmatprep.mubr.msk.bf16.mxu0 %vm4320_vm1, %v4319_v21 }
0x23e5   :  { %3884 = vmatprep.subr.bf16.mxu0 %v4319_v21 }
0x23e8   :  { %3885 = vmatpush3.bf16.msra.mxu0 %v4843_v28 }
0x23e9   :  { %3890 = vmatprep.subr.bf16.mxu0 %v4319_v21 }
0x24aa   :  { %v2479_v56 = vpop.f32.mrb[52].mxu1 }
0x24ab   :  { %v2485_v57 = vadd.f32 %v2479_v56, %v4824_v16  ;;  %v3864_v58 = vpop.f32.mrb[53].mxu1 }
0x24ac   :  { %v2482_v59 = vpop.f32.mrb[54].mxu1 }
0x24ad   :  { %4244 = vtanh.f32 %v2485_v57  ;;  %v3865_v20 = vpop.f32.mrb[55].mxu1  ;;  %v3398_v3 = vmul.f32 -1.442695, %v2485_v57 }
0x24b6   :  { %v2414_v60 = vpop.f32.mrb[48].mxu0 }
0x24b7   :  { %v4245_v17 = vpop.eup %4244  ;;  %v3975_v62 = vadd.f32 %v4877_v14, %v2414_v60  ;;  %v3856_v61 = vpop.f32.mrb[49].mxu0 }
0x24b8   :  { %2495 = vrot.lane.b32.xlu0 %v4245_v17, %s4318_s25  ;;  %v2417_v63 = vpop.f32.mrb[50].mxu0 }
0x24b9   :  { %4246 = vtanh.f32 %v3975_v62  ;;  %v3857_v1 = vpop.f32.mrb[51].mxu0  ;;  %v3396_v4 = vmul.f32 -1.442695, %v3975_v62 }
0x24ba   :  { %4248 = vpow2.f32 %v3398_v3 }
0x24bb   :  { %4250 = vpow2.f32 %v3396_v4 }
0x24c3   :  { %v4247_v2 = vpop.eup %4246 }
0x24c4   :  { %2430 = vrot.lane.b32.xlu1 %v4247_v2, %s4318_s25  ;;  %v4249_v5 = vpop.eup %4248 }
0x24c5   :  { %v2489_v6 = vadd.f32 1.0, %v4249_v5  ;;  %v4251_v7 = vpop.eup %4250 }
0x24c6   :  { %v2424_v22 = vadd.f32 1.0, %v4251_v7 }
0x24c7   :  { %4252 = vrcp.f32 %v2489_v6 }
0x24c8   :  { %4254 = vrcp.f32 %v2424_v22 }
0x24d1   :  { %v4253_v15 = vpop.eup %4252 }
0x24d2   :  { %v4255_v23 = vpop.eup %4254  ;;  %v2493_v26 = vmul.f32 %v4253_v15, %v4976_v45 }
0x24d3   :  { %v2428_v12 = vmul.f32 %v4255_v23, %v4980_v47 }
0x252a   :  { %v2496_v11 = vpop.permute.xlu0 %2495 }
0x252b   :  { %v2498_v13 = vmul.f32 %v4253_v15, %v2496_v11 }
0x252d   :  { %2500 = vrot.lane.b32.xlu0 %v2498_v13, %s4318_s25 }
0x2536   :  { %v2431_v19 = vpop.permute.xlu1 %2430 }
0x2537   :  { %v2433_v24 = vmul.f32 %v4255_v23, %v2431_v19 }
0x2539   :  { %2435 = vrot.lane.b32.xlu1 %v2433_v24, %s4318_s25 }
0x259f   :  { %v2501_v29 = vpop.permute.xlu0 %2500 }
0x25a0   :  { %v5019_v32 = vadd.f32 %v2501_v29, %v2493_v26 }
0x25a2   :  { %4256 = vtanh.f32 %v5019_v32 }
0x25ab   :  { %v2436_v33 = vpop.permute.xlu1 %2435 }
0x25ac   :  { %v4257_v34 = vpop.eup %4256  ;;  %v5023_v35 = vadd.f32 %v2436_v33, %v2428_v12 }
0x25ad   :  { %2506 = vrot.lane.b32.xlu0 %v4257_v34, %s4318_s25 }
0x25ae   :  { %4258 = vtanh.f32 %v5023_v35 }
0x25b8   :  { %v4259_v36 = vpop.eup %4258 }
0x25b9   :  { %2441 = vrot.lane.b32.xlu1 %v4259_v36, %s4318_s25 }
0x261f   :  { %v2507_v37 = vpop.permute.xlu0 %2506 }
0x2620   :  { %v2509_v38 = vmul.f32 %v4253_v15, %v2507_v37 }
0x2622   :  { %v2510_v31 = vpack.c.bf16 %v2509_v38, %v2509_v38 }
0x2624   :  { %2512 = vrot.lane.b32.xlu0 %v2510_v31, %s4321_s1 }
0x262b   :  { %v2442_v39 = vpop.permute.xlu1 %2441 }
0x262c   :  { %v5029_v40 = vmul.f32 %v4255_v23, %v2442_v39 }
0x262e   :  { %v2557_v9 = vpack.c.bf16 %v5029_v40, %v5029_v40 }
0x2630   :  { %2559 = vrot.lane.b32.xlu1 %v2557_v9, %s4321_s1 }
0x2696   :  { %v2513_v43 = vpop.permute.xlu0 %2512 }
0x2697   :  { %3871 = vmatmul.mubr.msk.bf16.vlgmr.msra.gmra.mrb[56].mxu1 %vm133_vm0, %v2513_v43  ;;  %3887 = vmatmul.mubr.msk.bf16.vlgmr.msra.gmra.mrb[52].mxu0 %vm133_vm0, %v2513_v43 }
0x2698   :  { %3875 = vmatpush3.bf16.msra.mxu1 %v4898_v25  ;;  %3878 = vmatprep.mubr.msk.bf16.mxu1 %vm4320_vm1, %v4319_v21 }
0x2699   :  { %3876 = vmatprep.subr.bf16.mxu1 %v4319_v21  ;;  %3891 = vmatpush3.bf16.msra.mxu0 %v4837_v42 }
0x269a   :  { %3892 = vmatprep.subr.bf16.mxu0 %v4319_v21  ;;  %3894 = vmatprep.mubr.msk.bf16.mxu0 %vm4320_vm1, %v4319_v21 }
0x269c   :  { %3877 = vmatpush3.bf16.msra.mxu1 %v4906_v27 }
0x269d   :  { %3906 = vmatprep.subr.bf16.mxu1 %v4319_v21  ;;  %3893 = vmatpush3.bf16.msra.mxu0 %v4850_v44 }
0x269e   :  { %3898 = vmatprep.subr.bf16.mxu0 %v4319_v21 }
0x26a2   :  { %v2560_v45 = vpop.permute.xlu1 %2559 }
0x26a3   :  { %3879 = vmatmul.mubr.msk.bf16.vlgmr.msra.gmra.mrb[56].mxu1 %vm133_vm0, %v2560_v45 }
0x26a4   :  { %3907 = vmatpush3.bf16.msra.mxu1 %v4832_v41  ;;  %3910 = vmatprep.mubr.msk.bf16.mxu1 %vm4320_vm1, %v4319_v21 }
0x26a5   :  { %3908 = vmatprep.subr.bf16.mxu1 %v4319_v21 }
0x26a8   :  { %3909 = vmatpush3.bf16.msra.mxu1 %v4843_v28 }
0x26a9   :  { %3914 = vmatprep.subr.bf16.mxu1 %v4319_v21 }
0x276a   :  { %v2663_v30 = vpop.f32.mrb[52].mxu0 }
0x276b   :  { %v2669_v46 = vadd.f32 %v2663_v30, %v4824_v16  ;;  %v3888_v8 = vpop.f32.mrb[53].mxu0 }
0x276c   :  { %v2666_v47 = vpop.f32.mrb[54].mxu0 }
0x276d   :  { %4260 = vtanh.f32 %v2669_v46  ;;  %v3889_v48 = vpop.f32.mrb[55].mxu0  ;;  %v3403_v56 = vmul.f32 -1.442695, %v2669_v46 }
0x2776   :  { %v2598_v49 = vpop.f32.mrb[56].mxu1 }
0x2777   :  { %v4261_v50 = vpop.eup %4260  ;;  %v3976_v51 = vadd.f32 %v4877_v14, %v2598_v49  ;;  %v3880_v52 = vpop.f32.mrb[57].mxu1 }
0x2778   :  { %v2601_v54 = vpop.f32.mrb[58].mxu1  ;;  %2679 = vrot.lane.b32.xlu0 %v4261_v50, %s4318_s25 }
0x2779   :  { %4262 = vtanh.f32 %v3976_v51  ;;  %v3881_v18 = vpop.f32.mrb[59].mxu1  ;;  %v3401_v57 = vmul.f32 -1.442695, %v3976_v51 }
0x277a   :  { %4264 = vpow2.f32 %v3403_v56 }
0x277b   :  { %4266 = vpow2.f32 %v3401_v57 }
0x2783   :  { %v4263_v55 = vpop.eup %4262 }
0x2784   :  { %2614 = vrot.lane.b32.xlu1 %v4263_v55, %s4318_s25  ;;  %v4265_v58 = vpop.eup %4264 }
0x2785   :  { %v2673_v59 = vadd.f32 1.0, %v4265_v58  ;;  %v4267_v20 = vpop.eup %4266 }
0x2786   :  { %v2608_v60 = vadd.f32 1.0, %v4267_v20 }
0x2787   :  { %4268 = vrcp.f32 %v2673_v59 }
0x2788   :  { %4270 = vrcp.f32 %v2608_v60 }
0x2791   :  { %v4269_v17 = vpop.eup %4268 }
0x2792   :  { %v4271_v63 = vpop.eup %4270  ;;  %v2677_v3 = vmul.f32 %v4269_v17, %v5019_v32 }
0x2793   :  { %v2612_v6 = vmul.f32 %v4271_v63, %v5023_v35 }
0x27ea   :  { %v2680_v62 = vpop.permute.xlu0 %2679 }
0x27eb   :  { %v2682_v61 = vmul.f32 %v4269_v17, %v2680_v62 }
0x27ed   :  { %2684 = vrot.lane.b32.xlu0 %v2682_v61, %s4318_s25 }
0x27f6   :  { %v2615_v1 = vpop.permute.xlu1 %2614 }
0x27f7   :  { %v2617_v2 = vmul.f32 %v4271_v63, %v2615_v1 }
0x27f9   :  { %2619 = vrot.lane.b32.xlu1 %v2617_v2, %s4318_s25 }
0x285f   :  { %v2685_v4 = vpop.permute.xlu0 %2684 }
0x2860   :  { %v5062_v5 = vadd.f32 %v2685_v4, %v2677_v3 }
0x2862   :  { %4272 = vtanh.f32 %v5062_v5 }
0x286b   :  { %v2620_v7 = vpop.permute.xlu1 %2619 }
0x286c   :  { %v4273_v22 = vpop.eup %4272  ;;  %v5066_v15 = vadd.f32 %v2620_v7, %v2612_v6 }
0x286d   :  { %2690 = vrot.lane.b32.xlu0 %v4273_v22, %s4318_s25 }
0x286e   :  { %4274 = vtanh.f32 %v5066_v15 }
0x2878   :  { %v4275_v11 = vpop.eup %4274 }
0x2879   :  { %2625 = vrot.lane.b32.xlu1 %v4275_v11, %s4318_s25 }
0x28df   :  { %v2691_v13 = vpop.permute.xlu0 %2690 }
0x28e0   :  { %v2693_v23 = vmul.f32 %v4269_v17, %v2691_v13 }
0x28e2   :  { %v2694_v19 = vpack.c.bf16 %v2693_v23, %v2693_v23 }
0x28e4   :  { %2696 = vrot.lane.b32.xlu0 %v2694_v19, %s4321_s1 }
0x28eb   :  { %v2626_v24 = vpop.permute.xlu1 %2625 }
0x28ec   :  { %v5072_v26 = vmul.f32 %v4271_v63, %v2626_v24 }
0x28ee   :  { %v2741_v29 = vpack.c.bf16 %v5072_v26, %v5072_v26 }
0x28f0   :  { %2743 = vrot.lane.b32.xlu1 %v2741_v29, %s4321_s1 }
0x2956   :  { %v2697_v32 = vpop.permute.xlu0 %2696 }
0x2957   :  { %3895 = vmatmul.mubr.msk.bf16.vlgmr.msra.gmra.mrb[56].mxu0 %vm133_vm0, %v2697_v32  ;;  %3911 = vmatmul.mubr.msk.bf16.vlgmr.msra.gmra.mrb[60].mxu1 %vm133_vm0, %v2697_v32 }
0x2958   :  { %3899 = vmatpush3.bf16.msra.mxu0 %v4898_v25  ;;  %3902 = vmatprep.mubr.msk.bf16.mxu0 %vm4320_vm1, %v4319_v21 }
0x2959   :  { %3900 = vmatprep.subr.bf16.mxu0 %v4319_v21  ;;  %3915 = vmatpush3.bf16.msra.mxu1 %v4837_v42 }
0x295a   :  { %3916 = vmatprep.subr.bf16.mxu1 %v4319_v21  ;;  %3918 = vmatprep.mubr.msk.bf16.mxu1 %vm4320_vm1, %v4319_v21 }
0x295c   :  { %3901 = vmatpush3.bf16.msra.mxu0 %v4906_v27 }
0x295d   :  { %3930 = vmatprep.subr.bf16.mxu0 %v4319_v21  ;;  %3917 = vmatpush3.bf16.msra.mxu1 %v4850_v44 }
0x295e   :  { %3922 = vmatprep.subr.bf16.mxu1 %v4319_v21 }
0x2962   :  { %v2744_v12 = vpop.permute.xlu1 %2743 }
0x2963   :  { %3903 = vmatmul.mubr.msk.bf16.vlgmr.msra.gmra.mrb[56].mxu0 %vm133_vm0, %v2744_v12 }
0x2964   :  { %3931 = vmatpush3.bf16.msra.mxu0 %v4832_v41  ;;  %3934 = vmatprep.mubr.msk.bf16.mxu0 %vm4320_vm1, %v4319_v21 }
0x2965   :  { %3932 = vmatprep.subr.bf16.mxu0 %v4319_v21 }
0x2968   :  { %3933 = vmatpush3.bf16.msra.mxu0 %v4843_v28 }
0x2969   :  { %3938 = vmatprep.subr.bf16.mxu0 %v4319_v21 }
0x2a2a   :  { %v2847_v33 = vpop.f32.mrb[60].mxu1 }
0x2a2b   :  { %v2853_v34 = vadd.f32 %v2847_v33, %v4824_v16  ;;  %v3912_v35 = vpop.f32.mrb[61].mxu1 }
0x2a2c   :  { %v2850_v36 = vpop.f32.mrb[62].mxu1 }
0x2a2d   :  { %4276 = vtanh.f32 %v2853_v34  ;;  %v3913_v37 = vpop.f32.mrb[63].mxu1  ;;  %v3408_v45 = vmul.f32 -1.442695, %v2853_v34 }
0x2a36   :  { %v2782_v38 = vpop.f32.mrb[56].mxu0 }
0x2a37   :  { %v4277_v31 = vpop.eup %4276  ;;  %v3977_v41 = vadd.f32 %v4877_v14, %v2782_v38  ;;  %v3904_v39 = vpop.f32.mrb[57].mxu0 }
0x2a38   :  { %2863 = vrot.lane.b32.xlu0 %v4277_v31, %s4318_s25  ;;  %v2785_v9 = vpop.f32.mrb[58].mxu0 }
0x2a39   :  { %4278 = vtanh.f32 %v3977_v41  ;;  %v3905_v43 = vpop.f32.mrb[59].mxu0  ;;  %v3406_v30 = vmul.f32 -1.442695, %v3977_v41 }
0x2a3a   :  { %4280 = vpow2.f32 %v3408_v45 }
0x2a3b   :  { %4282 = vpow2.f32 %v3406_v30 }
0x2a43   :  { %v4279_v28 = vpop.eup %4278 }
0x2a44   :  { %2798 = vrot.lane.b32.xlu1 %v4279_v28, %s4318_s25  ;;  %v4281_v46 = vpop.eup %4280 }
0x2a45   :  { %v2857_v8 = vadd.f32 1.0, %v4281_v46  ;;  %v4283_v47 = vpop.eup %4282 }
0x2a46   :  { %v2792_v48 = vadd.f32 1.0, %v4283_v47 }
0x2a47   :  { %4284 = vrcp.f32 %v2857_v8 }
0x2a48   :  { %4286 = vrcp.f32 %v2792_v48 }
0x2a51   :  { %v4285_v49 = vpop.eup %4284 }
0x2a52   :  { %v4287_v52 = vpop.eup %4286  ;;  %v2861_v55 = vmul.f32 %v4285_v49, %v5062_v5 }
0x2a53   :  { %v2796_v58 = vmul.f32 %v4287_v52, %v5066_v15 }
0x2aaa   :  { %v2864_v50 = vpop.permute.xlu0 %2863 }
0x2aab   :  { %v2866_v51 = vmul.f32 %v4285_v49, %v2864_v50 }
0x2aad   :  { %2868 = vrot.lane.b32.xlu0 %v2866_v51, %s4318_s25 }
0x2ab6   :  { %v2799_v54 = vpop.permute.xlu1 %2798 }
0x2ab7   :  { %v2801_v18 = vmul.f32 %v4287_v52, %v2799_v54 }
0x2ab9   :  { %2803 = vrot.lane.b32.xlu1 %v2801_v18, %s4318_s25 }
0x2b1f   :  { %v2869_v56 = vpop.permute.xlu0 %2868 }
0x2b20   :  { %v5105_v57 = vadd.f32 %v2869_v56, %v2861_v55 }
0x2b22   :  { %4288 = vtanh.f32 %v5105_v57 }
0x2b2b   :  { %v2804_v59 = vpop.permute.xlu1 %2803 }
0x2b2c   :  { %v4289_v20 = vpop.eup %4288  ;;  %v5109_v60 = vadd.f32 %v2804_v59, %v2796_v58 }
0x2b2d   :  { %2874 = vrot.lane.b32.xlu0 %v4289_v20, %s4318_s25 }
0x2b2e   :  { %4290 = vtanh.f32 %v5109_v60 }
0x2b38   :  { %v4291_v17 = vpop.eup %4290 }
0x2b39   :  { %2809 = vrot.lane.b32.xlu1 %v4291_v17, %s4318_s25 }
0x2b9f   :  { %v2875_v62 = vpop.permute.xlu0 %2874 }
0x2ba0   :  { %v2877_v61 = vmul.f32 %v4285_v49, %v2875_v62 }
0x2ba2   :  { %v2878_v63 = vpack.c.bf16 %v2877_v61, %v2877_v61 }
0x2ba4   :  { %2880 = vrot.lane.b32.xlu0 %v2878_v63, %s4321_s1  ;;  %v4058_v63 = vld [vmem:[%s5227_s15] sm:$0xff]  }
0x2bab   :  { %v2810_v1 = vpop.permute.xlu1 %2809 }
0x2bac   :  { %v5115_v2 = vmul.f32 %v4287_v52, %v2810_v1 }
0x2bae   :  { %v2925_v3 = vpack.c.bf16 %v5115_v2, %v5115_v2  ;;  %v3183_v1 = vpack.c.bf16 %v5115_v2, %v5072_v26  ;;  %v3182_v26 = vpack.c.bf16 %v5029_v40, %v4986_v53  ;;  %v3417_v53 = vld [vmem:[%s5228_s16] ss:$0 sm:$0xff] }
0x2bb0   :  { %2927 = vrot.lane.b32.xlu1 %v2925_v3, %s4321_s1 }
0x2c16   :  { %v2881_v4 = vpop.permute.xlu0 %2880 }
0x2c17   :  { %3919 = vmatmul.mubr.msk.bf16.vlgmr.msra.gmra.mrb[64].mxu1 %vm133_vm0, %v2881_v4  ;;  %3935 = vmatmul.mubr.msk.bf16.vlgmr.msra.gmra.mrb[60].mxu0 %vm133_vm0, %v2881_v4  ;;  %v4059_v4 = vld [vmem:[%s5227_s15 + $0x8] sm:$0xff]  }
0x2c18   :  { %3923 = vmatpush3.bf16.msra.mxu1 %v4898_v25  ;;  %3926 = vmatprep.mubr.msk.bf16.mxu1 %vm4320_vm1, %v4319_v21 }
0x2c19   :  { %3924 = vmatprep.subr.bf16.mxu1 %v4319_v21  ;;  %3939 = vmatpush3.bf16.msra.mxu0 %v4837_v42 }
0x2c1a   :  { %3940 = vmatprep.subr.bf16.mxu0 %v4319_v21  ;;  %3942 = vmatprep.mubr.msk.bf16.mxu0 %vm4320_vm1, %v4319_v21 }
0x2c1c   :  { %3925 = vmatpush3.bf16.msra.mxu1 %v4906_v27 }
0x2c1d   :  { %3941 = vmatpush3.bf16.msra.mxu0 %v4850_v44  ;;  %3954 = vmatprep.subr.bf16.mxu1 %v4058_v63 }
0x2c1e   :  { %3946 = vmatprep.subr.bf16.mxu0 %v4319_v21 }
0x2c22   :  { %v2928_v5 = vpop.permute.xlu1 %2927 }
0x2c23   :  { %3927 = vmatmul.mubr.msk.bf16.vlgmr.msra.gmra.mrb[64].mxu1 %vm133_vm0, %v2928_v5 }
0x2c24   :  { %3955 = vmatpush3.bf16.msra.mxu1 %v4058_v63 }
0x2c25   :  { %3956 = vmatprep.subr.bf16.mxu1 %v4059_v4 }
0x2c28   :  { %3957 = vmatpush3.bf16.msra.mxu1 %v4059_v4 }
0x2cea   :  { %v3031_v6 = vpop.f32.mrb[60].mxu0 }
0x2ceb   :  { %v3037_v7 = vadd.f32 %v3031_v6, %v4824_v16  ;;  %v3936_v22 = vpop.f32.mrb[61].mxu0 }
0x2cec   :  { %v3034_v15 = vpop.f32.mrb[62].mxu0 }
0x2ced   :  { %4292 = vtanh.f32 %v3037_v7  ;;  %v3937_v42 = vpop.f32.mrb[63].mxu0  ;;  %v3413_v32 = vmul.f32 -1.442695, %v3037_v7 }
0x2cf6   :  { %v2966_v11 = vpop.f32.mrb[64].mxu1 }
0x2cf7   :  { %v4293_v13 = vpop.eup %4292  ;;  %v3978_v23 = vadd.f32 %v4877_v14, %v2966_v11  ;;  %v3928_v19 = vpop.f32.mrb[65].mxu1 }
0x2cf8   :  { %v2969_v24 = vpop.f32.mrb[66].mxu1  ;;  %3047 = vrot.lane.b32.xlu0 %v4293_v13, %s4318_s25 }
0x2cf9   :  { %4294 = vtanh.f32 %v3978_v23  ;;  %v3929_v44 = vpop.f32.mrb[67].mxu1  ;;  %v3411_v16 = vmul.f32 -1.442695, %v3978_v23 }
0x2cfa   :  { %4296 = vpow2.f32 %v3413_v32 }
0x2cfb   :  { %4298 = vpow2.f32 %v3411_v16 }
0x2d03   :  { %v4295_v29 = vpop.eup %4294 }
0x2d04   :  { %2982 = vrot.lane.b32.xlu1 %v4295_v29, %s4318_s25  ;;  %v4297_v12 = vpop.eup %4296 }
0x2d05   :  { %v3041_v33 = vadd.f32 1.0, %v4297_v12  ;;  %v4299_v34 = vpop.eup %4298 }
0x2d06   :  { %v2976_v35 = vadd.f32 1.0, %v4299_v34 }
0x2d07   :  { %4300 = vrcp.f32 %v3041_v33 }
0x2d08   :  { %4302 = vrcp.f32 %v2976_v35 }
0x2d11   :  { %v4301_v36 = vpop.eup %4300 }
0x2d12   :  { %v4303_v31 = vpop.eup %4302  ;;  %v3045_v9 = vmul.f32 %v4301_v36, %v5105_v57 }
0x2d13   :  { %v2980_v45 = vmul.f32 %v4303_v31, %v5109_v60 }
0x2d6a   :  { %v3048_v37 = vpop.permute.xlu0 %3047 }
0x2d6b   :  { %v3050_v38 = vmul.f32 %v4301_v36, %v3048_v37 }
0x2d6d   :  { %3052 = vrot.lane.b32.xlu0 %v3050_v38, %s4318_s25 }
0x2d76   :  { %v2983_v41 = vpop.permute.xlu1 %2982 }
0x2d77   :  { %v2985_v39 = vmul.f32 %v4303_v31, %v2983_v41 }
0x2d79   :  { %2987 = vrot.lane.b32.xlu1 %v2985_v39, %s4318_s25 }
0x2ddf   :  { %v3053_v43 = vpop.permute.xlu0 %3052 }
0x2de0   :  { %v3055_v28 = vadd.f32 %v3053_v43, %v3045_v9 }
0x2de2   :  { %4304 = vtanh.f32 %v3055_v28 }
0x2deb   :  { %v2988_v30 = vpop.permute.xlu1 %2987 }
0x2dec   :  { %v4305_v46 = vpop.eup %4304  ;;  %v2990_v8 = vadd.f32 %v2988_v30, %v2980_v45 }
0x2ded   :  { %3058 = vrot.lane.b32.xlu0 %v4305_v46, %s4318_s25 }
0x2dee   :  { %4306 = vtanh.f32 %v2990_v8 }
0x2df8   :  { %v4307_v47 = vpop.eup %4306 }
0x2df9   :  { %2993 = vrot.lane.b32.xlu1 %v4307_v47, %s4318_s25 }
0x2e5f   :  { %v3059_v48 = vpop.permute.xlu0 %3058 }
0x2e60   :  { %v3061_v49 = vmul.f32 %v4301_v36, %v3059_v48 }
0x2e62   :  { %v3062_v50 = vpack.c.bf16 %v3061_v49, %v3061_v49 }
0x2e64   :  { %3064 = vrot.lane.b32.xlu0 %v3062_v50, %s4321_s1 }
0x2e6b   :  { %v2994_v51 = vpop.permute.xlu1 %2993 }
0x2e6c   :  { %v2996_v52 = vmul.f32 %v4303_v31, %v2994_v51 }
0x2e6e   :  { %v3109_v54 = vpack.c.bf16 %v2996_v52, %v2996_v52 }
0x2e70   :  { %3111 = vrot.lane.b32.xlu1 %v3109_v54, %s4321_s1 }
0x2ed6   :  { %v3065_v18 = vpop.permute.xlu0 %3064 }
0x2ed7   :  { %3943 = vmatmul.mubr.msk.bf16.vlgmr.msra.gmra.mrb[64].mxu0 %vm133_vm0, %v3065_v18 }
0x2ed8   :  { %3947 = vmatpush3.bf16.msra.mxu0 %v4898_v25  ;;  %3950 = vmatprep.mubr.msk.bf16.mxu0 %vm4320_vm1, %v4319_v21 }
0x2ed9   :  { %3948 = vmatprep.subr.bf16.mxu0 %v4319_v21 }
0x2edc   :  { %3949 = vmatpush3.bf16.msra.mxu0 %v4906_v27 }
0x2ee2   :  { %v3112_v55 = vpop.permute.xlu1 %3111 }
0x2ee3   :  { %3951 = vmatmul.mubr.msk.bf16.vlgmr.msra.gmra.mrb[64].mxu0 %vm133_vm0, %v3112_v55 }
0x2fb6   :  { %v3150_v56 = vpop.f32.mrb[64].mxu0 }
0x2fb7   :  { %v3979_v57 = vadd.f32 %v4877_v14, %v3150_v56  ;;  %v3952_v58 = vpop.f32.mrb[65].mxu0  ;;  %v3181_v14 = vpack.c.bf16 %v4943_v0, %v4888_v10 }
0x2fb8   :  { %v3153_v59 = vpop.f32.mrb[66].mxu0 }
0x2fb9   :  { %4308 = vtanh.f32 %v3979_v57  ;;  %v3953_v20 = vpop.f32.mrb[67].mxu0  ;;  %v3416_v25 = vmul.f32 -1.442695, %v3979_v57 }
0x2fbb   :  { %4310 = vpow2.f32 %v3416_v25 }
0x2fc3   :  { %v4309_v60 = vpop.eup %4308 }
0x2fc4   :  { %3166 = vrot.lane.b32.xlu0 %v4309_v60, %s4318_s25 }
0x2fc5   :  { %v4311_v17 = vpop.eup %4310 }
0x2fc6   :  { %v3160_v62 = vadd.f32 1.0, %v4311_v17 }
0x2fc8   :  { %4312 = vrcp.f32 %v3160_v62 }
0x2fd2   :  { %v4313_v21 = vpop.eup %4312 }
0x2fd3   :  { %v3164_v3 = vmul.f32 %v4313_v21, %v2990_v8 }
0x3036   :  { %v3167_v27 = vpop.permute.xlu0 %3166 }
0x3037   :  { %v3169_v61 = vmul.f32 %v4313_v21, %v3167_v27 }
0x3039   :  { %3171 = vrot.lane.b32.xlu1 %v3169_v61, %s4318_s25 }
0x303d   :  { %3195 = vrot.lane.b32.xlu1 %v3181_v14, %s4321_s1 }
0x3041   :  { %3199 = vrot.lane.b32.xlu1 %v3183_v1, %s4321_s1 }
0x30ab   :  { %v3172_v5 = vpop.permute.xlu1 %3171 }
0x30ac   :  { %v3174_v10 = vadd.f32 %v3172_v5, %v3164_v3 }
0x30ae   :  { %4314 = vtanh.f32 %v3174_v10 }
0x30af   :  { %v3196_v0 = vpop.permute.xlu1 %3195 }
0x30b0   :  { %3958 = vmatprep.mubr.msk.bf16.mxu1 %vm133_vm0, %v3196_v0 }
0x30b3   :  { %v3200_v42 = vpop.permute.xlu1 %3199 }
0x30b8   :  { %v4315_v6 = vpop.eup %4314 }
0x30b9   :  { %3177 = vrot.lane.b32.xlu0 %v4315_v6, %s4318_s25 }
0x30bd   :  { %3197 = vrot.lane.b32.xlu0 %v3182_v26, %s4321_s1 }
0x312b   :  { %v3178_v2 = vpop.permute.xlu0 %3177 }
0x312c   :  { %v3180_v7 = vmul.f32 %v4313_v21, %v3178_v2 }
0x312e   :  { %v3184_v22 = vpack.c.bf16 %v3180_v7, %v2996_v52 }
0x312f   :  { %v3198_v15 = vpop.permute.xlu0 %3197 }
0x3130   :  { %3201 = vrot.lane.b32.xlu0 %v3184_v22, %s4321_s1  ;;  %3959 = vmatmul.mubr.msk.bf16.vlgmr.msra.gmra.mrb[68].mxu1 %vm133_vm0, %v3198_v15 }
0x3131   :  { %3962 = vmatprep.mubr.msk.bf16.mxu1 %vm133_vm0, %v3200_v42 }
0x31a2   :  { %v3202_v11 = vpop.permute.xlu0 %3201 }
0x31a3   :  { %3963 = vmatmul.mubr.msk.bf16.gmra.mrb[72].mxu1 %vm133_vm0, %v3202_v11 }
0x3203   :  { %v3960_v40 = vpop.f32.mrb[68].mxu1 }
0x3204   :  { %v3270_v13 = vadd.f32 %v3960_v40, %v3417_v53  ;;  %v3261_v23 = vpop.f32.mrb[69].mxu1 }
0x3205   :  { %v3262_v19 = vadd.f32 %v3417_v53, %v3261_v23  ;;  %v3961_v24 = vpop.f32.mrb[70].mxu1 }
0x3206   :  { %v3294_v44 = vmax.f32 %v3270_v13, 0.0  ;;  %v3273_v29 = vadd.f32 %v3961_v24, %v3417_v53  ;;  %v3264_v32 = vpop.f32.mrb[71].mxu1 }
0x3207   :  { %v3292_v16 = vmax.f32 %v3262_v19, 0.0  ;;  %v3265_v12 = vadd.f32 %v3417_v53, %v3264_v32 }
0x3208   :  { %3302 = vst.msk [vmem:[%s5229_s17 + $0x10] sm:$0xff] %vm133_vm0, %v3294_v44  ;;  %v3295_v33 = vmax.f32 %v3273_v29, 0.0 }
0x3209   :  { %3300 = vst.msk [vmem:[%s5229_s17] sm:$0xff] %vm133_vm0, %v3292_v16  ;;  %v3293_v34 = vmax.f32 %v3265_v12, 0.0 }
0x320a   :  { %3303 = vst.msk [vmem:[%s5229_s17 + $0x18] sm:$0xff] %vm133_vm0, %v3295_v33 }
0x320b   :  { %3301 = vst.msk [vmem:[%s5229_s17 + $0x8] sm:$0xff] %vm133_vm0, %v3293_v34 }
0x3276   :  { %v3964_v35 = vpop.f32.mrb[72].mxu1 }
0x3277   :  { %v3286_v36 = vadd.f32 %v3964_v35, %v3417_v53  ;;  %v3277_v37 = vpop.f32.mrb[73].mxu1 }
0x3278   :  { %v3278_v38 = vadd.f32 %v3417_v53, %v3277_v37  ;;  %v3965_v31 = vpop.f32.mrb[74].mxu1 }
0x3279   :  { %v3298_v41 = vmax.f32 %v3286_v36, 0.0  ;;  %v3289_v39 = vadd.f32 %v3965_v31, %v3417_v53  ;;  %v3280_v9 = vpop.f32.mrb[75].mxu1 }
0x327a   :  { %v3296_v43 = vmax.f32 %v3278_v38, 0.0  ;;  %v3281_v28 = vadd.f32 %v3417_v53, %v3280_v9 }
0x327b   :  { %3306 = vst.msk [vmem:[%s5229_s17 + $0x30] sm:$0xff] %vm133_vm0, %v3298_v41  ;;  %v3299_v45 = vmax.f32 %v3289_v39, 0.0 }
0x327c   :  { %3304 = vst.msk [vmem:[%s5229_s17 + $0x20] sm:$0xff] %vm133_vm0, %v3296_v43  ;;  %v3297_v30 = vmax.f32 %v3281_v28, 0.0 }
0x327d   :  { %3307 = vst.msk [vmem:[%s5229_s17 + $0x38] sm:$0xff] %vm133_vm0, %v3299_v45 }
0x327e   :  { %3305 = vst.msk [vmem:[%s5229_s17 + $0x28] sm:$0xff] %vm133_vm0, %v3297_v30 }

</bundles_post_ra>
